<compile_context>
chip_gen: v7x
topology: tpu7x:2x2x1
jax: 0.10.0
libtpu: 0.0.40
codegen_flags: <defaults>
</compile_context>

<pallas_src>
import functools

import jax
import jax.numpy as jnp
from jax import lax
from jax.experimental import pallas as pl
from jax.experimental.pallas import tpu as pltpu

LN_EPS = 1e-5  # torch.nn.LayerNorm default


def _gnn_edge_kernel(x_ref, edge_ref,
                     wxau1_ref, wrbv1_ref, wee1_ref,
                     wxau2_ref, wrbv2_ref, wee2_ref,
                     mavg_ref, rsum_ref,
                     x_out_ref, edge_out_ref,
                     row_scr,
                     *, num_nodes, channels):
    n, c = num_nodes, channels
    nc = n * c
    bt = x_ref.shape[0]
    inv_n = 1.0 / float(n)

    x = x_ref[...].astype(jnp.float32)        # (bt, N, C)
    edge = edge_ref[...].astype(jnp.float32)  # (bt, N, N*C), lane = j*C + c
    m_avg = mavg_ref[...]                     # (N*C, N*C) f32 = kron(I_N, 1/C)
    r_sum = rsum_ref[...]                     # (N*C, C)   f32 = tile(I_C,(N,1))

    def dot_w(a_f32, w_ref):
        # Learned projections: bf16 MXU path with f32 accumulation.
        return jnp.dot(a_f32.astype(jnp.bfloat16), w_ref[...],
                       preferred_element_type=jnp.float32)

    def dot_f32(a, b):
        # Exact 0/1 or 1/C matrices: keep the data operand in f32.
        return jnp.dot(a, b, preferred_element_type=jnp.float32)

    def rows_to_lanes(v):
        # (bt, N, C) -> (bt, N*C): small sublane->lane repack done explicitly
        # through a VMEM scratch with static lane-slice stores (robust lowering,
        # no big-tensor relayout).
        for j in range(n):
            row_scr[:, j * c:(j + 1) * c] = v[:, j, :]
        return row_scr[...]

    def ln_over_chunks(t):
        # LayerNorm over each C-lane chunk of a (bt*N, N*C) packed tensor.
        # Segmented mean/var (broadcast back over the chunk) via one MXU matmul
        # each against kron(I_N, ones(C,C)/C). weight=1, bias=0 (bn_init).
        mean = dot_f32(t, m_avg)
        d = t - mean
        var = dot_f32(d * d, m_avg)
        return d * lax.rsqrt(var + LN_EPS)

    def layer(x, edge, wxau_ref, wrbv_ref, wee_ref):
        res = x
        x_flat = x.reshape(bt * n, c)

        # Fused node projections: [tile(A^T, N) | U^T] gives A(x) already
        # tiled over j (packed lanes) and U(x) in one lane-dense matmul.
        xau = dot_w(x_flat, wxau_ref)                     # (bt*N, N*C + C)
        vix_p = xau[:, :nc]                               # A(x)[i] tiled over j
        uix = xau[:, nc:]                                 # U(x): (bt*N, C)

        # Row-packed x -> B(x), V(x) laid out along lanes as j*C + c.
        x_row = rows_to_lanes(x)                          # (bt, N*C)
        bv = dot_w(x_row, wrbv_ref)                       # (bt, 2*N*C)
        vjx_row = bv[:, :nc]
        vx_row = bv[:, nc:]

        # E(edge) stays in the packed layout via the block-diagonal weight.
        eproj = dot_w(edge.reshape(bt * n, nc), wee_ref)  # (bt*N, N*C)

        tmp = (vix_p + eproj).reshape(bt, n, nc) + vjx_row[:, None, :]
        edge = edge + jnp.maximum(
            ln_over_chunks(tmp.reshape(bt * n, nc)), 0.0).reshape(bt, n, nc)

        # Gate + softmax over j, fused into the j-aggregation.
        # sigmoid in tanh form: 2 EUP ops per element instead of 3.
        # No max-subtraction: sigmoid outputs lie in (0,1) so exp() is bounded
        # in (1, e) and cannot overflow. (Do not remove the sigmoid!)
        e2 = edge.reshape(bt * n, nc)
        sig = 0.5 * jnp.tanh(0.5 * e2) + 0.5
        ex = jnp.exp(sig)                                 # (bt*N, N*C)
        den = dot_f32(ex, r_sum)                          # (bt*N, C): sum_j exp
        wx = ex.reshape(bt, n, nc) * vx_row[:, None, :]   # exp * V(x)[j]
        num = dot_f32(wx.reshape(bt * n, nc), r_sum)      # (bt*N, C)
        agg = num * pl.reciprocal(den, approx=True)       # softmax-weighted sum

        # Node update + LayerNorm over C (identity affine) + ReLU residual.
        x_new = (uix + agg * inv_n).reshape(bt, n, c)
        mean = jnp.mean(x_new, axis=-1, keepdims=True)
        var = jnp.mean((x_new - mean) ** 2, axis=-1, keepdims=True)
        x = jnp.maximum(res + (x_new - mean) * lax.rsqrt(var + LN_EPS), 0.0)
        return x, edge

    x, edge = layer(x, edge, wxau1_ref, wrbv1_ref, wee1_ref)
    x, edge = layer(x, edge, wxau2_ref, wrbv2_ref, wee2_ref)

    x_out_ref[...] = x.astype(x_out_ref.dtype)
    edge_out_ref[...] = edge.astype(edge_out_ref.dtype)


def gnn_edge_forward(x, edge, params, num_nodes, *, batch_block=None):
    """x: (B, N, C), edge: (B, N*N, C).
    params: 10 pre-transposed (C, C) weights (A1,B1,E1,U1,V1,A2,B2,E2,U2,V2),
    i.e. Linear(y) == y @ p."""
    B, N, C = x.shape
    E = N * N
    NC = N * C
    assert edge.shape == (B, E, C)
    assert N == num_nodes
    # Packed lane-dense layout assumptions (free leading-dim reshapes only).
    assert N % 8 == 0 and NC % 128 == 0, "kernel assumes N%8==0 and N*C%128==0"

    if batch_block is None:
        # Amortize per-grid-step overhead, but keep >= 2 grid steps so both
        # v7x TensorCores stay busy.
        batch_block = B // 2 if (B % 2 == 0 and B >= 4) else 1
    assert B % batch_block == 0
    bt = batch_block

    a1, b1, e1, u1, v1, a2, b2, e2, u2, v2 = params
    eye_n = jnp.eye(N, dtype=jnp.float32)

    def kron_n(w):
        return jnp.kron(eye_n, w.astype(jnp.float32))

    def pack_layer(a, b, e, u, v):
        # These packed weights are cheap and could be precomputed once at init.
        w_xau = jnp.concatenate([jnp.tile(a, (1, N)), u], axis=1)   # (C, N*C+C)
        w_rbv = jnp.concatenate([kron_n(b), kron_n(v)], axis=1)     # (N*C, 2N*C)
        w_ee = kron_n(e)                                            # (N*C, N*C)
        return (w_xau.astype(jnp.bfloat16), w_rbv.astype(jnp.bfloat16),
                w_ee.astype(jnp.bfloat16))

    w_xau1, w_rbv1, w_ee1 = pack_layer(a1, b1, e1, u1, v1)
    w_xau2, w_rbv2, w_ee2 = pack_layer(a2, b2, e2, u2, v2)
    m_avg = jnp.kron(eye_n, jnp.full((C, C), 1.0 / C, jnp.float32))  # (N*C, N*C)
    r_sum = jnp.tile(jnp.eye(C, dtype=jnp.float32), (N, 1))          # (N*C, C)

    # Free reshape: row-major (i*N+j, c) -> (i, j*C+c). Lane-dense edge blocks.
    edge_packed = edge.reshape(B, N, NC)

    const2 = lambda b: (0, 0)
    kernel = functools.partial(_gnn_edge_kernel, num_nodes=N, channels=C)

    # Rough VMEM budget: all blocks double-buffered + headroom, capped at the
    # v7x physical budget (v5e/v6e could go higher for very large N/C).
    blk_bytes = (2 * bt * N * C * 4 * 2            # x in/out, double-buffered
                 + 2 * bt * N * NC * 4 * 2         # edge in/out
                 + 2 * (C * (NC + C) + NC * 2 * NC + NC * NC) * 2  # bf16 weights
                 + NC * NC * 4 + NC * C * 4)       # Mavg, R
    vmem_limit = int(min(64 * 1024 * 1024, max(16 * 1024 * 1024, 6 * blk_bytes)))

    x_out, edge_out = pl.pallas_call(
        kernel,
        out_shape=(jax.ShapeDtypeStruct((B, N, C), x.dtype),
                   jax.ShapeDtypeStruct((B, N, NC), edge.dtype)),
        grid_spec=pltpu.PrefetchScalarGridSpec(
            num_scalar_prefetch=0,
            grid=(B // bt,),
            in_specs=[
                pl.BlockSpec((bt, N, C), lambda b: (b, 0, 0)),    # x
                pl.BlockSpec((bt, N, NC), lambda b: (b, 0, 0)),   # edge (packed)
                pl.BlockSpec((C, NC + C), const2),                # W_xAU layer 1
                pl.BlockSpec((NC, 2 * NC), const2),               # W_rBV layer 1
                pl.BlockSpec((NC, NC), const2),                   # W_eE  layer 1
                pl.BlockSpec((C, NC + C), const2),                # W_xAU layer 2
                pl.BlockSpec((NC, 2 * NC), const2),               # W_rBV layer 2
                pl.BlockSpec((NC, NC), const2),                   # W_eE  layer 2
                pl.BlockSpec((NC, NC), const2),                   # Mavg (LN)
                pl.BlockSpec((NC, C), const2),                    # R (j-reduce)
            ],
            out_specs=[
                pl.BlockSpec((bt, N, C), lambda b: (b, 0, 0)),
                pl.BlockSpec((bt, N, NC), lambda b: (b, 0, 0)),
            ],
            scratch_shapes=[pltpu.VMEM((bt, NC), jnp.float32)],
        ),
        compiler_params=pltpu.CompilerParams(
            dimension_semantics=("parallel",),
            vmem_limit_bytes=vmem_limit,
        ),
    )(x, edge_packed, w_xau1, w_rbv1, w_ee1, w_xau2, w_rbv2, w_ee2,
      m_avg, r_sum)

    return x_out, edge_out.reshape(B, E, C)


# ----------------------------------------------------------------------------
# Pure-JAX reference mirroring the PyTorch forward (used only for checking).
# ----------------------------------------------------------------------------
def create_e_matrix(n):
    # end[e, i] = 1 iff e // n == i ; start[e, j] = 1 iff e % n == j
    eye = jnp.eye(n, dtype=jnp.float32)
    end = jnp.repeat(eye, n, axis=0)
    start = jnp.tile(eye, (n, 1))
    return start, end


def ref_forward(x, edge, params, start, end, n):
    a1, b1, e1, u1, v1, a2, b2, e2, u2, v2 = params

    def ln(y):
        m = y.mean(-1, keepdims=True)
        v = ((y - m) ** 2).mean(-1, keepdims=True)
        return (y - m) / jnp.sqrt(v + LN_EPS)

    def layer(x, edge, At, Bt, Et, Ut, Vt):
        res = x
        Vix, Vjx, e = x @ At, x @ Bt, edge @ Et
        edge = edge + jax.nn.relu(ln(jnp.einsum('ev,bvc->bec', end, Vix)
                                     + jnp.einsum('ev,bvc->bec', start, Vjx) + e))
        s = jax.nn.sigmoid(edge)
        b_, _, c_ = s.shape
        s = jax.nn.softmax(s.reshape(b_, n, n, c_), axis=2).reshape(b_, -1, c_)
        Ujx = jnp.einsum('ev,bvc->bec', start, x @ Vt)
        Uix = x @ Ut
        xn = Uix + jnp.einsum('ve,bec->bvc', end.T, s * Ujx) / n
        x = jax.nn.relu(res + ln(xn))
        return x, edge

    x, edge = layer(x, edge, a1, b1, e1, u1, v1)
    x, edge = layer(x, edge, a2, b2, e2, u2, v2)
    return x, edge


if __name__ == "__main__":
    B, N, C = 4, 8, 32          # batch, num_nodes, in_channels
    E = N * N

    key = jax.random.PRNGKey(0)
    k_x, k_e, k_w = jax.random.split(key, 3)

    x = jax.random.normal(k_x, (B, N, C), dtype=jnp.float32)
    edge = jax.random.normal(k_e, (B, E, C), dtype=jnp.float32)

    # Linear weights: torch does W ~ N(0, sqrt(2/dim_in)), y = x @ W.T.
    # Generate W of shape (out, in) and pre-transpose for the wrapper.
    scale = (2.0 / C) ** 0.5
    w_keys = jax.random.split(k_w, 10)
    params = tuple(
        (jax.random.normal(kk, (C, C), dtype=jnp.float32) * scale).T
        for kk in w_keys
    )  # order: A1, B1, E1, U1, V1, A2, B2, E2, U2, V2 (transposed)

    x_out, edge_out = gnn_edge_forward(x, edge, params, N)
    jax.block_until_ready((x_out, edge_out))

    start, end = create_e_matrix(N)
    x_ref, edge_ref = ref_forward(x, edge, params, start, end, N)

    # bf16 MXU weights + approximate EUP reciprocal => loose tolerance vs the
    # pure-f32 reference.
    assert x_out.shape == x_ref.shape and edge_out.shape == edge_ref.shape
    assert jnp.allclose(x_out, x_ref, rtol=5e-2, atol=5e-2)
    assert jnp.allclose(edge_out, edge_ref, rtol=5e-2, atol=5e-2)

    print("KERNEL_OK")
</pallas_src>

<mosaic_0001>
module attributes {stable_mosaic.version = 11 : i64} {
  func.func @_gnn_edge_kernel(%arg0: i32, %arg1: memref<2x8x32xf32, #tpu.memory_space<vmem>>, %arg2: memref<2x8x256xf32, #tpu.memory_space<vmem>>, %arg3: memref<32x288xbf16, #tpu.memory_space<vmem>>, %arg4: memref<256x512xbf16, #tpu.memory_space<vmem>>, %arg5: memref<256x256xbf16, #tpu.memory_space<vmem>>, %arg6: memref<32x288xbf16, #tpu.memory_space<vmem>>, %arg7: memref<256x512xbf16, #tpu.memory_space<vmem>>, %arg8: memref<256x256xbf16, #tpu.memory_space<vmem>>, %arg9: memref<256x256xf32, #tpu.memory_space<vmem>>, %arg10: memref<256x32xf32, #tpu.memory_space<vmem>>, %arg11: memref<2x8x32xf32, #tpu.memory_space<vmem>>, %arg12: memref<2x8x256xf32, #tpu.memory_space<vmem>>, %arg13: memref<2x256xf32, #tpu.memory_space<vmem>>) attributes {dimension_semantics = [#tpu.dimension_semantics<parallel>], iteration_bounds = array<i64: 2>, scalar_prefetch = 0 : i64, scratch_operands = 1 : i64, tpu.core_type = #tpu.core_type<tc>, window_params = [{transform_indices = @transform_0, window_bounds = array<i64: 2, 8, 32>}, {transform_indices = @transform_1, window_bounds = array<i64: 2, 8, 256>}, {pipeline_mode = #tpu.pipeline_mode<synchronous>, transform_indices = @transform_2, window_bounds = array<i64: 32, 288>}, {pipeline_mode = #tpu.pipeline_mode<synchronous>, transform_indices = @transform_3, window_bounds = array<i64: 256, 512>}, {pipeline_mode = #tpu.pipeline_mode<synchronous>, transform_indices = @transform_4, window_bounds = array<i64: 256, 256>}, {pipeline_mode = #tpu.pipeline_mode<synchronous>, transform_indices = @transform_5, window_bounds = array<i64: 32, 288>}, {pipeline_mode = #tpu.pipeline_mode<synchronous>, transform_indices = @transform_6, window_bounds = array<i64: 256, 512>}, {pipeline_mode = #tpu.pipeline_mode<synchronous>, transform_indices = @transform_7, window_bounds = array<i64: 256, 256>}, {pipeline_mode = #tpu.pipeline_mode<synchronous>, transform_indices = @transform_8, window_bounds = array<i64: 256, 256>}, {pipeline_mode = #tpu.pipeline_mode<synchronous>, transform_indices = @transform_9, window_bounds = array<i64: 256, 32>}, {transform_indices = @transform_10, window_bounds = array<i64: 2, 8, 32>}, {transform_indices = @transform_11, window_bounds = array<i64: 2, 8, 256>}]} {
    %c0 = arith.constant 0 : index
    %c0_0 = arith.constant 0 : index
    %c0_1 = arith.constant 0 : index
    %0 = vector.load %arg1[%c0, %c0_0, %c0_1] : memref<2x8x32xf32, #tpu.memory_space<vmem>>, vector<2x8x32xf32>
    %c0_2 = arith.constant 0 : index
    %c0_3 = arith.constant 0 : index
    %c0_4 = arith.constant 0 : index
    %1 = vector.load %arg2[%c0_2, %c0_3, %c0_4] : memref<2x8x256xf32, #tpu.memory_space<vmem>>, vector<2x8x256xf32>
    %c0_5 = arith.constant 0 : index
    %c0_6 = arith.constant 0 : index
    %2 = vector.load %arg9[%c0_5, %c0_6] : memref<256x256xf32, #tpu.memory_space<vmem>>, vector<256x256xf32>
    %c0_7 = arith.constant 0 : index
    %c0_8 = arith.constant 0 : index
    %3 = vector.load %arg10[%c0_7, %c0_8] : memref<256x32xf32, #tpu.memory_space<vmem>>, vector<256x32xf32>
    %4 = vector.shape_cast %0 : vector<2x8x32xf32> to vector<16x32xf32>
    %5 = arith.truncf %4 : vector<16x32xf32> to vector<16x32xbf16>
    %c0_9 = arith.constant 0 : index
    %c0_10 = arith.constant 0 : index
    %6 = vector.load %arg3[%c0_9, %c0_10] : memref<32x288xbf16, #tpu.memory_space<vmem>>, vector<32x288xbf16>
    %cst = arith.constant dense<0.000000e+00> : vector<16x288xf32>
    %7 = tpu.matmul %5, %6, %cst {dimension_numbers = #tpu.dot_dimension_numbers<[1], [0], [0], [1], [0, 0, 1, 1], [], []>} : vector<16x32xbf16>, vector<32x288xbf16>, vector<16x288xf32> -> vector<16x288xf32>
    %8 = vector.extract_strided_slice %7 {offsets = [0, 0], sizes = [16, 256], strides = [1, 1]} : vector<16x288xf32> to vector<16x256xf32>
    %9 = vector.extract_strided_slice %7 {offsets = [0, 256], sizes = [16, 32], strides = [1, 1]} : vector<16x288xf32> to vector<16x32xf32>
    %10 = vector.extract_strided_slice %0 {offsets = [0, 0, 0], sizes = [2, 1, 32], strides = [1, 1, 1]} : vector<2x8x32xf32> to vector<2x1x32xf32>
    %11 = vector.shape_cast %10 : vector<2x1x32xf32> to vector<2x32xf32>
    %c0_11 = arith.constant 0 : index
    %c0_12 = arith.constant 0 : index
    %12 = vector.load %arg13[%c0_11, %c0_12] : memref<2x256xf32, #tpu.memory_space<vmem>>, vector<2x32xf32>
    tpu.vector_store %arg13[%c0_11, %c0_12], %11 {strides = array<i32>} : memref<2x256xf32, #tpu.memory_space<vmem>>, vector<2x32xf32>,
    %13 = vector.extract_strided_slice %0 {offsets = [0, 1, 0], sizes = [2, 1, 32], strides = [1, 1, 1]} : vector<2x8x32xf32> to vector<2x1x32xf32>
    %14 = vector.shape_cast %13 : vector<2x1x32xf32> to vector<2x32xf32>
    %c0_13 = arith.constant 0 : index
    %c32 = arith.constant 32 : index
    %15 = vector.load %arg13[%c0_13, %c32] : memref<2x256xf32, #tpu.memory_space<vmem>>, vector<2x32xf32>
    tpu.vector_store %arg13[%c0_13, %c32], %14 {strides = array<i32>} : memref<2x256xf32, #tpu.memory_space<vmem>>, vector<2x32xf32>,
    %16 = vector.extract_strided_slice %0 {offsets = [0, 2, 0], sizes = [2, 1, 32], strides = [1, 1, 1]} : vector<2x8x32xf32> to vector<2x1x32xf32>
    %17 = vector.shape_cast %16 : vector<2x1x32xf32> to vector<2x32xf32>
    %c0_14 = arith.constant 0 : index
    %c64 = arith.constant 64 : index
    %18 = vector.load %arg13[%c0_14, %c64] : memref<2x256xf32, #tpu.memory_space<vmem>>, vector<2x32xf32>
    tpu.vector_store %arg13[%c0_14, %c64], %17 {strides = array<i32>} : memref<2x256xf32, #tpu.memory_space<vmem>>, vector<2x32xf32>,
    %19 = vector.extract_strided_slice %0 {offsets = [0, 3, 0], sizes = [2, 1, 32], strides = [1, 1, 1]} : vector<2x8x32xf32> to vector<2x1x32xf32>
    %20 = vector.shape_cast %19 : vector<2x1x32xf32> to vector<2x32xf32>
    %c0_15 = arith.constant 0 : index
    %c96 = arith.constant 96 : index
    %21 = vector.load %arg13[%c0_15, %c96] : memref<2x256xf32, #tpu.memory_space<vmem>>, vector<2x32xf32>
    tpu.vector_store %arg13[%c0_15, %c96], %20 {strides = array<i32>} : memref<2x256xf32, #tpu.memory_space<vmem>>, vector<2x32xf32>,
    %22 = vector.extract_strided_slice %0 {offsets = [0, 4, 0], sizes = [2, 1, 32], strides = [1, 1, 1]} : vector<2x8x32xf32> to vector<2x1x32xf32>
    %23 = vector.shape_cast %22 : vector<2x1x32xf32> to vector<2x32xf32>
    %c0_16 = arith.constant 0 : index
    %c128 = arith.constant 128 : index
    %24 = vector.load %arg13[%c0_16, %c128] : memref<2x256xf32, #tpu.memory_space<vmem>>, vector<2x32xf32>
    tpu.vector_store %arg13[%c0_16, %c128], %23 {strides = array<i32>} : memref<2x256xf32, #tpu.memory_space<vmem>>, vector<2x32xf32>,
    %25 = vector.extract_strided_slice %0 {offsets = [0, 5, 0], sizes = [2, 1, 32], strides = [1, 1, 1]} : vector<2x8x32xf32> to vector<2x1x32xf32>
    %26 = vector.shape_cast %25 : vector<2x1x32xf32> to vector<2x32xf32>
    %c0_17 = arith.constant 0 : index
    %c160 = arith.constant 160 : index
    %27 = vector.load %arg13[%c0_17, %c160] : memref<2x256xf32, #tpu.memory_space<vmem>>, vector<2x32xf32>
    tpu.vector_store %arg13[%c0_17, %c160], %26 {strides = array<i32>} : memref<2x256xf32, #tpu.memory_space<vmem>>, vector<2x32xf32>,
    %28 = vector.extract_strided_slice %0 {offsets = [0, 6, 0], sizes = [2, 1, 32], strides = [1, 1, 1]} : vector<2x8x32xf32> to vector<2x1x32xf32>
    %29 = vector.shape_cast %28 : vector<2x1x32xf32> to vector<2x32xf32>
    %c0_18 = arith.constant 0 : index
    %c192 = arith.constant 192 : index
    %30 = vector.load %arg13[%c0_18, %c192] : memref<2x256xf32, #tpu.memory_space<vmem>>, vector<2x32xf32>
    tpu.vector_store %arg13[%c0_18, %c192], %29 {strides = array<i32>} : memref<2x256xf32, #tpu.memory_space<vmem>>, vector<2x32xf32>,
    %31 = vector.extract_strided_slice %0 {offsets = [0, 7, 0], sizes = [2, 1, 32], strides = [1, 1, 1]} : vector<2x8x32xf32> to vector<2x1x32xf32>
    %32 = vector.shape_cast %31 : vector<2x1x32xf32> to vector<2x32xf32>
    %c0_19 = arith.constant 0 : index
    %c224 = arith.constant 224 : index
    %33 = vector.load %arg13[%c0_19, %c224] : memref<2x256xf32, #tpu.memory_space<vmem>>, vector<2x32xf32>
    tpu.vector_store %arg13[%c0_19, %c224], %32 {strides = array<i32>} : memref<2x256xf32, #tpu.memory_space<vmem>>, vector<2x32xf32>,
    %c0_20 = arith.constant 0 : index
    %c0_21 = arith.constant 0 : index
    %34 = vector.load %arg13[%c0_20, %c0_21] : memref<2x256xf32, #tpu.memory_space<vmem>>, vector<2x256xf32>
    %35 = arith.truncf %34 : vector<2x256xf32> to vector<2x256xbf16>
    %c0_22 = arith.constant 0 : index
    %c0_23 = arith.constant 0 : index
    %36 = vector.load %arg4[%c0_22, %c0_23] : memref<256x512xbf16, #tpu.memory_space<vmem>>, vector<256x512xbf16>
    %cst_24 = arith.constant dense<0.000000e+00> : vector<2x512xf32>
    %37 = tpu.matmul %35, %36, %cst_24 {dimension_numbers = #tpu.dot_dimension_numbers<[1], [0], [0], [1], [0, 0, 1, 1], [], []>} : vector<2x256xbf16>, vector<256x512xbf16>, vector<2x512xf32> -> vector<2x512xf32>
    %38 = vector.extract_strided_slice %37 {offsets = [0, 0], sizes = [2, 256], strides = [1, 1]} : vector<2x512xf32> to vector<2x256xf32>
    %39 = vector.extract_strided_slice %37 {offsets = [0, 256], sizes = [2, 256], strides = [1, 1]} : vector<2x512xf32> to vector<2x256xf32>
    %40 = vector.shape_cast %1 : vector<2x8x256xf32> to vector<16x256xf32>
    %41 = arith.truncf %40 : vector<16x256xf32> to vector<16x256xbf16>
    %c0_25 = arith.constant 0 : index
    %c0_26 = arith.constant 0 : index
    %42 = vector.load %arg5[%c0_25, %c0_26] : memref<256x256xbf16, #tpu.memory_space<vmem>>, vector<256x256xbf16>
    %cst_27 = arith.constant dense<0.000000e+00> : vector<16x256xf32>
    %43 = tpu.matmul %41, %42, %cst_27 {dimension_numbers = #tpu.dot_dimension_numbers<[1], [0], [0], [1], [0, 0, 1, 1], [], []>} : vector<16x256xbf16>, vector<256x256xbf16>, vector<16x256xf32> -> vector<16x256xf32>
    %44 = arith.addf %8, %43 : vector<16x256xf32>
    %45 = vector.shape_cast %44 : vector<16x256xf32> to vector<2x8x256xf32>
    %46 = vector.shape_cast %38 : vector<2x256xf32> to vector<2x1x256xf32>
    %47 = vector.broadcast %46 : vector<2x1x256xf32> to vector<2x8x256xf32>
    %48 = arith.addf %45, %47 : vector<2x8x256xf32>
    %49 = vector.shape_cast %48 : vector<2x8x256xf32> to vector<16x256xf32>
    %cst_28 = arith.constant dense<0.000000e+00> : vector<16x256xf32>
    %50 = tpu.matmul %49, %2, %cst_28 {dimension_numbers = #tpu.dot_dimension_numbers<[1], [0], [0], [1], [0, 0, 1, 1], [], []>} : vector<16x256xf32>, vector<256x256xf32>, vector<16x256xf32> -> vector<16x256xf32>
    %51 = arith.subf %49, %50 : vector<16x256xf32>
    %52 = arith.mulf %51, %51 : vector<16x256xf32>
    %cst_29 = arith.constant dense<0.000000e+00> : vector<16x256xf32>
    %53 = tpu.matmul %52, %2, %cst_29 {dimension_numbers = #tpu.dot_dimension_numbers<[1], [0], [0], [1], [0, 0, 1, 1], [], []>} : vector<16x256xf32>, vector<256x256xf32>, vector<16x256xf32> -> vector<16x256xf32>
    %cst_30 = arith.constant 9.99999974E-6 : f32
    %54 = vector.broadcast %cst_30 : f32 to vector<16x256xf32>
    %55 = arith.addf %53, %54 : vector<16x256xf32>
    %56 = math.rsqrt %55 : vector<16x256xf32>
    %57 = arith.mulf %51, %56 : vector<16x256xf32>
    %cst_31 = arith.constant 0.000000e+00 : f32
    %58 = vector.broadcast %cst_31 : f32 to vector<16x256xf32>
    %59 = arith.maximumf %57, %58 : vector<16x256xf32>
    %60 = vector.shape_cast %59 : vector<16x256xf32> to vector<2x8x256xf32>
    %61 = arith.addf %1, %60 : vector<2x8x256xf32>
    %62 = vector.shape_cast %61 : vector<2x8x256xf32> to vector<16x256xf32>
    %cst_32 = arith.constant 5.000000e-01 : f32
    %63 = vector.broadcast %cst_32 : f32 to vector<16x256xf32>
    %64 = arith.mulf %63, %62 : vector<16x256xf32>
    %65 = math.tanh %64 : vector<16x256xf32>
    %cst_33 = arith.constant 5.000000e-01 : f32
    %66 = vector.broadcast %cst_33 : f32 to vector<16x256xf32>
    %67 = arith.mulf %66, %65 : vector<16x256xf32>
    %cst_34 = arith.constant 5.000000e-01 : f32
    %68 = vector.broadcast %cst_34 : f32 to vector<16x256xf32>
    %69 = arith.addf %67, %68 : vector<16x256xf32>
    %70 = math.exp %69 : vector<16x256xf32>
    %cst_35 = arith.constant dense<0.000000e+00> : vector<16x32xf32>
    %71 = tpu.matmul %70, %3, %cst_35 {dimension_numbers = #tpu.dot_dimension_numbers<[1], [0], [0], [1], [0, 0, 1, 1], [], []>} : vector<16x256xf32>, vector<256x32xf32>, vector<16x32xf32> -> vector<16x32xf32>
    %72 = vector.shape_cast %70 : vector<16x256xf32> to vector<2x8x256xf32>
    %73 = vector.shape_cast %39 : vector<2x256xf32> to vector<2x1x256xf32>
    %74 = vector.broadcast %73 : vector<2x1x256xf32> to vector<2x8x256xf32>
    %75 = arith.mulf %72, %74 : vector<2x8x256xf32>
    %76 = vector.shape_cast %75 : vector<2x8x256xf32> to vector<16x256xf32>
    %cst_36 = arith.constant dense<0.000000e+00> : vector<16x32xf32>
    %77 = tpu.matmul %76, %3, %cst_36 {dimension_numbers = #tpu.dot_dimension_numbers<[1], [0], [0], [1], [0, 0, 1, 1], [], []>} : vector<16x256xf32>, vector<256x32xf32>, vector<16x32xf32> -> vector<16x32xf32>
    %78 = tpu.reciprocal %71 {approx = true} : vector<16x32xf32> -> vector<16x32xf32>
    %79 = arith.mulf %77, %78 : vector<16x32xf32>
    %cst_37 = arith.constant 1.250000e-01 : f32
    %80 = vector.broadcast %cst_37 : f32 to vector<16x32xf32>
    %81 = arith.mulf %79, %80 : vector<16x32xf32>
    %82 = arith.addf %9, %81 : vector<16x32xf32>
    %83 = vector.shape_cast %82 : vector<16x32xf32> to vector<2x8x32xf32>
    %cst_38 = arith.constant dense<0.000000e+00> : vector<2x8xf32>
    %84 = vector.multi_reduction <add>, %83, %cst_38 [2] : vector<2x8x32xf32> to vector<2x8xf32>
    %85 = vector.shape_cast %84 : vector<2x8xf32> to vector<2x8x1xf32>
    %cst_39 = arith.constant 3.200000e+01 : f32
    %86 = vector.broadcast %cst_39 : f32 to vector<2x8x1xf32>
    %87 = arith.divf %85, %86 : vector<2x8x1xf32>
    %88 = vector.broadcast %87 : vector<2x8x1xf32> to vector<2x8x32xf32>
    %89 = arith.subf %83, %88 : vector<2x8x32xf32>
    %90 = arith.mulf %89, %89 : vector<2x8x32xf32>
    %cst_40 = arith.constant dense<0.000000e+00> : vector<2x8xf32>
    %91 = vector.multi_reduction <add>, %90, %cst_40 [2] : vector<2x8x32xf32> to vector<2x8xf32>
    %92 = vector.shape_cast %91 : vector<2x8xf32> to vector<2x8x1xf32>
    %cst_41 = arith.constant 3.200000e+01 : f32
    %93 = vector.broadcast %cst_41 : f32 to vector<2x8x1xf32>
    %94 = arith.divf %92, %93 : vector<2x8x1xf32>
    %95 = vector.broadcast %87 : vector<2x8x1xf32> to vector<2x8x32xf32>
    %96 = arith.subf %83, %95 : vector<2x8x32xf32>
    %cst_42 = arith.constant 9.99999974E-6 : f32
    %97 = vector.broadcast %cst_42 : f32 to vector<2x8x1xf32>
    %98 = arith.addf %94, %97 : vector<2x8x1xf32>
    %99 = math.rsqrt %98 : vector<2x8x1xf32>
    %100 = vector.broadcast %99 : vector<2x8x1xf32> to vector<2x8x32xf32>
    %101 = arith.mulf %96, %100 : vector<2x8x32xf32>
    %102 = arith.addf %0, %101 : vector<2x8x32xf32>
    %cst_43 = arith.constant 0.000000e+00 : f32
    %103 = vector.broadcast %cst_43 : f32 to vector<2x8x32xf32>
    %104 = arith.maximumf %102, %103 : vector<2x8x32xf32>
    %105 = vector.shape_cast %104 : vector<2x8x32xf32> to vector<16x32xf32>
    %106 = arith.truncf %105 : vector<16x32xf32> to vector<16x32xbf16>
    %c0_44 = arith.constant 0 : index
    %c0_45 = arith.constant 0 : index
    %107 = vector.load %arg6[%c0_44, %c0_45] : memref<32x288xbf16, #tpu.memory_space<vmem>>, vector<32x288xbf16>
    %cst_46 = arith.constant dense<0.000000e+00> : vector<16x288xf32>
    %108 = tpu.matmul %106, %107, %cst_46 {dimension_numbers = #tpu.dot_dimension_numbers<[1], [0], [0], [1], [0, 0, 1, 1], [], []>} : vector<16x32xbf16>, vector<32x288xbf16>, vector<16x288xf32> -> vector<16x288xf32>
    %109 = vector.extract_strided_slice %108 {offsets = [0, 0], sizes = [16, 256], strides = [1, 1]} : vector<16x288xf32> to vector<16x256xf32>
    %110 = vector.extract_strided_slice %108 {offsets = [0, 256], sizes = [16, 32], strides = [1, 1]} : vector<16x288xf32> to vector<16x32xf32>
    %111 = vector.extract_strided_slice %104 {offsets = [0, 0, 0], sizes = [2, 1, 32], strides = [1, 1, 1]} : vector<2x8x32xf32> to vector<2x1x32xf32>
    %112 = vector.shape_cast %111 : vector<2x1x32xf32> to vector<2x32xf32>
    %c0_47 = arith.constant 0 : index
    %c0_48 = arith.constant 0 : index
    %113 = vector.load %arg13[%c0_47, %c0_48] : memref<2x256xf32, #tpu.memory_space<vmem>>, vector<2x32xf32>
    tpu.vector_store %arg13[%c0_47, %c0_48], %112 {strides = array<i32>} : memref<2x256xf32, #tpu.memory_space<vmem>>, vector<2x32xf32>,
    %114 = vector.extract_strided_slice %104 {offsets = [0, 1, 0], sizes = [2, 1, 32], strides = [1, 1, 1]} : vector<2x8x32xf32> to vector<2x1x32xf32>
    %115 = vector.shape_cast %114 : vector<2x1x32xf32> to vector<2x32xf32>
    %c0_49 = arith.constant 0 : index
    %c32_50 = arith.constant 32 : index
    %116 = vector.load %arg13[%c0_49, %c32_50] : memref<2x256xf32, #tpu.memory_space<vmem>>, vector<2x32xf32>
    tpu.vector_store %arg13[%c0_49, %c32_50], %115 {strides = array<i32>} : memref<2x256xf32, #tpu.memory_space<vmem>>, vector<2x32xf32>,
    %117 = vector.extract_strided_slice %104 {offsets = [0, 2, 0], sizes = [2, 1, 32], strides = [1, 1, 1]} : vector<2x8x32xf32> to vector<2x1x32xf32>
    %118 = vector.shape_cast %117 : vector<2x1x32xf32> to vector<2x32xf32>
    %c0_51 = arith.constant 0 : index
    %c64_52 = arith.constant 64 : index
    %119 = vector.load %arg13[%c0_51, %c64_52] : memref<2x256xf32, #tpu.memory_space<vmem>>, vector<2x32xf32>
    tpu.vector_store %arg13[%c0_51, %c64_52], %118 {strides = array<i32>} : memref<2x256xf32, #tpu.memory_space<vmem>>, vector<2x32xf32>,
    %120 = vector.extract_strided_slice %104 {offsets = [0, 3, 0], sizes = [2, 1, 32], strides = [1, 1, 1]} : vector<2x8x32xf32> to vector<2x1x32xf32>
    %121 = vector.shape_cast %120 : vector<2x1x32xf32> to vector<2x32xf32>
    %c0_53 = arith.constant 0 : index
    %c96_54 = arith.constant 96 : index
    %122 = vector.load %arg13[%c0_53, %c96_54] : memref<2x256xf32, #tpu.memory_space<vmem>>, vector<2x32xf32>
    tpu.vector_store %arg13[%c0_53, %c96_54], %121 {strides = array<i32>} : memref<2x256xf32, #tpu.memory_space<vmem>>, vector<2x32xf32>,
    %123 = vector.extract_strided_slice %104 {offsets = [0, 4, 0], sizes = [2, 1, 32], strides = [1, 1, 1]} : vector<2x8x32xf32> to vector<2x1x32xf32>
    %124 = vector.shape_cast %123 : vector<2x1x32xf32> to vector<2x32xf32>
    %c0_55 = arith.constant 0 : index
    %c128_56 = arith.constant 128 : index
    %125 = vector.load %arg13[%c0_55, %c128_56] : memref<2x256xf32, #tpu.memory_space<vmem>>, vector<2x32xf32>
    tpu.vector_store %arg13[%c0_55, %c128_56], %124 {strides = array<i32>} : memref<2x256xf32, #tpu.memory_space<vmem>>, vector<2x32xf32>,
    %126 = vector.extract_strided_slice %104 {offsets = [0, 5, 0], sizes = [2, 1, 32], strides = [1, 1, 1]} : vector<2x8x32xf32> to vector<2x1x32xf32>
    %127 = vector.shape_cast %126 : vector<2x1x32xf32> to vector<2x32xf32>
    %c0_57 = arith.constant 0 : index
    %c160_58 = arith.constant 160 : index
    %128 = vector.load %arg13[%c0_57, %c160_58] : memref<2x256xf32, #tpu.memory_space<vmem>>, vector<2x32xf32>
    tpu.vector_store %arg13[%c0_57, %c160_58], %127 {strides = array<i32>} : memref<2x256xf32, #tpu.memory_space<vmem>>, vector<2x32xf32>,
    %129 = vector.extract_strided_slice %104 {offsets = [0, 6, 0], sizes = [2, 1, 32], strides = [1, 1, 1]} : vector<2x8x32xf32> to vector<2x1x32xf32>
    %130 = vector.shape_cast %129 : vector<2x1x32xf32> to vector<2x32xf32>
    %c0_59 = arith.constant 0 : index
    %c192_60 = arith.constant 192 : index
    %131 = vector.load %arg13[%c0_59, %c192_60] : memref<2x256xf32, #tpu.memory_space<vmem>>, vector<2x32xf32>
    tpu.vector_store %arg13[%c0_59, %c192_60], %130 {strides = array<i32>} : memref<2x256xf32, #tpu.memory_space<vmem>>, vector<2x32xf32>,
    %132 = vector.extract_strided_slice %104 {offsets = [0, 7, 0], sizes = [2, 1, 32], strides = [1, 1, 1]} : vector<2x8x32xf32> to vector<2x1x32xf32>
    %133 = vector.shape_cast %132 : vector<2x1x32xf32> to vector<2x32xf32>
    %c0_61 = arith.constant 0 : index
    %c224_62 = arith.constant 224 : index
    %134 = vector.load %arg13[%c0_61, %c224_62] : memref<2x256xf32, #tpu.memory_space<vmem>>, vector<2x32xf32>
    tpu.vector_store %arg13[%c0_61, %c224_62], %133 {strides = array<i32>} : memref<2x256xf32, #tpu.memory_space<vmem>>, vector<2x32xf32>,
    %c0_63 = arith.constant 0 : index
    %c0_64 = arith.constant 0 : index
    %135 = vector.load %arg13[%c0_63, %c0_64] : memref<2x256xf32, #tpu.memory_space<vmem>>, vector<2x256xf32>
    %136 = arith.truncf %135 : vector<2x256xf32> to vector<2x256xbf16>
    %c0_65 = arith.constant 0 : index
    %c0_66 = arith.constant 0 : index
    %137 = vector.load %arg7[%c0_65, %c0_66] : memref<256x512xbf16, #tpu.memory_space<vmem>>, vector<256x512xbf16>
    %cst_67 = arith.constant dense<0.000000e+00> : vector<2x512xf32>
    %138 = tpu.matmul %136, %137, %cst_67 {dimension_numbers = #tpu.dot_dimension_numbers<[1], [0], [0], [1], [0, 0, 1, 1], [], []>} : vector<2x256xbf16>, vector<256x512xbf16>, vector<2x512xf32> -> vector<2x512xf32>
    %139 = vector.extract_strided_slice %138 {offsets = [0, 0], sizes = [2, 256], strides = [1, 1]} : vector<2x512xf32> to vector<2x256xf32>
    %140 = vector.extract_strided_slice %138 {offsets = [0, 256], sizes = [2, 256], strides = [1, 1]} : vector<2x512xf32> to vector<2x256xf32>
    %141 = vector.shape_cast %61 : vector<2x8x256xf32> to vector<16x256xf32>
    %142 = arith.truncf %141 : vector<16x256xf32> to vector<16x256xbf16>
    %c0_68 = arith.constant 0 : index
    %c0_69 = arith.constant 0 : index
    %143 = vector.load %arg8[%c0_68, %c0_69] : memref<256x256xbf16, #tpu.memory_space<vmem>>, vector<256x256xbf16>
    %cst_70 = arith.constant dense<0.000000e+00> : vector<16x256xf32>
    %144 = tpu.matmul %142, %143, %cst_70 {dimension_numbers = #tpu.dot_dimension_numbers<[1], [0], [0], [1], [0, 0, 1, 1], [], []>} : vector<16x256xbf16>, vector<256x256xbf16>, vector<16x256xf32> -> vector<16x256xf32>
    %145 = arith.addf %109, %144 : vector<16x256xf32>
    %146 = vector.shape_cast %145 : vector<16x256xf32> to vector<2x8x256xf32>
    %147 = vector.shape_cast %139 : vector<2x256xf32> to vector<2x1x256xf32>
    %148 = vector.broadcast %147 : vector<2x1x256xf32> to vector<2x8x256xf32>
    %149 = arith.addf %146, %148 : vector<2x8x256xf32>
    %150 = vector.shape_cast %149 : vector<2x8x256xf32> to vector<16x256xf32>
    %cst_71 = arith.constant dense<0.000000e+00> : vector<16x256xf32>
    %151 = tpu.matmul %150, %2, %cst_71 {dimension_numbers = #tpu.dot_dimension_numbers<[1], [0], [0], [1], [0, 0, 1, 1], [], []>} : vector<16x256xf32>, vector<256x256xf32>, vector<16x256xf32> -> vector<16x256xf32>
    %152 = arith.subf %150, %151 : vector<16x256xf32>
    %153 = arith.mulf %152, %152 : vector<16x256xf32>
    %cst_72 = arith.constant dense<0.000000e+00> : vector<16x256xf32>
    %154 = tpu.matmul %153, %2, %cst_72 {dimension_numbers = #tpu.dot_dimension_numbers<[1], [0], [0], [1], [0, 0, 1, 1], [], []>} : vector<16x256xf32>, vector<256x256xf32>, vector<16x256xf32> -> vector<16x256xf32>
    %cst_73 = arith.constant 9.99999974E-6 : f32
    %155 = vector.broadcast %cst_73 : f32 to vector<16x256xf32>
    %156 = arith.addf %154, %155 : vector<16x256xf32>
    %157 = math.rsqrt %156 : vector<16x256xf32>
    %158 = arith.mulf %152, %157 : vector<16x256xf32>
    %cst_74 = arith.constant 0.000000e+00 : f32
    %159 = vector.broadcast %cst_74 : f32 to vector<16x256xf32>
    %160 = arith.maximumf %158, %159 : vector<16x256xf32>
    %161 = vector.shape_cast %160 : vector<16x256xf32> to vector<2x8x256xf32>
    %162 = arith.addf %61, %161 : vector<2x8x256xf32>
    %163 = vector.shape_cast %162 : vector<2x8x256xf32> to vector<16x256xf32>
    %cst_75 = arith.constant 5.000000e-01 : f32
    %164 = vector.broadcast %cst_75 : f32 to vector<16x256xf32>
    %165 = arith.mulf %164, %163 : vector<16x256xf32>
    %166 = math.tanh %165 : vector<16x256xf32>
    %cst_76 = arith.constant 5.000000e-01 : f32
    %167 = vector.broadcast %cst_76 : f32 to vector<16x256xf32>
    %168 = arith.mulf %167, %166 : vector<16x256xf32>
    %cst_77 = arith.constant 5.000000e-01 : f32
    %169 = vector.broadcast %cst_77 : f32 to vector<16x256xf32>
    %170 = arith.addf %168, %169 : vector<16x256xf32>
    %171 = math.exp %170 : vector<16x256xf32>
    %cst_78 = arith.constant dense<0.000000e+00> : vector<16x32xf32>
    %172 = tpu.matmul %171, %3, %cst_78 {dimension_numbers = #tpu.dot_dimension_numbers<[1], [0], [0], [1], [0, 0, 1, 1], [], []>} : vector<16x256xf32>, vector<256x32xf32>, vector<16x32xf32> -> vector<16x32xf32>
    %173 = vector.shape_cast %171 : vector<16x256xf32> to vector<2x8x256xf32>
    %174 = vector.shape_cast %140 : vector<2x256xf32> to vector<2x1x256xf32>
    %175 = vector.broadcast %174 : vector<2x1x256xf32> to vector<2x8x256xf32>
    %176 = arith.mulf %173, %175 : vector<2x8x256xf32>
    %177 = vector.shape_cast %176 : vector<2x8x256xf32> to vector<16x256xf32>
    %cst_79 = arith.constant dense<0.000000e+00> : vector<16x32xf32>
    %178 = tpu.matmul %177, %3, %cst_79 {dimension_numbers = #tpu.dot_dimension_numbers<[1], [0], [0], [1], [0, 0, 1, 1], [], []>} : vector<16x256xf32>, vector<256x32xf32>, vector<16x32xf32> -> vector<16x32xf32>
    %179 = tpu.reciprocal %172 {approx = true} : vector<16x32xf32> -> vector<16x32xf32>
    %180 = arith.mulf %178, %179 : vector<16x32xf32>
    %cst_80 = arith.constant 1.250000e-01 : f32
    %181 = vector.broadcast %cst_80 : f32 to vector<16x32xf32>
    %182 = arith.mulf %180, %181 : vector<16x32xf32>
    %183 = arith.addf %110, %182 : vector<16x32xf32>
    %184 = vector.shape_cast %183 : vector<16x32xf32> to vector<2x8x32xf32>
    %cst_81 = arith.constant dense<0.000000e+00> : vector<2x8xf32>
    %185 = vector.multi_reduction <add>, %184, %cst_81 [2] : vector<2x8x32xf32> to vector<2x8xf32>
    %186 = vector.shape_cast %185 : vector<2x8xf32> to vector<2x8x1xf32>
    %cst_82 = arith.constant 3.200000e+01 : f32
    %187 = vector.broadcast %cst_82 : f32 to vector<2x8x1xf32>
    %188 = arith.divf %186, %187 : vector<2x8x1xf32>
    %189 = vector.broadcast %188 : vector<2x8x1xf32> to vector<2x8x32xf32>
    %190 = arith.subf %184, %189 : vector<2x8x32xf32>
    %191 = arith.mulf %190, %190 : vector<2x8x32xf32>
    %cst_83 = arith.constant dense<0.000000e+00> : vector<2x8xf32>
    %192 = vector.multi_reduction <add>, %191, %cst_83 [2] : vector<2x8x32xf32> to vector<2x8xf32>
    %193 = vector.shape_cast %192 : vector<2x8xf32> to vector<2x8x1xf32>
    %cst_84 = arith.constant 3.200000e+01 : f32
    %194 = vector.broadcast %cst_84 : f32 to vector<2x8x1xf32>
    %195 = arith.divf %193, %194 : vector<2x8x1xf32>
    %196 = vector.broadcast %188 : vector<2x8x1xf32> to vector<2x8x32xf32>
    %197 = arith.subf %184, %196 : vector<2x8x32xf32>
    %cst_85 = arith.constant 9.99999974E-6 : f32
    %198 = vector.broadcast %cst_85 : f32 to vector<2x8x1xf32>
    %199 = arith.addf %195, %198 : vector<2x8x1xf32>
    %200 = math.rsqrt %199 : vector<2x8x1xf32>
    %201 = vector.broadcast %200 : vector<2x8x1xf32> to vector<2x8x32xf32>
    %202 = arith.mulf %197, %201 : vector<2x8x32xf32>
    %203 = arith.addf %104, %202 : vector<2x8x32xf32>
    %cst_86 = arith.constant 0.000000e+00 : f32
    %204 = vector.broadcast %cst_86 : f32 to vector<2x8x32xf32>
    %205 = arith.maximumf %203, %204 : vector<2x8x32xf32>
    %c0_87 = arith.constant 0 : index
    %c0_88 = arith.constant 0 : index
    %c0_89 = arith.constant 0 : index
    %206 = vector.load %arg11[%c0_87, %c0_88, %c0_89] : memref<2x8x32xf32, #tpu.memory_space<vmem>>, vector<2x8x32xf32>
    tpu.vector_store %arg11[%c0_87, %c0_88, %c0_89], %205 {strides = array<i32>} : memref<2x8x32xf32, #tpu.memory_space<vmem>>, vector<2x8x32xf32>,
    %c0_90 = arith.constant 0 : index
    %c0_91 = arith.constant 0 : index
    %c0_92 = arith.constant 0 : index
    %207 = vector.load %arg12[%c0_90, %c0_91, %c0_92] : memref<2x8x256xf32, #tpu.memory_space<vmem>>, vector<2x8x256xf32>
    tpu.vector_store %arg12[%c0_90, %c0_91, %c0_92], %162 {strides = array<i32>} : memref<2x8x256xf32, #tpu.memory_space<vmem>>, vector<2x8x256xf32>,
    return
  }
  func.func @transform_0(%arg0: i32) -> (i32, i32, i32) {
    %c0_i32 = arith.constant 0 : i32
    %c0_i32_0 = arith.constant 0 : i32
    %c0_i32_1 = arith.constant 0 : i32
    return %arg0, %c0_i32, %c0_i32_0 : i32, i32, i32
  }
  func.func @transform_1(%arg0: i32) -> (i32, i32, i32) {
    %c0_i32 = arith.constant 0 : i32
    %c0_i32_0 = arith.constant 0 : i32
    %c0_i32_1 = arith.constant 0 : i32
    return %arg0, %c0_i32, %c0_i32_0 : i32, i32, i32
  }
  func.func @transform_2(%arg0: i32) -> (i32, i32) {
    %c0_i32 = arith.constant 0 : i32
    %c0_i32_0 = arith.constant 0 : i32
    %c0_i32_1 = arith.constant 0 : i32
    return %c0_i32, %c0_i32_0 : i32, i32
  }
  func.func @transform_3(%arg0: i32) -> (i32, i32) {
    %c0_i32 = arith.constant 0 : i32
    %c0_i32_0 = arith.constant 0 : i32
    %c0_i32_1 = arith.constant 0 : i32
    return %c0_i32, %c0_i32_0 : i32, i32
  }
  func.func @transform_4(%arg0: i32) -> (i32, i32) {
    %c0_i32 = arith.constant 0 : i32
    %c0_i32_0 = arith.constant 0 : i32
    %c0_i32_1 = arith.constant 0 : i32
    return %c0_i32, %c0_i32_0 : i32, i32
  }
  func.func @transform_5(%arg0: i32) -> (i32, i32) {
    %c0_i32 = arith.constant 0 : i32
    %c0_i32_0 = arith.constant 0 : i32
    %c0_i32_1 = arith.constant 0 : i32
    return %c0_i32, %c0_i32_0 : i32, i32
  }
  func.func @transform_6(%arg0: i32) -> (i32, i32) {
    %c0_i32 = arith.constant 0 : i32
    %c0_i32_0 = arith.constant 0 : i32
    %c0_i32_1 = arith.constant 0 : i32
    return %c0_i32, %c0_i32_0 : i32, i32
  }
  func.func @transform_7(%arg0: i32) -> (i32, i32) {
    %c0_i32 = arith.constant 0 : i32
    %c0_i32_0 = arith.constant 0 : i32
    %c0_i32_1 = arith.constant 0 : i32
    return %c0_i32, %c0_i32_0 : i32, i32
  }
  func.func @transform_8(%arg0: i32) -> (i32, i32) {
    %c0_i32 = arith.constant 0 : i32
    %c0_i32_0 = arith.constant 0 : i32
    %c0_i32_1 = arith.constant 0 : i32
    return %c0_i32, %c0_i32_0 : i32, i32
  }
  func.func @transform_9(%arg0: i32) -> (i32, i32) {
    %c0_i32 = arith.constant 0 : i32
    %c0_i32_0 = arith.constant 0 : i32
    %c0_i32_1 = arith.constant 0 : i32
    return %c0_i32, %c0_i32_0 : i32, i32
  }
  func.func @transform_10(%arg0: i32) -> (i32, i32, i32) {
    %c0_i32 = arith.constant 0 : i32
    %c0_i32_0 = arith.constant 0 : i32
    %c0_i32_1 = arith.constant 0 : i32
    return %arg0, %c0_i32, %c0_i32_0 : i32, i32, i32
  }
  func.func @transform_11(%arg0: i32) -> (i32, i32, i32) {
    %c0_i32 = arith.constant 0 : i32
    %c0_i32_0 = arith.constant 0 : i32
    %c0_i32_1 = arith.constant 0 : i32
    return %arg0, %c0_i32, %c0_i32_0 : i32, i32, i32
  }
}

</mosaic_0001>

<bundles_post_ra>
// kernel: tpu_custom_call.1
= control target key start
LH: loop header
LB: loop body
LE: loop exit
PB: predicated region body
PF: predicated region fallthrough
CT: control target
= control target key end

     0   :  { %s6682_s0 = inlined_call_operand.hbm [shape: f32[4,8,32], index: 0, kind: input, shape index: {}]   ;;  %s6683_s1 = inlined_call_operand.vmem [shape: f32[4,8,256], index: 1, kind: input, shape index: {}]   ;;  %s6684_s2 = inlined_call_operand.hbm [shape: bf16[32,288], index: 2, kind: input, shape index: {}]   ;;  %s6685_s3 = inlined_call_operand.hbm [shape: bf16[256,512], index: 3, kind: input, shape index: {}]   ;;  %s6686_s4 = inlined_call_operand.vmem [shape: bf16[256,256], index: 4, kind: input, shape index: {}]   ;;  %s6687_s5 = inlined_call_operand.hbm [shape: bf16[32,288], index: 5, kind: input, shape index: {}]   ;;  %s6688_s6 = inlined_call_operand.hbm [shape: bf16[256,512], index: 6, kind: input, shape index: {}]   ;;  %s6689_s7 = inlined_call_operand.hbm [shape: bf16[256,256], index: 7, kind: input, shape index: {}]   ;;  %s6690_s8 = inlined_call_operand.hbm [shape: f32[256,256], index: 8, kind: input, shape index: {}]   ;;  %s6691_s9 = inlined_call_operand.vmem [shape: f32[256,32], index: 9, kind: input, shape index: {}]   ;;  %s6692_s10 = inlined_call_operand.hbm [shape: f32[4,8,32], index: 10, kind: output, shape index: {0}]   ;;  %s6693_s11 = inlined_call_operand.hbm [shape: f32[4,8,256], index: 11, kind: output, shape index: {1}]  }
   0x1   :  { %6751 = sst [smem:[#allocation45_spill]] %s6682_s0 }
   0x2   :  { %6752 = sst [smem:[#allocation46_spill]] %s6691_s9 }
   0x3   :  { %6753 = sst [smem:[#allocation47_spill]] %s6692_s10 }
   0x4   :  { %6754 = sst [smem:[#allocation48_spill]] %s6693_s11 }
   0x5   :  { %17 = vsyncpa [#allocation4], 0 }
   0x6   :  { %19 = vsyncpa [#allocation4 + $0x1], 0 }
   0x7   :  { %20 = vsyncpa [#allocation7], 0 }
   0x8   :  { %21 = vsyncpa [#allocation10], 0 }
   0x9   :  { %22 = vsyncpa [#allocation13], 0 }
   0xa   :  { %23 = vsyncpa [#allocation5], 0 }
   0xb   :  { %25 = vsyncpa [#allocation5 + $0x1], 0 }
   0xc   :  { %26 = vsyncpa [#allocation17], 0 }
   0xd   :  { %28 = vsyncpa [#allocation17 + $0x1], 0  ;;  %s5490_s17 = smov 0   ;;  %s5492_s18 = smov 0  }
   0xe   :  { %s5494_s19 = smov 0   ;;  %s5496_s20 = smov 0  }
   0xf LB: > { %s5403_s21 = smov [#allocation6]   ;;  %s5511_s23 = sadd.s32 4294967295, %s5401_s20   ;;  %s5401_s20 = sphi %s5496_s20, %s6832_s20   ;;  %s5397_s19 = sphi %s5494_s19, %s6831_s19   ;;  %s5393_s18 = sphi %s5492_s18, %s6830_s18   ;;  %s5389_s17 = sphi %s5490_s17, %s6829_s17  }
  0x10   : > { %s323_s22 = sshll.u32 %s5403_s21, 4  ;;  %p3777_p0 = scmp.ge.s32.totalorder %s5401_s20, 1  ;;  %s5516_s22 = int_to_ptr.vmem [resolvable:$true] %s323_s22 }
  0x11   : > { %p6697_p1 = scmp.eq.s32.totalorder %s5511_s23, 0  ;;  %p311_p2 = scmp.lt.s32.totalorder %s5401_s20, 3 }
  0x12   : > { %s5404_s25 = smov [#allocation9]   ;;  %s5405_s28 = smov [#allocation12]  }
  0x13   : > { %p5518_p3 = pnand %p3777_p0, %p311_p2  ;;  %s352_s26 = sshll.u32 %s5404_s25, 4  ;;  %s5531_s26 = int_to_ptr.vmem [resolvable:$true] %s352_s26 }
  0x14   : > { %s378_s29 = sshll.u32 %s5405_s28, 4  ;;  %s5093_s13 = scalar_lea.hbm %s6684_s2, 768  ;;  %s5533_s29 = int_to_ptr.vmem [resolvable:$true] %s378_s29 }
  0x15   : > { %s6755_s24 = scalar_select %p5518_p3, 1, 0 }
  0x16   : > { %p4621_p5 = pneg %p5518_p3  ;;  %p5094_p7 = scmp.ne.s32.totalorder %s6684_s2, %s5093_s13 }
  0x17   : > { %p5100_p11 = scmp.lt.u32.totalorder %s5093_s13, %s6684_s2 }
  0x18   : > { %p5527_p6 = pnand %p4621_p5, %p6697_p1 }
  0x1a   : > { %p5543_p8 = pneg %p5527_p6 }
  0x1c   : > { %p5096_p9 = pnand %p5543_p8, %p5094_p7 }
  0x1e   : > { %p5097_p10 = pneg %p5096_p9 }
  0x20   : > { %p5102_p12 = pnand %p5100_p11, %p5097_p10 }
  0x22   : > { %5105 = shalt.err (!%p5102_p12)
}
  0x23   : > { %s5106_s28 = scalar_lea.vmem %s5516_s22, 768  ;;  %p5114_p5 = scmp.lt.s32.totalorder %s5516_s22, %s5516_s22 }
  0x24   : > { %p5107_p13 = scmp.ne.s32.totalorder %s5516_s22, %s5106_s28  ;;  %p5115_p4 = scmp.lt.s32.totalorder %s5106_s28, %s5106_s28 }
  0x26   : > { %p5109_p0 = pnand %p5107_p13, %p5543_p8  ;;  %p5116_p7 = por %p5115_p4, %p5114_p5 }
  0x28   : > { %p5110_p2 = pneg %p5109_p0 }
  0x2a   : > { %p5117_p9 = pnand %p5116_p7, %p5110_p2 }
  0x2c   : > { %5120 = shalt.err (!%p5117_p9)
}
  0x2d   : > { %s5406_s30 = smov 192   ;;  %s5407_s12 = smov 12  }
  0x2e   : > { %4624 = dma.hbm_to_vmem [thread:$0]  (!%p5527_p6), %s6684_s2, 768, %s5516_s22, [#allocation7], %s5406_s30, %s5406_s30, %s5407_s12  }
  0x2f   : > { %s5121_s25 = scalar_lea.hbm %s6687_s5, 768 }
  0x30   : > { %p5122_p4 = scmp.ne.s32.totalorder %s6687_s5, %s5121_s25  ;;  %p5128_p12 = scmp.lt.u32.totalorder %s5121_s25, %s6687_s5 }
  0x32   : > { %p5124_p10 = pnand %p5122_p4, %p5543_p8 }
  0x34   : > { %p5125_p11 = pneg %p5124_p10 }
  0x36   : > { %p5130_p13 = pnand %p5128_p12, %p5125_p11 }
  0x38   : > { %5133 = shalt.err (!%p5130_p13)
}
  0x39   : > { %s5134_s22 = scalar_lea.vmem %s5531_s26, 768  ;;  %p5142_p7 = scmp.lt.s32.totalorder %s5531_s26, %s5531_s26 }
  0x3a   : > { %p5135_p0 = scmp.ne.s32.totalorder %s5531_s26, %s5134_s22  ;;  %p5143_p9 = scmp.lt.s32.totalorder %s5134_s22, %s5134_s22 }
  0x3c   : > { %p5137_p2 = pnand %p5135_p0, %p5543_p8  ;;  %p5144_p4 = por %p5143_p9, %p5142_p7 }
  0x3e   : > { %p5138_p5 = pneg %p5137_p2 }
  0x40   : > { %p5145_p10 = pnand %p5144_p4, %p5138_p5 }
  0x42   : > { %5148 = shalt.err (!%p5145_p10)
}
  0x43   : > { %4630 = dma.hbm_to_vmem [thread:$0]  (!%p5527_p6), %s6687_s5, 768, %s5531_s26, [#allocation10], %s5406_s30, %s5406_s30, %s5407_s12  }
  0x44   : > { %s5149_s14 = scalar_lea.hbm %s6689_s7, 4096 }
  0x45   : > { %p5150_p11 = scmp.ne.s32.totalorder %s6689_s7, %s5149_s14  ;;  %p5156_p0 = scmp.lt.u32.totalorder %s5149_s14, %s6689_s7 }
  0x47   : > { %p5152_p12 = pnand %p5150_p11, %p5543_p8 }
  0x49   : > { %p5153_p13 = pneg %p5152_p12 }
  0x4b   : > { %p5158_p2 = pnand %p5156_p0, %p5153_p13 }
  0x4d   : > { %5161 = shalt.err (!%p5158_p2)
}
  0x4e   : > { %s5162_s26 = scalar_lea.vmem %s5533_s29, 4096  ;;  %p5170_p4 = scmp.lt.s32.totalorder %s5533_s29, %s5533_s29 }
  0x4f   : > { %p5163_p5 = scmp.ne.s32.totalorder %s5533_s29, %s5162_s26  ;;  %p5171_p10 = scmp.lt.s32.totalorder %s5162_s26, %s5162_s26 }
  0x51   : > { %p5165_p7 = pnand %p5163_p5, %p5543_p8  ;;  %p5172_p11 = por %p5171_p10, %p5170_p4 }
  0x53   : > { %p5166_p9 = pneg %p5165_p7 }
  0x55   : > { %p5173_p12 = pnand %p5172_p11, %p5166_p9 }
  0x57   : > { %5176 = shalt.err (!%p5173_p12)
}
  0x58   : > { %s6699_s30 = smov 128   ;;  %s6700_s12 = smov 8  }
  0x59   : > { %4636 = dma.hbm_to_vmem [thread:$0]  (!%p5527_p6), %s6689_s7, 4096, %s5533_s29, [#allocation13], %s6699_s30, %s6699_s30, %s6700_s12  }
  0x5a   : > { %s5410_s10 = smov [#allocation8]   ;;  %s5177_s15 = scalar_lea.hbm %s6685_s3, 8192 }
  0x5b   : > { %s336_s11 = sshll.u32 %s5410_s10, 4  ;;  %p5178_p13 = scmp.ne.s32.totalorder %s6685_s3, %s5177_s15  ;;  %s337_s11 = int_to_ptr.vmem [resolvable:$true] %s336_s11 }
  0x5c   : > { %p5184_p5 = scmp.lt.u32.totalorder %s5177_s15, %s6685_s3 }
  0x5d   : > { %p5180_p0 = pnand %p5178_p13, %p5543_p8 }
  0x5f   : > { %p5181_p2 = pneg %p5180_p0 }
  0x61   : > { %p5186_p7 = pnand %p5184_p5, %p5181_p2 }
  0x63   : > { %5189 = shalt.err (!%p5186_p7)
}
  0x64   : > { %s5190_s29 = scalar_lea.vmem %s337_s11, 8192  ;;  %p5198_p11 = scmp.lt.s32.totalorder %s337_s11, %s337_s11 }
  0x65   : > { %p5191_p9 = scmp.ne.s32.totalorder %s337_s11, %s5190_s29  ;;  %p5199_p12 = scmp.lt.s32.totalorder %s5190_s29, %s5190_s29 }
  0x67   : > { %p5193_p4 = pnand %p5191_p9, %p5543_p8  ;;  %p5200_p1 = por %p5199_p12, %p5198_p11 }
  0x69   : > { %p5194_p10 = pneg %p5193_p4 }
  0x6b   : > { %p5201_p3 = pnand %p5200_p1, %p5194_p10 }
  0x6d   : > { %5204 = shalt.err (!%p5201_p3)
}
  0x6e   : > { %s5411_s22 = smov 256   ;;  %s5412_s9 = smov 16  }
  0x6f   : > { %4627 = dma.hbm_to_vmem [thread:$0]  (!%p5527_p6), %s6685_s3, 8192, %s337_s11, [#allocation7], %s5411_s22, %s5411_s22, %s5412_s9  }
  0x70   : > { %s5413_s14 = smov [#allocation11]   ;;  %s5414_s21 = smov [#allocation14]  }
  0x71   : > { %s365_s15 = sshll.u32 %s5413_s14, 4  ;;  %s391_s25 = sshll.u32 %s5414_s21, 4  ;;  %s366_s15 = int_to_ptr.vmem [resolvable:$true] %s365_s15  ;;  %s5634_s25 = int_to_ptr.vmem [resolvable:$true] %s391_s25 }
  0x72   : > { %s5205_s29 = scalar_lea.hbm %s6688_s6, 8192 }
  0x73   : > { %p5206_p1 = scmp.ne.s32.totalorder %s6688_s6, %s5205_s29  ;;  %p5212_p0 = scmp.lt.u32.totalorder %s5205_s29, %s6688_s6 }
  0x75   : > { %p5208_p3 = pnand %p5206_p1, %p5543_p8 }
  0x77   : > { %p5209_p13 = pneg %p5208_p3 }
  0x79   : > { %p5214_p2 = pnand %p5212_p0, %p5209_p13 }
  0x7b   : > { %5217 = shalt.err (!%p5214_p2)
}
  0x7c   : > { %s5218_s13 = scalar_lea.vmem %s366_s15, 8192  ;;  %p5226_p4 = scmp.lt.s32.totalorder %s366_s15, %s366_s15 }
  0x7d   : > { %p5219_p5 = scmp.ne.s32.totalorder %s366_s15, %s5218_s13  ;;  %p5227_p10 = scmp.lt.s32.totalorder %s5218_s13, %s5218_s13 }
  0x7f   : > { %p5221_p7 = pnand %p5219_p5, %p5543_p8  ;;  %p5228_p11 = por %p5227_p10, %p5226_p4 }
  0x81   : > { %p5222_p9 = pneg %p5221_p7 }
  0x83   : > { %p5229_p12 = pnand %p5228_p11, %p5222_p9 }
  0x85   : > { %5232 = shalt.err (!%p5229_p12)
}
  0x86   : > { %4633 = dma.hbm_to_vmem [thread:$0]  (!%p5527_p6), %s6688_s6, 8192, %s366_s15, [#allocation10], %s5411_s22, %s5411_s22, %s5412_s9  }
  0x87   : > { %s5233_s28 = scalar_lea.hbm %s6690_s8, 8192 }
  0x88   : > { %p5234_p1 = scmp.ne.s32.totalorder %s6690_s8, %s5233_s28  ;;  %p5240_p0 = scmp.lt.u32.totalorder %s5233_s28, %s6690_s8 }
  0x8a   : > { %p5236_p3 = pnand %p5234_p1, %p5543_p8 }
  0x8c   : > { %p5237_p13 = pneg %p5236_p3 }
  0x8e   : > { %p5242_p2 = pnand %p5240_p0, %p5237_p13 }
  0x90   : > { %5245 = shalt.err (!%p5242_p2)
}
  0x91   : > { %s5246_s15 = scalar_lea.vmem %s5634_s25, 8192  ;;  %p5254_p4 = scmp.lt.s32.totalorder %s5634_s25, %s5634_s25 }
  0x92   : > { %p5247_p5 = scmp.ne.s32.totalorder %s5634_s25, %s5246_s15  ;;  %p5255_p10 = scmp.lt.s32.totalorder %s5246_s15, %s5246_s15 }
  0x94   : > { %p5249_p7 = pnand %p5247_p5, %p5543_p8  ;;  %p5256_p11 = por %p5255_p10, %p5254_p4 }
  0x96   : > { %p5250_p9 = pneg %p5249_p7 }
  0x98   : > { %p5257_p12 = pnand %p5256_p11, %p5250_p9 }
  0x9a   : > { %5260 = shalt.err (!%p5257_p12)
}
  0x9b   : > { %4639 = dma.hbm_to_vmem [thread:$0]  (!%p5527_p6), %s6690_s8, 8192, %s5634_s25, [#allocation13], %s5411_s22, %s5411_s22, %s5412_s9  }
  0x9c   : > { %s3776_s27 = sadd.s32 4294967294, %s5401_s20   ;;  %s5685_s16 = sadd.s32 1, %s5401_s20  }
  0x9d   : > { %s38_s12 = ssub.s32 %s5401_s20, %s5685_s16  ;;  %s41_s14 = sadd.s32 1, %s5397_s19 }
  0x9e   : > { %p39_p8 = scmp.eq.s32.totalorder %s38_s12, 0  ;;  %p48_p1 = scmp.ne.s32.totalorder %s5397_s19, %s5393_s18 }
  0x9f   : > { %p49_p3 = scmp.eq.s32.totalorder %s5401_s20, 0  ;;  %p54_p13 = scmp.ne.s32.totalorder %s5393_s18, %s5389_s17 }
  0xa0   : > { %s5696_s21 = scalar_select %p39_p8, %s5397_s19, %s41_s14  }
  0xa1   : > { %p5698_p0 = por %p49_p3, %p48_p1  ;;  %p6759_p2 = scmp.eq.s32.totalorder %s5511_s23, 0 }
  0xa2   : > { %p272_p5 = scmp.eq.s32.totalorder %s5511_s23, 1  ;;  %p278_p7 = scmp.eq.s32.totalorder %s3776_s27, 1 }
  0xa3   : > { %p5704_p6 = por %p6759_p2, %p54_p13  ;;  %p4657_p9 = scmp.lt.s32.totalorder %s5401_s20, 2 }
  0xa4   : > { %s408_s9 = sand.u32 1, %s5397_s19   ;;  %p5711_p4 = por %p272_p5, %p48_p1 }
  0xa5   : > { %p5715_p10 = por %p278_p7, %p54_p13  ;;  %s3785_s29 = sshll.u32 %s408_s9, 4 }
  0xa6   : > { %s6761_s25 = scalar_select %p5711_p4, 1, 0 }
  0xa7   : > { %s6762_s26 = scalar_select %p5715_p10, 1, 0 }
  0xa8   : > { %s4020_s10 = sshll.u32 %s5401_s20, 8  ;;  %s6763_s0 = sld [smem:[#allocation45_spill]] }
  0xa9   : > { %s412_s30 = scalar_lea.vmem [#allocation3], %s3785_s29  ;;  %p5729_p11 = pnand %p4657_p9, %p5698_p0 }
  0xaa   : > { %s419_s27 = sshll.u32 %s412_s30, 4  ;;  %s5733_s14 = scalar_lea.sflag [#allocation4], %s408_s9  ;;  %s5725_s27 = int_to_ptr.vmem [resolvable:$true] %s419_s27 }
  0xab   : > { %p5263_p8 = pneg %p5729_p11 }
  0xae   : > { %s5723_s13 = scalar_lea.hbm %s6763_s0, %s4020_s10  ;;  %s5266_s28 = scalar_lea.hbm %s6763_s0, 512 }
  0xaf   : > { %s5261_s11 = scalar_lea.hbm %s5723_s13, 256  ;;  %p5267_p13 = scmp.lt.u32.totalorder %s5723_s13, %s6763_s0 }
  0xb0   : > { %p5262_p12 = scmp.ne.s32.totalorder %s5723_s13, %s5261_s11  ;;  %p5268_p0 = scmp.lt.u32.totalorder %s5266_s28, %s5261_s11 }
  0xb1   : > { %p5270_p5 = scmp.lt.u32.totalorder %s5261_s11, %s5723_s13 }
  0xb2   : > { %p5264_p1 = pnand %p5263_p8, %p5262_p12  ;;  %p5269_p2 = por %p5268_p0, %p5267_p13 }
  0xb4   : > { %p5265_p3 = pneg %p5264_p1  ;;  %p5271_p7 = por %p5270_p5, %p5269_p2 }
  0xb6   : > { %p5272_p9 = pnand %p5271_p7, %p5265_p3 }
  0xb8   : > { %5275 = shalt.err (!%p5272_p9)
}
  0xb9   : > { %s5276_s9 = scalar_lea.vmem %s5725_s27, 256  ;;  %s5415_s29 = smov [#allocation3]  }
  0xba   : > { %p5277_p12 = scmp.ne.s32.totalorder %s5725_s27, %s5276_s9  ;;  %s5281_s10 = sshll.u32 %s5415_s29, 4  ;;  %s5282_s10 = int_to_ptr.vmem [resolvable:$false] %s5281_s10 }
  0xbb   : > { %s5283_s15 = scalar_lea.vmem %s5282_s10, 512  ;;  %p5284_p4 = scmp.lt.s32.totalorder %s5725_s27, %s5282_s10 }
  0xbc   : > { %p5279_p1 = pnand %p5277_p12, %p5263_p8  ;;  %p5285_p13 = scmp.lt.s32.totalorder %s5283_s15, %s5276_s9 }
  0xbe   : > { %p5280_p10 = pneg %p5279_p1  ;;  %p5286_p0 = por %p5285_p13, %p5284_p4 }
  0xc0   : > { %p5287_p2 = pnand %p5286_p0, %p5280_p10 }
  0xc2   : > { %5290 = shalt.err (!%p5287_p2)
}
  0xc3   : > { %s6765_s11 = smov 8   ;;  %s6766_s28 = smov 128  }
  0xc4   : > { %4643 = dma.hbm_to_vmem [thread:$0]  (!%p5729_p11), %s5723_s13, 256, %s5725_s27, %s5733_s14, %s6766_s28, %s6766_s28, %s6765_s11  }
  0xc5   : > { %p6767_p8 = scmp.ne.s32.totalorder %s6755_s24, 0 }
  0xc7   : > { %441 = sbr.rel (%p6767_p8) target bundleno = 3202 (0xc82), region = 60 }
  0xce   : > { %s5767_s30 = sand.u32 1, %s5393_s18  }
  0xcf   : > { %s6702_s9 = sshll.u32 %s5767_s30, 4  ;;  %s444_s29 = scalar_lea.sflag [#allocation4], %s5767_s30 }
  0xd0   : > { %s5773_s12 = scalar_lea.vmem [#allocation3], %s6702_s9 }
  0xd1   : > { %5364 = dma.done.wait (%p5704_p6), %s444_s29, 256  }
  0xd2   : > { %5366 = vsyncadd (%p5704_p6), %s444_s29, 4294967040  ;;  %p6768_p4 = scmp.eq.s32.totalorder %s5511_s23, 0 }
  0xd4   : > { %5368 = dma.done.wait (%p6768_p4), [#allocation7], 8960   ;;  %p6769_p10 = pmov %p6768_p4 }
  0xd5   : > { %p6770_p11 = pmov %p6768_p4 }
  0xd6   : > { %5370 = vsyncadd (%p6769_p10), [#allocation7], 4294958336 }
  0xd7   : > { %5372 = dma.done.wait (%p6770_p11), [#allocation10], 8960   ;;  %p6771_p3 = pmov %p6768_p4 }
  0xd9   : > { %5374 = vsyncadd (%p6771_p3), [#allocation10], 4294958336  ;;  %p6772_p5 = pmov %p6771_p3 }
  0xda   : > { %p6773_p7 = pmov %p6771_p3 }
  0xdb   : > { %5376 = dma.done.wait (%p6772_p5), [#allocation13], 12288  }
  0xdc   : > { %5378 = vsyncadd (%p6773_p7), [#allocation13], 4294955008  ;;  %v768_v0 = vlaneseq  ;;  %v5416_v1 = vmov 1983009808   ;;  %v6709_v5 = vmov 0.0   ;;  %v5418_v6 = vmov 0  }
  0xdd   : > { %v766_v2 = vunpack.c.l.s4 %v5416_v1  ;;  %4183 = vmatprep.subr.bf16.mxu1 %v6709_v5  ;;  %711 = vmatprep.mubr.bf16.mxu0 %v5418_v6  ;;  %vm5419_vm0 = vmmov 0   ;;  %vm784_vm1 = vcmask 1041409   ;;  %vm786_vm2 = vcmask 1043459   ;;  %v532_v8 = vld [vmem:[%s5773_s12] sm:$0xff]  ;;  %v533_v9 = vld [vmem:[%s5773_s12 + $0x8] sm:$0xff]  ;;  %s6707_s24 = smov 32  }
  0xde   : > { %v5791_v3 = vshrl.u32 %v768_v0, 7  ;;  %4187 = vmatprep.mubr.msk.bf16.mxu1 %vm5419_vm0, %v6709_v5  ;;  %vm788_vm3 = vcmask 1045509   ;;  %vm790_vm4 = vcmask 1047559   ;;  %vm675_vm5 = vcmask 261120   ;;  %v4723_v14 = vld [vmem:[#allocation6 + $0x4] ss:$12 sps:$4 sm:$0xff]  }
  0xdf   : > { %v767_v4 = vunpack.c.0.s8 %v766_v2  ;;  %v833_v12 = vcombine.high %v532_v8, %v532_v8  ;;  %v841_v13 = vcombine.high %v533_v9, %v533_v9  ;;  %v4725_v15 = vld [vmem:[#allocation6] ss:$12 sps:$4 sm:$0xff]   ;;  %v4726_v16 = vld [vmem:[#allocation6 + $0x8] ss:$12 sps:$4 sm:$0xff]   ;;  %679 = vmatprep.subr.bf16.mxu0 %v4723_v14  ;;  %v4729_v23 = vld [vmem:[#allocation6 + $0x18] ss:$12 sps:$4 sm:$0xff]   ;;  %v634_v33 = vpack.c.bf16 %v533_v9, %v532_v8 }
  0xe0   : > { %v4727_v21 = vld [vmem:[#allocation6 + $0x1c] ss:$12 sps:$4 sm:$0xff]   ;;  %680 = vmatpush1.bf16.msra.mxu0 %v4725_v15  ;;  %4184 = vmatpush3.bf16.msra.mxu1 %v4726_v16  ;;  %v4730_v28 = vld [vmem:[#allocation6 + $0x20] ss:$12 sps:$4 sm:$0xff]   ;;  %v4733_v32 = vld [vmem:[#allocation8 + $0x4] ss:$16 sps:$4 sm:$0xff]  }
  0xe1   : > { %v5798_v7 = vsub.s32 %v767_v4, %v5791_v3  ;;  %681 = vmatprep.subr.bf16.mxu0 %v4727_v21  ;;  %4185 = vmatprep.subr.bf16.mxu1 %v6709_v5  ;;  %v4731_v38 = vld [vmem:[#allocation8] ss:$16 sps:$4 sm:$0xff]   ;;  %v4736_v43 = vld [vmem:[#allocation8 + $0xc] ss:$16 sps:$4 sm:$0xff]   ;;  %v4734_v52 = vld [vmem:[#allocation8 + $0x8] ss:$16 sps:$4 sm:$0xff]  }
  0xe2   : > { %v4739_v53 = vld [vmem:[#allocation8 + $0x24] ss:$16 sps:$4 sm:$0xff]   ;;  %s6705_s22 = smov 64   ;;  %v4742_v56 = vld [vmem:[#allocation8 + $0x2c] ss:$16 sps:$4 sm:$0xff]   ;;  %vm793_vm6 = vcmask 254976  }
  0xe3   : > { %v5803_v10 = vrot.slane %v532_v8, %v5798_v7  ;;  %v778_v11 = vrot.slane %v533_v9, %v5798_v7  ;;  %v5812_v20 = vrot.slane %v833_v12, %v5798_v7  ;;  %v848_v22 = vrot.slane %v841_v13, %v5798_v7  ;;  %v4737_v60 = vld [vmem:[#allocation8 + $0x20] ss:$16 sps:$4 sm:$0xff]   ;;  %v4745_v0 = vld [vmem:[#allocation8 + $0x44] ss:$16 sps:$4 sm:$0xff]   ;;  %v4740_v4 = vld [vmem:[#allocation8 + $0x28] ss:$16 sps:$4 sm:$0xff]  }
  0xe4   : > { %682 = vmatpush1.bf16.msra.mxu0 %v4729_v23  ;;  %4186 = vmatpush3.bf16.msra.mxu1 %v4730_v28  ;;  %v4743_v14 = vld [vmem:[#allocation8 + $0x40] ss:$16 sps:$4 sm:$0xff]   ;;  %s6703_s13 = smov 96   ;;  %v4752_v23 = vld [vmem:[#allocation8 + $0x68] ss:$16 sps:$4 sm:$0xff]   ;;  %vm805_vm7 = vcmask 517376  }
  0xe5   : > { %v795_v17 = vrot.slane %v5803_v10, 1  ;;  %v807_v18 = vcombine.high %v5803_v10, %v5803_v10  ;;  %v5809_v19 = vcombine.high %v778_v11, %v778_v11  ;;  %v858_v26 = vrot.slane %v5812_v20, 1  ;;  %1291 = vmatprep.subr.bf16.mxu0 %v4733_v32  ;;  %1332 = vmatprep.subr.bf16.mxu1 %v4736_v43  ;;  %v4749_v21 = vld [vmem:[#allocation8 + $0x60] ss:$16 sps:$4 sm:$0xff]   ;;  %v4766_v28 = vld [vmem:[#allocation8 + $0xac] ss:$16 sps:$4 sm:$0xff]  }
  0xe6   : > { %v869_v27 = vcombine.high %v5812_v20, %v5812_v20  ;;  %v870_v30 = vcombine.high %v848_v22, %v848_v22  ;;  %v783_v57 = vrot.slane %v778_v11, 7  ;;  %v851_v61 = vrot.slane %v848_v22, 7  ;;  %v4772_v32 = vld [vmem:[#allocation8 + $0xcc] ss:$16 sps:$4 sm:$0xff]   ;;  %v4782_v43 = vld [vmem:[#allocation8 + $0x108] ss:$16 sps:$4 sm:$0xff]  }
  0xe7   : > { %v798_v24 = vsel %vm784_vm1, %v778_v11, %v795_v17  ;;  %v811_v25 = vrot.slane %v5809_v19, 7  ;;  %v821_v31 = vrot.slane %v807_v18, 1  ;;  %v861_v36 = vsel %vm784_vm1, %v848_v22, %v858_v26  ;;  %3807 = vmatmul.mubr.msk.bf16.vlgmr.msra.gmra.mrb[0].mxu0 %vm675_vm5, %v634_v33  ;;  %4188 = vmatmul.mubr.msk.bf16.vlgmr.msra.gmra.mrb[0].mxu1 %vm675_vm5, %v634_v33  ;;  %v4751_v17 = vld [vmem:[#allocation8 + $0x64] ss:$16 sps:$4 sm:$0xff]   ;;  %v4767_v33 = vld [vmem:[#allocation8 + $0xc0] ss:$16 sps:$4 sm:$0xff]  }
  0xe8   : > { %v799_v29 = vsel %vm786_vm2, %v778_v11, %v798_v24  ;;  %v882_v37 = vrot.slane %v869_v27, 1  ;;  %v862_v41 = vsel %vm786_vm2, %v848_v22, %v861_v36  ;;  %v873_v42 = vrot.slane %v870_v30, 7  ;;  %1292 = vmatpush1.bf16.msra.mxu0 %v4731_v38  ;;  %1333 = vmatpush1.bf16.msra.mxu1 %v4734_v52  ;;  %v4760_v24 = vld [vmem:[#allocation8 + $0x8c] ss:$16 sps:$4 sm:$0xff]   ;;  %v4763_v26 = vld [vmem:[#allocation8 + $0xa4] ss:$16 sps:$4 sm:$0xff]  }
  0xe9   : > { %v800_v34 = vsel %vm788_vm3, %v778_v11, %v799_v29  ;;  %v812_v35 = vsel %vm784_vm1, %v811_v25, %v807_v18  ;;  %v863_v45 = vsel %vm788_vm3, %v848_v22, %v862_v41  ;;  %v824_v47 = vsel %vm784_vm1, %v5809_v19, %v821_v31  ;;  %1293 = vmatprep.subr.bf16.mxu0 %v4739_v53  ;;  %v4761_v29 = vld [vmem:[#allocation8 + $0xa0] ss:$16 sps:$4 sm:$0xff]   ;;  %v4764_v31 = vld [vmem:[#allocation8 + $0xa8] ss:$16 sps:$4 sm:$0xff]   ;;  %v4778_v36 = vld [vmem:[#allocation8 + $0xec] ss:$16 sps:$4 sm:$0xff]  }
  0xea   : > { %v801_v39 = vsel %vm790_vm4, %v778_v11, %v800_v34  ;;  %v813_v40 = vsel %vm786_vm2, %v811_v25, %v812_v35  ;;  %v885_v46 = vsel %vm784_vm1, %v870_v30, %v882_v37  ;;  %v864_v49 = vsel %vm790_vm4, %v848_v22, %v863_v45  ;;  %1334 = vmatprep.subr.bf16.mxu1 %v4742_v56  ;;  %v4748_v11 = vld [vmem:[#allocation8 + $0x4c] ss:$16 sps:$4 sm:$0xff]   ;;  %v4757_v22 = vld [vmem:[#allocation8 + $0x84] ss:$16 sps:$4 sm:$0xff]   ;;  %v4770_v35 = vld [vmem:[#allocation8 + $0xc8] ss:$16 sps:$4 sm:$0xff]  }
  0xeb   : > { %802 = vrot.lane.b32.xlu0 %v801_v39, %s6707_s24  ;;  %v814_v44 = vsel %vm788_vm3, %v811_v25, %v813_v40  ;;  %v874_v50 = vsel %vm784_vm1, %v873_v42, %v869_v27  ;;  %v886_v51 = vsel %vm786_vm2, %v870_v30, %v885_v46  ;;  %v825_v55 = vsel %vm786_vm2, %v5809_v19, %v824_v47  ;;  %v4758_v27 = vld [vmem:[#allocation8 + $0x88] ss:$16 sps:$4 sm:$0xff]   ;;  %v4775_v34 = vld [vmem:[#allocation8 + $0xe4] ss:$16 sps:$4 sm:$0xff]   ;;  %v4773_v37 = vld [vmem:[#allocation8 + $0xe0] ss:$16 sps:$4 sm:$0xff]  }
  0xec   : > { %v815_v48 = vsel %vm790_vm4, %v811_v25, %v814_v44  ;;  %v875_v54 = vsel %vm786_vm2, %v873_v42, %v874_v50  ;;  %v826_v59 = vsel %vm788_vm3, %v5809_v19, %v825_v55  ;;  %v887_v63 = vsel %vm788_vm3, %v870_v30, %v886_v51  ;;  %1294 = vmatpush1.bf16.msra.mxu0 %v4737_v60  ;;  %v4755_v25 = vld [vmem:[#allocation8 + $0x80] ss:$16 sps:$4 sm:$0xff]   ;;  %v4781_v38 = vld [vmem:[#allocation8 + $0x104] ss:$16 sps:$4 sm:$0xff]   ;;  %v4776_v39 = vld [vmem:[#allocation8 + $0xe8] ss:$16 sps:$4 sm:$0xff]  }
  0xed   : > { %816 = vrot.lane.b32.xlu1 %v815_v48, %s6705_s22  ;;  %v876_v58 = vsel %vm788_vm3, %v873_v42, %v875_v54  ;;  %v785_v1 = vsel %vm784_vm1, %v783_v57, %v5803_v10  ;;  %v827_v2 = vsel %vm790_vm4, %v5809_v19, %v826_v59  ;;  %v852_v9 = vsel %vm784_vm1, %v851_v61, %v5812_v20  ;;  %v4746_v19 = vld [vmem:[#allocation8 + $0x48] ss:$16 sps:$4 sm:$0xff]   ;;  %v4754_v20 = vld [vmem:[#allocation8 + $0x6c] ss:$16 sps:$4 sm:$0xff]   ;;  %v4779_v41 = vld [vmem:[#allocation8 + $0x100] ss:$16 sps:$4 sm:$0xff]  }
  0xee   : > { %v877_v62 = vsel %vm790_vm4, %v873_v42, %v876_v58  ;;  %v787_v8 = vsel %vm786_vm2, %v783_v57, %v785_v1  ;;  %v853_v10 = vsel %vm786_vm2, %v851_v61, %v852_v9  ;;  %v888_v13 = vsel %vm790_vm4, %v870_v30, %v887_v63  ;;  %1295 = vmatprep.subr.bf16.mxu0 %v4745_v0  ;;  %v4769_v30 = vld [vmem:[#allocation8 + $0xc4] ss:$16 sps:$4 sm:$0xff]   ;;  %v4784_v40 = vld [vmem:[#allocation8 + $0x10c] ss:$16 sps:$4 sm:$0xff]   ;;  %v4785_v45 = vld [vmem:[#allocation8 + $0x120] ss:$16 sps:$4 sm:$0xff]  }
  0xef   : > { %865 = vrot.lane.b32.xlu0 %v864_v49, %s6707_s24  ;;  %v789_v12 = vsel %vm788_vm3, %v783_v57, %v787_v8  ;;  %v854_v16 = vsel %vm788_vm3, %v851_v61, %v853_v10  ;;  %1335 = vmatpush1.bf16.msra.mxu1 %v4740_v4  ;;  %v4787_v42 = vld [vmem:[#allocation8 + $0x124] ss:$16 sps:$4 sm:$0xff]   ;;  %v4790_v44 = vld [vmem:[#allocation8 + $0x12c] ss:$16 sps:$4 sm:$0xff]   ;;  %v4788_v47 = vld [vmem:[#allocation8 + $0x128] ss:$16 sps:$4 sm:$0xff]  }
  0xf0   : > { %v791_v15 = vsel %vm790_vm4, %v783_v57, %v789_v12  ;;  %v855_v18 = vsel %vm790_vm4, %v851_v61, %v854_v16  ;;  %1336 = vmatprep.subr.bf16.mxu1 %v4748_v11  ;;  %1296 = vmatpush1.bf16.msra.mxu0 %v4743_v14  ;;  %v4793_v46 = vld [vmem:[#allocation8 + $0x144] ss:$16 sps:$4 sm:$0xff]   ;;  %v4796_v48 = vld [vmem:[#allocation8 + $0x14c] ss:$16 sps:$4 sm:$0xff]   ;;  %v4791_v49 = vld [vmem:[#allocation8 + $0x140] ss:$16 sps:$4 sm:$0xff]  }
  0xf1   : > { %878 = vrot.lane.b32.xlu1 %v877_v62, %s6705_s22  ;;  %794 = vst.msk [vmem:[#allocation2] sm:$0x3] %vm793_vm6, %v791_v15  ;;  %857 = vst.msk [vmem:[#allocation2 + $0x2] sm:$0x3] %vm793_vm6, %v855_v18  ;;  %1297 = vmatprep.subr.bf16.mxu0 %v4751_v17  ;;  %v4799_v50 = vld [vmem:[#allocation8 + $0x164] ss:$16 sps:$4 sm:$0xff]  }
  0xf2   : > { %v4794_v51 = vld [vmem:[#allocation8 + $0x148] ss:$16 sps:$4 sm:$0xff]   ;;  %v4802_v52 = vld [vmem:[#allocation8 + $0x16c] ss:$16 sps:$4 sm:$0xff]   ;;  %v4797_v53 = vld [vmem:[#allocation8 + $0x160] ss:$16 sps:$4 sm:$0xff]  }
  0xf3   : > { %828 = vrot.lane.b32.xlu0 %v827_v2, %s6703_s13  ;;  %1337 = vmatpush1.bf16.msra.mxu1 %v4746_v19  ;;  %v4805_v54 = vld [vmem:[#allocation8 + $0x184] ss:$16 sps:$4 sm:$0xff]   ;;  %v4800_v55 = vld [vmem:[#allocation8 + $0x168] ss:$16 sps:$4 sm:$0xff]   ;;  %v4808_v56 = vld [vmem:[#allocation8 + $0x18c] ss:$16 sps:$4 sm:$0xff]  }
  0xf4   : > { %1338 = vmatprep.subr.bf16.mxu1 %v4754_v20  ;;  %1298 = vmatpush1.bf16.msra.mxu0 %v4749_v21  ;;  %v4803_v57 = vld [vmem:[#allocation8 + $0x180] ss:$16 sps:$4 sm:$0xff]   ;;  %v4811_v58 = vld [vmem:[#allocation8 + $0x1a4] ss:$16 sps:$4 sm:$0xff]   ;;  %v4806_v59 = vld [vmem:[#allocation8 + $0x188] ss:$16 sps:$4 sm:$0xff]  }
  0xf5   : > { %889 = vrot.lane.b32.xlu1 %v888_v13, %s6703_s13  ;;  %1299 = vmatprep.subr.bf16.mxu0 %v4757_v22  ;;  %v4814_v60 = vld [vmem:[#allocation8 + $0x1ac] ss:$16 sps:$4 sm:$0xff]   ;;  %v4809_v61 = vld [vmem:[#allocation8 + $0x1a0] ss:$16 sps:$4 sm:$0xff]   ;;  %v4817_v62 = vld [vmem:[#allocation8 + $0x1c4] ss:$16 sps:$4 sm:$0xff]  }
  0xf6   : > { %v4812_v63 = vld [vmem:[#allocation8 + $0x1a8] ss:$16 sps:$4 sm:$0xff]   ;;  %v4815_v0 = vld [vmem:[#allocation8 + $0x1c0] ss:$16 sps:$4 sm:$0xff]   ;;  %v4820_v1 = vld [vmem:[#allocation8 + $0x1cc] ss:$16 sps:$4 sm:$0xff]  }
  0xf7   : > { %1339 = vmatpush1.bf16.msra.mxu1 %v4752_v23  ;;  %v4818_v2 = vld [vmem:[#allocation8 + $0x1c8] ss:$16 sps:$4 sm:$0xff]   ;;  %v4823_v4 = vld [vmem:[#allocation8 + $0x1e4] ss:$16 sps:$4 sm:$0xff]   ;;  %v4826_v8 = vld [vmem:[#allocation8 + $0x1ec] ss:$16 sps:$4 sm:$0xff]  }
  0xf8   : > { %1340 = vmatprep.subr.bf16.mxu1 %v4760_v24  ;;  %1300 = vmatpush1.bf16.msra.mxu0 %v4755_v25  ;;  %v4821_v9 = vld [vmem:[#allocation8 + $0x1e0] ss:$16 sps:$4 sm:$0xff]   ;;  %v4824_v11 = vld [vmem:[#allocation8 + $0x1e8] ss:$16 sps:$4 sm:$0xff]   ;;  %vm819_vm8 = vcmask 779776   ;;  %s3798_s10 = sshll.u32 %s5511_s23, 1 }
  0xf9   : > { %1301 = vmatprep.subr.bf16.mxu0 %v4763_v26  ;;  %v4829_v12 = vld [vmem:[%s6686_s4 + $0x4] ss:$8 sps:$4 sm:$0xff]   ;;  %p523_p6 = scmp.lt.s32.totalorder %s3798_s10, 3  ;;  %vm831_vm9 = vcmask 1042176   ;;  %v4827_v23 = vld [vmem:[%s6686_s4] ss:$8 sps:$4 sm:$0xff]  }
  0xfa   : > { %v4832_v26 = vld [vmem:[%s6686_s4 + $0x14] ss:$8 sps:$4 sm:$0xff]   ;;  %s6788_s11 = sld [smem:[#allocation46_spill]]  ;;  %s6799_s27 = smov 64  }
  0xfb   : > { %1341 = vmatpush1.bf16.msra.mxu1 %v4758_v27  ;;  %s6834_s10 = smov (!%p523_p6, %s3798_s10), 3  ;;  %v4830_v27 = vld [vmem:[%s6686_s4 + $0x10] ss:$8 sps:$4 sm:$0xff]   ;;  %s6800_s14 = smov 96  }
  0xfc   : > { %1342 = vmatprep.subr.bf16.mxu1 %v4766_v28  ;;  %1302 = vmatpush1.bf16.msra.mxu0 %v4761_v29  ;;  %s4021_s15 = sshll.u32 %s6834_s10, 4  ;;  %v4835_v28 = vld [vmem:[%s6686_s4 + $0x24] ss:$8 sps:$4 sm:$0xff]   ;;  %v4833_v29 = vld [vmem:[%s6686_s4 + $0x20] ss:$8 sps:$4 sm:$0xff]   ;;  %s3797_s9 = sshll.u32 %s5767_s30, 5 }
  0xfd   : > { %1303 = vmatprep.subr.bf16.mxu0 %v4769_v30  ;;  %s5881_s29 = scalar_lea.vmem %s6683_s1, %s4021_s15  ;;  %v4838_v30 = vld [vmem:[%s6686_s4 + $0x34] ss:$8 sps:$4 sm:$0xff]   ;;  %s6554_s13 = scalar_lea.vmem [#allocation16], %s3797_s9 }
  0xfe   : > { %v5884_v19 = vld [vmem:[%s5881_s29 + $0x8] sm:$0xff]  ;;  %v5887_v20 = vld [vmem:[%s5881_s29 + $0x18] sm:$0xff]  ;;  %s4024_s10 = sshll.u32 %s5511_s23, 9  ;;  %s3602_s15 = sshll.u32 %s6554_s13, 4  ;;  %s6600_s15 = int_to_ptr.vmem [resolvable:$true] %s3602_s15 }
  0xff   : > { %1343 = vmatpush1.bf16.msra.mxu1 %v4764_v31  ;;  %v1374_v24 = vpack.c.bf16 %v5887_v20, %v5884_v19  ;;  %v4836_v31 = vld [vmem:[%s6686_s4 + $0x30] ss:$8 sps:$4 sm:$0xff]   ;;  %s6820_s24 = sld [smem:[#allocation48_spill]]  ;;  %p6821_p12 = scmp.ne.s32.totalorder %s6761_s25, 0 }
 0x100   : > { %1344 = vmatprep.subr.bf16.mxu1 %v4772_v32  ;;  %1304 = vmatpush1.bf16.msra.mxu0 %v4767_v33  ;;  %v4841_v32 = vld [vmem:[%s6686_s4 + $0x44] ss:$8 sps:$4 sm:$0xff]   ;;  %v4839_v33 = vld [vmem:[%s6686_s4 + $0x40] ss:$8 sps:$4 sm:$0xff]   ;;  %v628_v5 = vld [vmem:[%s6788_s11 + $0xd0] sm:$0xff] }
 0x101   : > { %1305 = vmatprep.subr.bf16.mxu0 %v4775_v34  ;;  %v4844_v34 = vld [vmem:[%s6686_s4 + $0x54] ss:$8 sps:$4 sm:$0xff]  }
 0x103   : > { %1345 = vmatpush1.bf16.msra.mxu1 %v4770_v35  ;;  %v4842_v35 = vld [vmem:[%s6686_s4 + $0x50] ss:$8 sps:$4 sm:$0xff]  }
 0x104   : > { %1346 = vmatprep.subr.bf16.mxu1 %v4778_v36  ;;  %1306 = vmatpush1.bf16.msra.mxu0 %v4773_v37  ;;  %v4847_v36 = vld [vmem:[%s6686_s4 + $0x64] ss:$8 sps:$4 sm:$0xff]   ;;  %v4845_v37 = vld [vmem:[%s6686_s4 + $0x60] ss:$8 sps:$4 sm:$0xff]  }
 0x105   : > { %1307 = vmatprep.subr.bf16.mxu0 %v4781_v38  ;;  %v4850_v38 = vld [vmem:[%s6686_s4 + $0x74] ss:$8 sps:$4 sm:$0xff]   ;;  %s6598_s28 = scalar_lea.hbm %s6820_s24, %s4024_s10 }
 0x107   : > { %1347 = vmatpush1.bf16.msra.mxu1 %v4776_v39  ;;  %v4848_v39 = vld [vmem:[%s6686_s4 + $0x70] ss:$8 sps:$4 sm:$0xff]  }
 0x108   : > { %1348 = vmatprep.subr.bf16.mxu1 %v4784_v40  ;;  %1308 = vmatpush1.bf16.msra.mxu0 %v4779_v41  ;;  %v4853_v40 = vld [vmem:[%s6686_s4 + $0x84] ss:$8 sps:$4 sm:$0xff]   ;;  %v4851_v41 = vld [vmem:[%s6686_s4 + $0x80] ss:$8 sps:$4 sm:$0xff]  }
 0x109   : > { %1309 = vmatprep.subr.bf16.mxu0 %v4787_v42  ;;  %v4856_v42 = vld [vmem:[%s6686_s4 + $0x94] ss:$8 sps:$4 sm:$0xff]  }
 0x10b   : > { %1349 = vmatpush1.bf16.msra.mxu1 %v4782_v43  ;;  %v4854_v43 = vld [vmem:[%s6686_s4 + $0x90] ss:$8 sps:$4 sm:$0xff]  }
 0x10c   : > { %1350 = vmatprep.subr.bf16.mxu1 %v4790_v44  ;;  %1310 = vmatpush1.bf16.msra.mxu0 %v4785_v45  ;;  %v4859_v44 = vld [vmem:[%s6686_s4 + $0xa4] ss:$8 sps:$4 sm:$0xff]   ;;  %v4857_v45 = vld [vmem:[%s6686_s4 + $0xa0] ss:$8 sps:$4 sm:$0xff]  }
 0x10d   : > { %1311 = vmatprep.subr.bf16.mxu0 %v4793_v46  ;;  %v4862_v46 = vld [vmem:[%s6686_s4 + $0xb4] ss:$8 sps:$4 sm:$0xff]  }
 0x10f   : > { %1351 = vmatpush1.bf16.msra.mxu1 %v4788_v47  ;;  %v4860_v47 = vld [vmem:[%s6686_s4 + $0xb0] ss:$8 sps:$4 sm:$0xff]  }
 0x110   : > { %1352 = vmatprep.subr.bf16.mxu1 %v4796_v48  ;;  %1312 = vmatpush1.bf16.msra.mxu0 %v4791_v49  ;;  %v4865_v48 = vld [vmem:[%s6686_s4 + $0xc4] ss:$8 sps:$4 sm:$0xff]   ;;  %v4863_v49 = vld [vmem:[%s6686_s4 + $0xc0] ss:$8 sps:$4 sm:$0xff]  }
 0x111   : > { %1313 = vmatprep.subr.bf16.mxu0 %v4799_v50  ;;  %v4868_v50 = vld [vmem:[%s6686_s4 + $0xd4] ss:$8 sps:$4 sm:$0xff]  }
 0x113   : > { %1353 = vmatpush1.bf16.msra.mxu1 %v4794_v51  ;;  %v4866_v51 = vld [vmem:[%s6686_s4 + $0xd0] ss:$8 sps:$4 sm:$0xff]  }
 0x114   : > { %1354 = vmatprep.subr.bf16.mxu1 %v4802_v52  ;;  %1314 = vmatpush1.bf16.msra.mxu0 %v4797_v53  ;;  %v4871_v52 = vld [vmem:[%s6686_s4 + $0xe4] ss:$8 sps:$4 sm:$0xff]   ;;  %v4869_v53 = vld [vmem:[%s6686_s4 + $0xe0] ss:$8 sps:$4 sm:$0xff]  }
 0x115   : > { %1315 = vmatprep.subr.bf16.mxu0 %v4805_v54  ;;  %v4874_v54 = vld [vmem:[%s6686_s4 + $0xf4] ss:$8 sps:$4 sm:$0xff]  }
 0x117   : > { %1355 = vmatpush1.bf16.msra.mxu1 %v4800_v55  ;;  %v4872_v55 = vld [vmem:[%s6686_s4 + $0xf0] ss:$8 sps:$4 sm:$0xff]  }
 0x118   : > { %1356 = vmatprep.subr.bf16.mxu1 %v4808_v56  ;;  %1316 = vmatpush1.bf16.msra.mxu0 %v4803_v57  ;;  %v5985_v56 = vld [vmem:[%s5881_s29] sm:$0xff]  ;;  %v5988_v57 = vld [vmem:[%s5881_s29 + $0x10] sm:$0xff] }
 0x119   : > { %1317 = vmatprep.subr.bf16.mxu0 %v4811_v58  ;;  %v1373_v58 = vpack.c.bf16 %v5988_v57, %v5985_v56 }
 0x11b   : > { %1357 = vmatpush1.bf16.msra.mxu1 %v4806_v59 }
 0x11c   : > { %1358 = vmatprep.subr.bf16.mxu1 %v4814_v60  ;;  %1318 = vmatpush1.bf16.msra.mxu0 %v4809_v61 }
 0x11d   : > { %1319 = vmatprep.subr.bf16.mxu0 %v4817_v62 }
 0x11f   : > { %1359 = vmatpush1.bf16.msra.mxu1 %v4812_v63  ;;  %v539_v63 = vld [vmem:[#allocation14 + $0x8] sm:$0xff] }
 0x120   : > { %1360 = vmatprep.subr.bf16.mxu1 %v4820_v1  ;;  %1320 = vmatpush1.bf16.msra.mxu0 %v4815_v0  ;;  %v541_v0 = vld [vmem:[#allocation14 + $0x18] sm:$0xff] }
 0x121   : > { %1321 = vmatprep.subr.bf16.mxu0 %v4823_v4  ;;  %v5996_v1 = vpack.c.bf16 %v541_v0, %v539_v63  ;;  %v540_v4 = vld [vmem:[#allocation14 + $0x10] sm:$0xff]  ;;  %v577_v63 = vld [vmem:[#allocation14 + $0x138] sm:$0xff] }
 0x123   : > { %1361 = vmatpush1.bf16.msra.mxu1 %v4818_v2  ;;  %v538_v2 = vld [vmem:[#allocation14] sm:$0xff] }
 0x124   : > { %1362 = vmatprep.subr.bf16.mxu1 %v4826_v8  ;;  %1322 = vmatpush1.bf16.msra.mxu0 %v4821_v9  ;;  %v5998_v8 = vpack.c.bf16 %v540_v4, %v538_v2  ;;  %v543_v9 = vld [vmem:[#allocation14 + $0x28] sm:$0xff]  ;;  %v574_v4 = vld [vmem:[#allocation14 + $0x120] sm:$0xff] }
 0x125   : > { %1567 = vmatprep.subr.bf16.mxu0 %v4829_v12 }
 0x127   : > { %1363 = vmatpush1.bf16.msra.mxu1 %v4824_v11  ;;  %v545_v11 = vld [vmem:[#allocation14 + $0x38] sm:$0xff] }
 0x128   : > { %4200 = vmatprep.subr.bf16.mxu1 %v5996_v1  ;;  %v6004_v12 = vpack.c.bf16 %v545_v11, %v543_v9  ;;  %v576_v9 = vld [vmem:[#allocation14 + $0x130] sm:$0xff]  ;;  %v579_v11 = vld [vmem:[#allocation14 + $0x148] sm:$0xff] }
 0x15d   : > { %v803_v10 = vpop.permute.xlu0 %802 }
 0x15e   : > { %806 = vst.msk [vmem:[#allocation2] sm:$0x3] %vm805_vm7, %v803_v10  ;;  %v542_v10 = vld [vmem:[#allocation14 + $0x20] sm:$0xff] }
 0x15f   : > { %v817_v13 = vpop.permute.xlu1 %816 }
 0x160   : > { %820 = vst.msk [vmem:[#allocation2] sm:$0x3] %vm819_vm8, %v817_v13  ;;  %v544_v13 = vld [vmem:[#allocation14 + $0x30] sm:$0xff] }
 0x161   : > { %v866_v14 = vpop.permute.xlu0 %865 }
 0x162   : > { %868 = vst.msk [vmem:[#allocation2 + $0x2] sm:$0x3] %vm805_vm7, %v866_v14  ;;  %v6006_v14 = vpack.c.bf16 %v544_v13, %v542_v10  ;;  %v581_v10 = vld [vmem:[#allocation14 + $0x158] sm:$0xff]  ;;  %v6069_v13 = vpack.c.bf16 %v576_v9, %v574_v4  ;;  %v598_v9 = vld [vmem:[#allocation14 + $0x1e0] sm:$0xff] }
 0x163   : > { %v879_v15 = vpop.permute.xlu1 %878 }
 0x164   : > { %881 = vst.msk [vmem:[#allocation2 + $0x2] sm:$0x3] %vm819_vm8, %v879_v15  ;;  %v547_v15 = vld [vmem:[#allocation14 + $0x48] sm:$0xff]  ;;  %6775 = vst [vmem:[#allocation25_spill] sm:$0xff] %v6069_v13 }
 0x165   : > { %v829_v16 = vpop.permute.xlu0 %828 }
 0x166   : > { %832 = vst.msk [vmem:[#allocation2] sm:$0x3] %vm831_vm9, %v829_v16  ;;  %v549_v16 = vld [vmem:[#allocation14 + $0x58] sm:$0xff] }
 0x167   : > { %v890_v17 = vpop.permute.xlu1 %889 }
 0x168   : > { %892 = vst.msk [vmem:[#allocation2 + $0x2] sm:$0x3] %vm831_vm9, %v890_v17  ;;  %v546_v17 = vld [vmem:[#allocation14 + $0x40] sm:$0xff] }
 0x16f   : > { %v3809_v18 = vld.sshfl [vmem:[#allocation2] sm:$0x33 pattern:$0x76325410] }
 0x170   : > { %v902_v21 = vcombine.high %v3809_v18, %v3809_v18  ;;  %v905_v25 = vpack.c.bf16 %v3809_v18, %v3809_v18  ;;  %v6009_v18 = vpack.c.bf16 %v549_v16, %v547_v15  ;;  %v6073_v15 = vpack.c.bf16 %v581_v10, %v579_v11  ;;  %v578_v16 = vld [vmem:[#allocation14 + $0x140] sm:$0xff]  ;;  %v600_v11 = vld [vmem:[#allocation14 + $0x1f0] sm:$0xff] }
 0x171   : > { %v6118_v10 = vpack.c.bf16 %v600_v11, %v598_v9 }
 0x172   : > { %v906_v22 = vpack.c.bf16 %v902_v21, %v902_v21  ;;  %v548_v21 = vld [vmem:[#allocation14 + $0x50] sm:$0xff]  ;;  %6776 = vst [vmem:[#allocation26_spill] sm:$0xff] %v6073_v15 }
 0x173   : > { %6787 = vst [vmem:[#allocation37_spill] sm:$0xff] %v6118_v10 }
 0x174   : > { %1323 = vmatprep.mubr.bf16.mxu0 %v906_v22  ;;  %1364 = vmatprep.mubr.bf16.mxu1 %v906_v22  ;;  %v551_v22 = vld [vmem:[#allocation14 + $0x68] sm:$0xff] }
 0x175   : > { %1324 = vmatmul.mubr.bf16.vlgmr.msra.gmra.mrb[4].mxu0 %v905_v25  ;;  %1365 = vmatmul.mubr.bf16.vlgmr.msra.gmra.mrb[4].mxu1 %v905_v25 }
 0x176   : > { %1568 = vmatpush1.bf16.msra.mxu0 %v4827_v23  ;;  %1599 = vmatprep.mubr.bf16.mxu0 %v1374_v24  ;;  %v553_v23 = vld [vmem:[#allocation14 + $0x78] sm:$0xff]  ;;  %v6013_v24 = vpack.c.bf16 %v548_v21, %v546_v17  ;;  %v580_v17 = vld [vmem:[#allocation14 + $0x150] sm:$0xff]  ;;  %v583_v21 = vld [vmem:[#allocation14 + $0x168] sm:$0xff] }
 0x177   : > { %1569 = vmatprep.subr.bf16.mxu0 %v4832_v26  ;;  %4202 = vmatpush1.bf16.msra.mxu1 %v5998_v8  ;;  %v6017_v25 = vpack.c.bf16 %v553_v23, %v551_v22  ;;  %v550_v26 = vld [vmem:[#allocation14 + $0x60] sm:$0xff]  ;;  %v585_v22 = vld [vmem:[#allocation14 + $0x178] sm:$0xff]  ;;  %v6077_v23 = vpack.c.bf16 %v580_v17, %v578_v16 }
 0x178   : > { %4204 = vmatprep.subr.bf16.mxu1 %v6004_v12 }
 0x179   : > { %6777 = vst [vmem:[#allocation27_spill] sm:$0xff] %v6077_v23 }
 0x17a   : > { %1570 = vmatpush1.bf16.msra.mxu0 %v4830_v27  ;;  %v552_v27 = vld [vmem:[#allocation14 + $0x70] sm:$0xff] }
 0x17b   : > { %1571 = vmatprep.subr.bf16.mxu0 %v4835_v28  ;;  %4206 = vmatpush1.bf16.msra.mxu1 %v6006_v14  ;;  %v555_v28 = vld [vmem:[#allocation14 + $0x88] sm:$0xff] }
 0x17c   : > { %4208 = vmatprep.subr.bf16.mxu1 %v6009_v18 }
 0x17e   : > { %1572 = vmatpush1.bf16.msra.mxu0 %v4833_v29  ;;  %v557_v29 = vld [vmem:[#allocation14 + $0x98] sm:$0xff] }
 0x17f   : > { %1573 = vmatprep.subr.bf16.mxu0 %v4838_v30  ;;  %4210 = vmatpush1.bf16.msra.mxu1 %v6013_v24  ;;  %v6021_v30 = vpack.c.bf16 %v552_v27, %v550_v26  ;;  %v6081_v26 = vpack.c.bf16 %v585_v22, %v583_v21  ;;  %v582_v27 = vld [vmem:[#allocation14 + $0x160] sm:$0xff] }
 0x180   : > { %4212 = vmatprep.subr.bf16.mxu1 %v6017_v25 }
 0x181   : > { %6778 = vst [vmem:[#allocation28_spill] sm:$0xff] %v6081_v26 }
 0x182   : > { %1574 = vmatpush1.bf16.msra.mxu0 %v4836_v31  ;;  %v6025_v31 = vpack.c.bf16 %v557_v29, %v555_v28  ;;  %v584_v28 = vld [vmem:[#allocation14 + $0x170] sm:$0xff]  ;;  %v587_v29 = vld [vmem:[#allocation14 + $0x188] sm:$0xff] }
 0x183   : > { %1575 = vmatprep.subr.bf16.mxu0 %v4841_v32  ;;  %v554_v32 = vld [vmem:[#allocation14 + $0x80] sm:$0xff]  ;;  %4214 = vmatpush1.bf16.msra.mxu1 %v6021_v30 }
 0x184   : > { %4216 = vmatprep.subr.bf16.mxu1 %v6025_v31 }
 0x186   : > { %1576 = vmatpush1.bf16.msra.mxu0 %v4839_v33  ;;  %v556_v33 = vld [vmem:[#allocation14 + $0x90] sm:$0xff] }
 0x187   : > { %1577 = vmatprep.subr.bf16.mxu0 %v4844_v34  ;;  %v559_v34 = vld [vmem:[#allocation14 + $0xa8] sm:$0xff] }
 0x18a   : > { %1578 = vmatpush1.bf16.msra.mxu0 %v4842_v35  ;;  %v561_v35 = vld [vmem:[#allocation14 + $0xb8] sm:$0xff] }
 0x18b   : > { %1579 = vmatprep.subr.bf16.mxu0 %v4847_v36  ;;  %v6029_v36 = vpack.c.bf16 %v556_v33, %v554_v32  ;;  %v589_v32 = vld [vmem:[#allocation14 + $0x198] sm:$0xff]  ;;  %v6085_v33 = vpack.c.bf16 %v584_v28, %v582_v27  ;;  %v612_v28 = vld [vmem:[%s6788_s11 + $0x50] sm:$0xff] }
 0x18d   : > { %4218 = vmatpush1.bf16.msra.mxu1 %v6029_v36  ;;  %6779 = vst [vmem:[#allocation29_spill] sm:$0xff] %v6085_v33 }
 0x18e   : > { %1580 = vmatpush1.bf16.msra.mxu0 %v4845_v37  ;;  %v6033_v37 = vpack.c.bf16 %v561_v35, %v559_v34  ;;  %v6089_v34 = vpack.c.bf16 %v589_v32, %v587_v29  ;;  %v586_v35 = vld [vmem:[#allocation14 + $0x180] sm:$0xff] }
 0x18f   : > { %1581 = vmatprep.subr.bf16.mxu0 %v4850_v38  ;;  %v558_v38 = vld [vmem:[#allocation14 + $0xa0] sm:$0xff] }
 0x190   : > { %4220 = vmatprep.subr.bf16.mxu1 %v6033_v37  ;;  %6780 = vst [vmem:[#allocation30_spill] sm:$0xff] %v6089_v34 }
 0x192   : > { %1582 = vmatpush1.bf16.msra.mxu0 %v4848_v39  ;;  %v560_v39 = vld [vmem:[#allocation14 + $0xb0] sm:$0xff] }
 0x193   : > { %1583 = vmatprep.subr.bf16.mxu0 %v4853_v40  ;;  %v563_v40 = vld [vmem:[#allocation14 + $0xc8] sm:$0xff] }
 0x196   : > { %1584 = vmatpush1.bf16.msra.mxu0 %v4851_v41  ;;  %v565_v41 = vld [vmem:[#allocation14 + $0xd8] sm:$0xff] }
 0x197   : > { %1585 = vmatprep.subr.bf16.mxu0 %v4856_v42  ;;  %v6037_v42 = vpack.c.bf16 %v560_v39, %v558_v38  ;;  %v588_v38 = vld [vmem:[#allocation14 + $0x190] sm:$0xff]  ;;  %v591_v39 = vld [vmem:[#allocation14 + $0x1a8] sm:$0xff] }
 0x199   : > { %4222 = vmatpush1.bf16.msra.mxu1 %v6037_v42 }
 0x19a   : > { %1586 = vmatpush1.bf16.msra.mxu0 %v4854_v43  ;;  %v6041_v43 = vpack.c.bf16 %v565_v41, %v563_v40  ;;  %v593_v40 = vld [vmem:[#allocation14 + $0x1b8] sm:$0xff]  ;;  %v6093_v41 = vpack.c.bf16 %v588_v38, %v586_v35 }
 0x19b   : > { %1587 = vmatprep.subr.bf16.mxu0 %v4859_v44  ;;  %v562_v44 = vld [vmem:[#allocation14 + $0xc0] sm:$0xff] }
 0x19c   : > { %4224 = vmatprep.subr.bf16.mxu1 %v6041_v43  ;;  %6781 = vst [vmem:[#allocation31_spill] sm:$0xff] %v6093_v41 }
 0x19e   : > { %1588 = vmatpush1.bf16.msra.mxu0 %v4857_v45  ;;  %v564_v45 = vld [vmem:[#allocation14 + $0xd0] sm:$0xff] }
 0x19f   : > { %1589 = vmatprep.subr.bf16.mxu0 %v4862_v46  ;;  %v567_v46 = vld [vmem:[#allocation14 + $0xe8] sm:$0xff] }
 0x1a2   : > { %1590 = vmatpush1.bf16.msra.mxu0 %v4860_v47  ;;  %v569_v47 = vld [vmem:[#allocation14 + $0xf8] sm:$0xff] }
 0x1a3   : > { %1591 = vmatprep.subr.bf16.mxu0 %v4865_v48  ;;  %v6045_v48 = vpack.c.bf16 %v564_v45, %v562_v44  ;;  %v6097_v44 = vpack.c.bf16 %v593_v40, %v591_v39  ;;  %v590_v45 = vld [vmem:[#allocation14 + $0x1a0] sm:$0xff]  ;;  %v5423_v39 = vmov 1966171168  }
 0x1a4   : > { %v1618_v40 = vunpack.c.l.s4 %v5423_v39 }
 0x1a5   : > { %4226 = vmatpush1.bf16.msra.mxu1 %v6045_v48  ;;  %6782 = vst [vmem:[#allocation32_spill] sm:$0xff] %v6097_v44 }
 0x1a6   : > { %1592 = vmatpush1.bf16.msra.mxu0 %v4863_v49  ;;  %v6049_v49 = vpack.c.bf16 %v569_v47, %v567_v46  ;;  %v592_v46 = vld [vmem:[#allocation14 + $0x1b0] sm:$0xff]  ;;  %v595_v47 = vld [vmem:[#allocation14 + $0x1c8] sm:$0xff] }
 0x1a7   : > { %1593 = vmatprep.subr.bf16.mxu0 %v4868_v50  ;;  %v566_v50 = vld [vmem:[#allocation14 + $0xe0] sm:$0xff] }
 0x1a8   : > { %4228 = vmatprep.subr.bf16.mxu1 %v6049_v49 }
 0x1aa   : > { %1594 = vmatpush1.bf16.msra.mxu0 %v4866_v51  ;;  %v568_v51 = vld [vmem:[#allocation14 + $0xf0] sm:$0xff] }
 0x1ab   : > { %1595 = vmatprep.subr.bf16.mxu0 %v4871_v52  ;;  %v571_v52 = vld [vmem:[#allocation14 + $0x108] sm:$0xff] }
 0x1ae   : > { %1596 = vmatpush1.bf16.msra.mxu0 %v4869_v53  ;;  %v573_v53 = vld [vmem:[#allocation14 + $0x118] sm:$0xff] }
 0x1af   : > { %1597 = vmatprep.subr.bf16.mxu0 %v4874_v54  ;;  %v6053_v54 = vpack.c.bf16 %v568_v51, %v566_v50  ;;  %v597_v50 = vld [vmem:[#allocation14 + $0x1d8] sm:$0xff]  ;;  %v6101_v51 = vpack.c.bf16 %v592_v46, %v590_v45  ;;  %v1619_v45 = vunpack.c.0.s8 %v1618_v40 }
 0x1b1   : > { %4230 = vmatpush1.bf16.msra.mxu1 %v6053_v54  ;;  %6783 = vst [vmem:[#allocation33_spill] sm:$0xff] %v6101_v51  ;;  %v6131_v46 = vsub.s32 %v1619_v45, %v5791_v3 }
 0x1b2   : > { %1598 = vmatpush1.bf16.msra.mxu0 %v4872_v55  ;;  %v6057_v55 = vpack.c.bf16 %v573_v53, %v571_v52  ;;  %v6105_v52 = vpack.c.bf16 %v597_v50, %v595_v47  ;;  %v594_v53 = vld [vmem:[#allocation14 + $0x1c0] sm:$0xff] }
 0x1b3   : > { %4264 = vmatprep.subr.bf16.mxu0 %v5996_v1 }
 0x1b4   : > { %4232 = vmatprep.subr.bf16.mxu1 %v6057_v55  ;;  %6784 = vst [vmem:[#allocation34_spill] sm:$0xff] %v6105_v52 }
 0x1b5   : > { %1600 = vmatmul.mubr.bf16.vlgmr.msra.gmra.mrb[0].mxu0 %v1373_v58  ;;  %v570_v58 = vld [vmem:[#allocation14 + $0x100] sm:$0xff] }
 0x1b6   : > { %4266 = vmatpush1.bf16.msra.mxu0 %v5998_v8 }
 0x1b7   : > { %4268 = vmatprep.subr.bf16.mxu0 %v6004_v12 }
 0x1ba   : > { %v5992_v59 = vpop.f32.mrb[0].mxu1  ;;  %4270 = vmatpush1.bf16.msra.mxu0 %v6006_v14 }
 0x1bb   : > { %v4189_v60 = vpop.f32.mrb[1].mxu1  ;;  %4272 = vmatprep.subr.bf16.mxu0 %v6009_v18 }
 0x1bc   : > { %v5994_v61 = vpop.f32.mrb[2].mxu1  ;;  %v572_v60 = vld [vmem:[#allocation14 + $0x110] sm:$0xff] }
 0x1bd   : > { %v4190_v62 = vpop.f32.mrb[3].mxu1  ;;  %v6061_v0 = vpack.c.bf16 %v572_v60, %v570_v58  ;;  %v596_v58 = vld [vmem:[#allocation14 + $0x1d0] sm:$0xff] }
 0x1be   : > { %4274 = vmatpush1.bf16.msra.mxu0 %v6013_v24  ;;  %v575_v62 = vld [vmem:[#allocation14 + $0x128] sm:$0xff]  ;;  %v6109_v60 = vpack.c.bf16 %v596_v58, %v594_v53  ;;  %v6135_v53 = vsub.s32 0, %v5791_v3 }
 0x1bf   : > { %4276 = vmatprep.subr.bf16.mxu0 %v6017_v25  ;;  %v6065_v2 = vpack.c.bf16 %v577_v63, %v575_v62  ;;  %4234 = vmatpush1.bf16.msra.mxu1 %v6061_v0  ;;  %v599_v62 = vld [vmem:[#allocation14 + $0x1e8] sm:$0xff]  ;;  %v601_v63 = vld [vmem:[#allocation14 + $0x1f8] sm:$0xff] }
 0x1c0   : > { %6785 = vst [vmem:[#allocation35_spill] sm:$0xff] %v6109_v60  ;;  %v6116_v4 = vpack.c.bf16 %v601_v63, %v599_v62  ;;  %v6139_v62 = vsub.s32 1, %v5791_v3 }
 0x1c1   : > { %6774 = vst [vmem:[#allocation24_spill] sm:$0xff] %v6065_v2  ;;  %4236 = vmatprep.subr.bf16.mxu1 %v6065_v2 }
 0x1c2   : > { %4278 = vmatpush1.bf16.msra.mxu0 %v6021_v30  ;;  %6786 = vst [vmem:[#allocation36_spill] sm:$0xff] %v6116_v4 }
 0x1c3   : > { %4280 = vmatprep.subr.bf16.mxu0 %v6025_v31  ;;  %4238 = vmatpush1.bf16.msra.mxu1 %v6069_v13 }
 0x1c4   : > { %4240 = vmatprep.subr.bf16.mxu1 %v6073_v15 }
 0x1c6   : > { %4282 = vmatpush1.bf16.msra.mxu0 %v6029_v36 }
 0x1c7   : > { %4284 = vmatprep.subr.bf16.mxu0 %v6033_v37  ;;  %4242 = vmatpush1.bf16.msra.mxu1 %v6077_v23 }
 0x1c8   : > { %4244 = vmatprep.subr.bf16.mxu1 %v6081_v26 }
 0x1ca   : > { %4286 = vmatpush1.bf16.msra.mxu0 %v6037_v42 }
 0x1cb   : > { %4288 = vmatprep.subr.bf16.mxu0 %v6041_v43  ;;  %4246 = vmatpush1.bf16.msra.mxu1 %v6085_v33 }
 0x1cc   : > { %4248 = vmatprep.subr.bf16.mxu1 %v6089_v34 }
 0x1ce   : > { %4290 = vmatpush1.bf16.msra.mxu0 %v6045_v48 }
 0x1cf   : > { %4292 = vmatprep.subr.bf16.mxu0 %v6049_v49  ;;  %4250 = vmatpush1.bf16.msra.mxu1 %v6093_v41 }
 0x1d0   : > { %4252 = vmatprep.subr.bf16.mxu1 %v6097_v44 }
 0x1d2   : > { %4294 = vmatpush1.bf16.msra.mxu0 %v6053_v54 }
 0x1d3   : > { %4296 = vmatprep.subr.bf16.mxu0 %v6057_v55  ;;  %4254 = vmatpush1.bf16.msra.mxu1 %v6101_v51 }
 0x1d4   : > { %4256 = vmatprep.subr.bf16.mxu1 %v6105_v52 }
 0x1d6   : > { %4298 = vmatpush1.bf16.msra.mxu0 %v6061_v0 }
 0x1d7   : > { %4300 = vmatprep.subr.bf16.mxu0 %v6065_v2  ;;  %4258 = vmatpush1.bf16.msra.mxu1 %v6109_v60 }
 0x1d8   : > { %4260 = vmatprep.subr.bf16.mxu1 %v6116_v4 }
 0x1da   : > { %4302 = vmatpush1.bf16.msra.mxu0 %v6069_v13 }
 0x1db   : > { %4304 = vmatprep.subr.bf16.mxu0 %v6073_v15  ;;  %4262 = vmatpush1.bf16.msra.mxu1 %v6118_v10 }
 0x1de   : > { %4306 = vmatpush1.bf16.msra.mxu0 %v6077_v23 }
 0x1df   : > { %4308 = vmatprep.subr.bf16.mxu0 %v6081_v26 }
 0x1e2   : > { %4310 = vmatpush1.bf16.msra.mxu0 %v6085_v33 }
 0x1e3   : > { %4312 = vmatprep.subr.bf16.mxu0 %v6089_v34 }
 0x1e6   : > { %4314 = vmatpush1.bf16.msra.mxu0 %v6093_v41 }
 0x1e7   : > { %4316 = vmatprep.subr.bf16.mxu0 %v6097_v44 }
 0x1ea   : > { %4318 = vmatpush1.bf16.msra.mxu0 %v6101_v51 }
 0x1eb   : > { %4320 = vmatprep.subr.bf16.mxu0 %v6105_v52 }
 0x1ee   : > { %4322 = vmatpush1.bf16.msra.mxu0 %v6109_v60  ;;  %v632_v60 = vld [vmem:[%s6788_s11 + $0xf0] sm:$0xff] }
 0x1ef   : > { %4324 = vmatprep.subr.bf16.mxu0 %v6116_v4  ;;  %v614_v4 = vld [vmem:[%s6788_s11 + $0x60] sm:$0xff] }
 0x1f2   : > { %4326 = vmatpush1.bf16.msra.mxu0 %v6118_v10  ;;  %v630_v10 = vld [vmem:[%s6788_s11 + $0xe0] sm:$0xff] }
 0x248   : > { %v1325_v16 = vpop.f32.mrb[4].mxu0  ;;  %v6124_v17 = vpop.f32.mrb[4].mxu1 }
 0x249   : > { %v1327_v21 = vpop.f32.mrb[5].mxu0  ;;  %v6126_v22 = vpop.f32.mrb[5].mxu1 }
 0x24a   : > { %v1616_v27 = vcombine.low %v1325_v16, %v1327_v21  ;;  %v1329_v29 = vpop.f32.mrb[6].mxu0  ;;  %v1370_v32 = vpop.f32.mrb[6].mxu1 }
 0x24b   : > { %v1330_v35 = vpop.f32.mrb[7].mxu0  ;;  %v1371_v38 = vpop.f32.mrb[7].mxu1 }
 0x24c   : > { %v1623_v47 = vrot.slane %v1616_v27, %v6131_v46 }
 0x24e   : > { %v1624_v50 = vcombine.high %v1623_v47, %v1623_v47  ;;  %v1631_v58 = vrot.slane %v1623_v47, %v6131_v46 }
 0x250   : > { %v1638_v63 = vrot.slane %v1624_v50, %v6131_v46  ;;  %v1642_v9 = vrot.slane %v1631_v58, %v6135_v53  ;;  %v1646_v16 = vrot.slane %v1631_v58, %v6139_v62 }
 0x252   : > { %v1650_v27 = vrot.slane %v1638_v63, %v6135_v53  ;;  %v1654_v38 = vrot.slane %v1638_v63, %v6139_v62 }
 0x288   : > { %v1601_v11 = vpop.f32.mrb[0].mxu0 }
 0x289   : > { %v1659_v21 = vadd.f32 %v1642_v9, %v1601_v11  ;;  %v1603_v29 = vpop.f32.mrb[1].mxu0 }
 0x28a   : > { %v1660_v32 = vadd.f32 %v1646_v16, %v1603_v29  ;;  %v1605_v35 = vpop.f32.mrb[2].mxu0 }
 0x28b   : > { %v1661_v39 = vadd.f32 %v1650_v27, %v1605_v35  ;;  %v1607_v40 = vpop.f32.mrb[3].mxu0  ;;  %v618_v35 = vld [vmem:[%s6788_s11 + $0x80] sm:$0xff] }
 0x28c   : > { %v1662_v45 = vadd.f32 %v1654_v38, %v1607_v40  ;;  %1727 = vmatprep.mubr.f32.mxu1 %v1660_v32  ;;  %v619_v38 = vld [vmem:[%s6788_s11 + $0x88] sm:$0xff]  ;;  %v602_v40 = vld [vmem:[%s6788_s11] sm:$0xff] }
 0x28d   : > { %1728 = vmatmul.mubr.f32.vlgmr.msra.gmra.mrb[8].mxu1 %v1659_v21 }
 0x28e   : > { %1733 = vmatprep.mubr.f32.mxu1 %v1662_v45 }
 0x291   : > { %1734 = vmatmul.mubr.f32.gmra.mrb[10].mxu1 %v1661_v39 }
 0x360   : > { %v1729_v3 = vpop.f32.mrb[8].mxu1 }
 0x361   : > { %v6146_v47 = vsub.f32 %v1659_v21, %v1729_v3  ;;  %v1731_v50 = vpop.f32.mrb[9].mxu1 }
 0x362   : > { %v6148_v58 = vsub.f32 %v1660_v32, %v1731_v50  ;;  %v621_v50 = vld [vmem:[%s6788_s11 + $0x98] sm:$0xff] }
 0x363   : > { %v1744_v63 = vmul.f32 %v6146_v47, %v6146_v47 }
 0x364   : > { %v1745_v9 = vmul.f32 %v6148_v58, %v6148_v58  ;;  %v1735_v11 = vpop.f32.mrb[10].mxu1 }
 0x365   : > { %v6154_v16 = vsub.f32 %v1661_v39, %v1735_v11  ;;  %v1737_v29 = vpop.f32.mrb[11].mxu1  ;;  %v6169_v39 = vpack.c.bf16 %v619_v38, %v618_v35  ;;  %v604_v11 = vld [vmem:[%s6788_s11 + $0x10] sm:$0xff]  ;;  %v606_v38 = vld [vmem:[%s6788_s11 + $0x20] sm:$0xff] }
 0x366   : > { %v6156_v27 = vsub.f32 %v1662_v45, %v1737_v29  ;;  %1812 = vmatprep.mubr.f32.mxu0 %v1745_v9  ;;  %v603_v45 = vld [vmem:[%s6788_s11 + $0x8] sm:$0xff] }
 0x367   : > { %1813 = vmatmul.mubr.f32.vlgmr.msra.gmra.mrb[8].mxu0 %v1744_v63  ;;  %v1746_v32 = vmul.f32 %v6154_v16, %v6154_v16  ;;  %6789 = vst [vmem:[#allocation38_spill] sm:$0xff] %v6169_v39  ;;  %v6177_v3 = vpack.c.bf16 %v603_v45, %v602_v40  ;;  %4328 = vmatprep.subr.bf16.mxu1 %v6169_v39  ;;  %v605_v63 = vld [vmem:[%s6788_s11 + $0x18] sm:$0xff]  ;;  %v607_v40 = vld [vmem:[%s6788_s11 + $0x28] sm:$0xff] }
 0x368   : > { %v1747_v21 = vmul.f32 %v6156_v27, %v6156_v27  ;;  %v6195_v29 = vpack.c.bf16 %v605_v63, %v604_v11  ;;  %v6213_v45 = vpack.c.bf16 %v607_v40, %v606_v38  ;;  %v608_v63 = vld [vmem:[%s6788_s11 + $0x30] sm:$0xff]  ;;  %v626_v38 = vld [vmem:[%s6788_s11 + $0xc0] sm:$0xff]  ;;  %v627_v40 = vld [vmem:[%s6788_s11 + $0xc8] sm:$0xff] }
 0x369   : > { %4330 = vmatpush3.bf16.msra.mxu1 %v6177_v3 }
 0x36a   : > { %1818 = vmatprep.mubr.f32.mxu0 %v1747_v21  ;;  %v622_v21 = vld [vmem:[%s6788_s11 + $0xa0] sm:$0xff] }
 0x36b   : > { %1819 = vmatmul.mubr.f32.gmra.mrb[10].mxu0 %v1746_v32  ;;  %v623_v32 = vld [vmem:[%s6788_s11 + $0xa8] sm:$0xff] }
 0x36c   : > { %2179 = vmatprep.mubr.bf16.mxu0 %v5418_v6  ;;  %v620_v6 = vld [vmem:[%s6788_s11 + $0x90] sm:$0xff]  ;;  %v6205_v35 = vpack.c.bf16 %v623_v32, %v622_v21  ;;  %v609_v21 = vld [vmem:[%s6788_s11 + $0x38] sm:$0xff] }
 0x36d   : > { %v6187_v9 = vpack.c.bf16 %v621_v50, %v620_v6  ;;  %v624_v6 = vld [vmem:[%s6788_s11 + $0xb0] sm:$0xff]  ;;  %v625_v50 = vld [vmem:[%s6788_s11 + $0xb8] sm:$0xff]  ;;  %v6231_v32 = vpack.c.bf16 %v609_v21, %v608_v63  ;;  %v611_v63 = vld [vmem:[%s6788_s11 + $0x48] sm:$0xff] }
 0x36e   : > { %v6223_v11 = vpack.c.bf16 %v625_v50, %v624_v6  ;;  %v6241_v6 = vpack.c.bf16 %v627_v40, %v626_v38  ;;  %v610_v50 = vld [vmem:[%s6788_s11 + $0x40] sm:$0xff]  ;;  %v629_v38 = vld [vmem:[%s6788_s11 + $0xd8] sm:$0xff] }
 0x36f   : > { %4332 = vmatprep.subr.bf16.mxu1 %v6187_v9  ;;  %v6249_v21 = vpack.c.bf16 %v611_v63, %v610_v50  ;;  %v6259_v40 = vpack.c.bf16 %v629_v38, %v628_v5  ;;  %v613_v50 = vld [vmem:[%s6788_s11 + $0x58] sm:$0xff]  ;;  %v631_v5 = vld [vmem:[%s6788_s11 + $0xe8] sm:$0xff] }
 0x370   : > { %4334 = vmatpush3.bf16.msra.mxu1 %v6195_v29  ;;  %v6267_v63 = vpack.c.bf16 %v613_v50, %v612_v28  ;;  %v6277_v38 = vpack.c.bf16 %v631_v5, %v630_v10  ;;  %v615_v28 = vld [vmem:[%s6788_s11 + $0x68] sm:$0xff]  ;;  %v633_v10 = vld [vmem:[%s6788_s11 + $0xf8] sm:$0xff]  ;;  %v616_v5 = vld [vmem:[%s6788_s11 + $0x70] sm:$0xff] }
 0x371   : > { %4336 = vmatprep.subr.bf16.mxu1 %v6205_v35  ;;  %v6285_v50 = vpack.c.bf16 %v615_v28, %v614_v4  ;;  %v6298_v52 = vpack.c.bf16 %v633_v10, %v632_v60  ;;  %v617_v4 = vld [vmem:[%s6788_s11 + $0x78] sm:$0xff] }
 0x372   : > { %6790 = vst [vmem:[#allocation39_spill] sm:$0xff] %v6277_v38  ;;  %v6303_v28 = vpack.c.bf16 %v617_v4, %v616_v5 }
 0x373   : > { %6791 = vst [vmem:[#allocation40_spill] sm:$0xff] %v6285_v50  ;;  %6792 = vst [vmem:[#allocation41_spill] sm:$0xff] %v6298_v52 }
 0x374   : > { %4338 = vmatpush3.bf16.msra.mxu1 %v6213_v45  ;;  %6793 = vst [vmem:[#allocation42_spill] sm:$0xff] %v6303_v28 }
 0x375   : > { %4340 = vmatprep.subr.bf16.mxu1 %v6223_v11 }
 0x378   : > { %4342 = vmatpush3.bf16.msra.mxu1 %v6231_v32 }
 0x379   : > { %4344 = vmatprep.subr.bf16.mxu1 %v6241_v6 }
 0x37c   : > { %4346 = vmatpush3.bf16.msra.mxu1 %v6249_v21 }
 0x37d   : > { %4348 = vmatprep.subr.bf16.mxu1 %v6259_v40 }
 0x380   : > { %4350 = vmatpush3.bf16.msra.mxu1 %v6267_v63 }
 0x381   : > { %4352 = vmatprep.subr.bf16.mxu1 %v6277_v38 }
 0x384   : > { %4354 = vmatpush3.bf16.msra.mxu1 %v6285_v50 }
 0x385   : > { %4356 = vmatprep.subr.bf16.mxu1 %v6298_v52 }
 0x388   : > { %4358 = vmatpush3.bf16.msra.mxu1 %v6303_v28 }
 0x389   : > { %4360 = vmatprep.subr.bf16.mxu1 %v6169_v39 }
 0x43a   : > { %v1814_v51 = vpop.f32.mrb[8].mxu0 }
 0x43b   : > { %v1815_v44 = vadd.f32 1e-05, %v1814_v51  ;;  %v1816_v41 = vpop.f32.mrb[9].mxu0 }
 0x43c   : > { %v1817_v34 = vadd.f32 1e-05, %v1816_v41 }
 0x43d   : > { %5027 = vrsqrt.f32 %v1815_v44 }
 0x43e   : > { %5029 = vrsqrt.f32 %v1817_v34  ;;  %v1820_v60 = vpop.f32.mrb[10].mxu0 }
 0x43f   : > { %v1821_v10 = vadd.f32 1e-05, %v1820_v60  ;;  %v1822_v33 = vpop.f32.mrb[11].mxu0 }
 0x440   : > { %v1823_v26 = vadd.f32 1e-05, %v1822_v33 }
 0x441   : > { %5031 = vrsqrt.f32 %v1821_v10 }
 0x442   : > { %5033 = vrsqrt.f32 %v1823_v26 }
 0x447   : > { %v5028_v5 = vpop.eup %5027 }
 0x448   : > { %v5030_v4 = vpop.eup %5029  ;;  %v1829_v23 = vmul.f32 %v5028_v5, %v6146_v47 }
 0x449   : > { %v1830_v15 = vmul.f32 %v5030_v4, %v6148_v58 }
 0x44a   : > { %v1833_v13 = vmax.f32 %v1829_v23, 0.0 }
 0x44b   : > { %v5032_v39 = vpop.eup %5031  ;;  %v1834_v2 = vmax.f32 %v1830_v15, 0.0 }
 0x44c   : > { %v5034_v51 = vpop.eup %5033  ;;  %v6311_v41 = vadd.f32 %v1833_v13, %v5985_v56  ;;  %v1831_v34 = vmul.f32 %v5032_v39, %v6154_v16 }
 0x44d   : > { %v6315_v44 = vadd.f32 %v1834_v2, %v5884_v19  ;;  %v1832_v26 = vmul.f32 %v5034_v51, %v6156_v27 }
 0x44e   : > { %v1841_v33 = vmul.f32 0.5, %v6311_v41  ;;  %v1835_v60 = vmax.f32 %v1831_v34, 0.0 }
 0x44f   : > { %v1842_v47 = vmul.f32 0.5, %v6315_v44  ;;  %v1836_v58 = vmax.f32 %v1832_v26, 0.0 }
 0x450   : > { %5035 = vtanh.f32 %v1841_v33  ;;  %v6321_v15 = vadd.f32 %v1835_v60, %v5988_v57 }
 0x451   : > { %5037 = vtanh.f32 %v1842_v47  ;;  %v6324_v56 = vadd.f32 %v1836_v58, %v5887_v20  ;;  %v6794_v58 = vcombine.low %v6124_v17, %v6126_v22 }
 0x452   : > { %v1843_v13 = vmul.f32 0.5, %v6321_v15 }
 0x453   : > { %v1844_v19 = vmul.f32 0.5, %v6324_v56 }
 0x454   : > { %5039 = vtanh.f32 %v1843_v13  ;;  %v1949_v13 = vrot.slane %v6794_v58, %v6131_v46 }
 0x455   : > { %5041 = vtanh.f32 %v1844_v19 }
 0x456   : > { %v1957_v19 = vrot.slane %v1949_v13, %v6131_v46  ;;  %v1950_v17 = vcombine.high %v1949_v13, %v1949_v13 }
 0x458   : > { %v1964_v22 = vrot.slane %v1950_v17, %v6131_v46 }
 0x45a   : > { %v5036_v2 = vpop.eup %5035 }
 0x45b   : > { %v5038_v23 = vpop.eup %5037  ;;  %v1849_v16 = vmul.f32 0.5, %v5036_v2 }
 0x45c   : > { %v1850_v27 = vmul.f32 0.5, %v5038_v23 }
 0x45d   : > { %v1853_v39 = vadd.f32 0.5, %v1849_v16  ;;  %v1972_v16 = vrot.slane %v1957_v19, %v6139_v62 }
 0x45e   : > { %v5040_v10 = vpop.eup %5039  ;;  %v1854_v5 = vadd.f32 0.5, %v1850_v27 }
 0x45f   : > { %v5042_v4 = vpop.eup %5041  ;;  %v1857_v57 = vmul.f32 1.442695, %v1853_v39  ;;  %v1851_v51 = vmul.f32 0.5, %v5040_v10 }
 0x460   : > { %v1859_v34 = vmul.f32 1.442695, %v1854_v5  ;;  %v1852_v26 = vmul.f32 0.5, %v5042_v4  ;;  %v1968_v5 = vrot.slane %v1957_v19, %v6135_v53  ;;  %v1980_v4 = vrot.slane %v1964_v22, %v6139_v62 }
 0x461   : > { %v1855_v20 = vadd.f32 0.5, %v1851_v51  ;;  %v6795_v51 = vmov 0.0  }
 0x462   : > { %5043 = vpow2.f32 %v1859_v34  ;;  %v1856_v33 = vadd.f32 0.5, %v1852_v26  ;;  %v1976_v26 = vrot.slane %v1964_v22, %v6135_v53 }
 0x463   : > { %5045 = vpow2.f32 %v1857_v57  ;;  %v1861_v60 = vmul.f32 1.442695, %v1855_v20 }
 0x464   : > { %v1863_v47 = vmul.f32 1.442695, %v1856_v33 }
 0x466   : > { %5047 = vpow2.f32 %v1863_v47 }
 0x467   : > { %5049 = vpow2.f32 %v1861_v60 }
 0x46c   : > { %v5044_v2 = vpop.eup %5043 }
 0x46d   : > { %v5046_v23 = vpop.eup %5045  ;;  %1929 = vmatprep.mubr.f32.mxu1 %v5044_v2  ;;  %v1986_v10 = vmul.f32 %v5044_v2, %v1972_v16 }
 0x46e   : > { %1930 = vmatmul.mubr.f32.vlgmr.msra.gmra.mrb[12].mxu1 %v5046_v23  ;;  %v1985_v57 = vmul.f32 %v5046_v23, %v1968_v5 }
 0x46f   : > { %4362 = vmatpush3.bf16.msra.mxu1 %v6177_v3 }
 0x470   : > { %v5048_v27 = vpop.eup %5047  ;;  %4364 = vmatprep.subr.bf16.mxu1 %v6187_v9 }
 0x471   : > { %v5050_v39 = vpop.eup %5049  ;;  %1934 = vmatprep.mubr.f32.mxu1 %v5048_v27  ;;  %v1988_v34 = vmul.f32 %v5048_v27, %v1980_v4 }
 0x472   : > { %1935 = vmatmul.mubr.f32.gmra.mrb[14].mxu1 %v5050_v39  ;;  %v1987_v20 = vmul.f32 %v5050_v39, %v1976_v26 }
 0x473   : > { %4366 = vmatpush3.bf16.msra.mxu1 %v6195_v29  ;;  %2053 = vmatprep.mubr.f32.mxu1 %v1986_v10 }
 0x474   : > { %4368 = vmatprep.subr.bf16.mxu1 %v6205_v35 }
 0x477   : > { %4370 = vmatpush3.bf16.msra.mxu1 %v6213_v45 }
 0x478   : > { %4372 = vmatprep.subr.bf16.mxu1 %v6223_v11 }
 0x47b   : > { %4374 = vmatpush3.bf16.msra.mxu1 %v6231_v32 }
 0x47c   : > { %4376 = vmatprep.subr.bf16.mxu1 %v6241_v6 }
 0x47f   : > { %4378 = vmatpush3.bf16.msra.mxu1 %v6249_v21 }
 0x480   : > { %4380 = vmatprep.subr.bf16.mxu1 %v6259_v40 }
 0x483   : > { %4382 = vmatpush3.bf16.msra.mxu1 %v6267_v63 }
 0x484   : > { %4384 = vmatprep.subr.bf16.mxu1 %v6277_v38 }
 0x487   : > { %4386 = vmatpush3.bf16.msra.mxu1 %v6285_v50  ;;  %v4897_v50 = vld [vmem:[#allocation11 + $0x44] ss:$16 sps:$4 sm:$0xff]  }
 0x488   : > { %4388 = vmatprep.subr.bf16.mxu1 %v6298_v52 }
 0x48b   : > { %4390 = vmatpush3.bf16.msra.mxu1 %v6303_v28 }
 0x48c   : > { %4191 = vmatprep.subr.bf16.mxu1 %v6795_v51 }
 0x48e   : > { %2054 = vmatmul.mubr.f32.vlgmr.msra.gmra.mrb[16].mxu1 %v1985_v57 }
 0x48f   : > { %2058 = vmatprep.mubr.f32.mxu1 %v1988_v34 }
 0x492   : > { %2059 = vmatmul.mubr.f32.gmra.mrb[18].mxu1 %v1987_v20 }
 0x493   : > { %4195 = vmatprep.mubr.msk.bf16.mxu1 %vm5419_vm0, %v6795_v51 }
 0x541   : > { %v4060_v33 = vpop.f32.mrb[12].mxu1 }
 0x542   : > { %v4061_v60 = vpop.f32.mrb[13].mxu1 }
 0x543   : > { %v4062_v47 = vadd.f32 %v4061_v60, %v4060_v33 }
 0x545   : > { %v4063_v58 = vpop.f32.mrb[14].mxu1  ;;  %5051 = vrcp.f32 %v4062_v47 }
 0x546   : > { %v4064_v13 = vpop.f32.mrb[15].mxu1 }
 0x547   : > { %v4065_v19 = vadd.f32 %v4064_v13, %v4063_v58 }
 0x549   : > { %5053 = vrcp.f32 %v4065_v19 }
 0x54f   : > { %v5052_v27 = vpop.eup %5051 }
 0x553   : > { %v5054_v4 = vpop.eup %5053 }
 0x561   : > { %v4098_v2 = vpop.f32.mrb[16].mxu1 }
 0x562   : > { %v4099_v23 = vpop.f32.mrb[17].mxu1 }
 0x563   : > { %v4100_v16 = vadd.f32 %v4099_v23, %v4098_v2 }
 0x565   : > { %v2066_v10 = vmul.f32 %v5052_v27, %v4100_v16  ;;  %v4101_v17 = vpop.f32.mrb[18].mxu1 }
 0x566   : > { %v4102_v22 = vpop.f32.mrb[19].mxu1 }
 0x567   : > { %v2068_v39 = vmul.f32 0.125, %v2066_v10  ;;  %v4103_v5 = vadd.f32 %v4102_v22, %v4101_v17  ;;  %v4877_v17 = vld [vmem:[#allocation9 + $0x4] ss:$12 sps:$4 sm:$0xff]   ;;  %v4875_v22 = vld [vmem:[#allocation9] ss:$12 sps:$4 sm:$0xff]  }
 0x568   : > { %2147 = vmatprep.subr.bf16.mxu0 %v4877_v17  ;;  %v5092_v17 = vld [vmem:[%s5773_s12] sm:$0xff] }
 0x569   : > { %v2067_v57 = vmul.f32 %v5054_v4, %v4103_v5  ;;  %v2070_v34 = vadd.f32 %v2068_v39, %v5992_v59  ;;  %2148 = vmatpush1.bf16.msra.mxu0 %v4875_v22  ;;  %v4881_v39 = vld [vmem:[#allocation9 + $0x1c] ss:$12 sps:$4 sm:$0xff]   ;;  %v4879_v5 = vld [vmem:[#allocation9 + $0x18] ss:$12 sps:$4 sm:$0xff]   ;;  %v4882_v4 = vld [vmem:[#allocation9 + $0x20] ss:$12 sps:$4 sm:$0xff]  }
 0x56a   : > { %2149 = vmatprep.subr.bf16.mxu0 %v4881_v39 }
 0x56b   : > { %v2069_v26 = vmul.f32 0.125, %v2067_v57  ;;  %v2072_v20 = vsel %vm675_vm5, %v2070_v34, 0.0  ;;  %v4885_v57 = vld [vmem:[#allocation11 + $0x4] ss:$16 sps:$4 sm:$0xff]  }
 0x56c   : > { %2073 = vadd.xlane.f32.xlu1 %v2072_v20 }
 0x56d   : > { %v2071_v33 = vadd.f32 %v2069_v26, %v5994_v61  ;;  %v4878_v61 = vld [vmem:[#allocation9 + $0x8] ss:$12 sps:$4 sm:$0xff]   ;;  %2150 = vmatpush1.bf16.msra.mxu0 %v4879_v5 }
 0x56e   : > { %4192 = vmatpush3.bf16.msra.mxu1 %v4878_v61  ;;  %2749 = vmatprep.subr.bf16.mxu0 %v4885_v57 }
 0x56f   : > { %v2075_v60 = vsel %vm675_vm5, %v2071_v33, 0.0  ;;  %4193 = vmatprep.subr.bf16.mxu1 %v6795_v51 }
 0x570   : > { %2076 = vadd.xlane.f32.xlu0 %v2075_v60 }
 0x572   : > { %4194 = vmatpush3.bf16.msra.mxu1 %v4882_v4 }
 0x5f9   : > { %v2074_v47 = vpop.xlane.xlu1 %2073 }
 0x5fa   : > { %v2079_v58 = vmul.f32 0.03125, %v2074_v47 }
 0x5fc   : > { %v2081_v2 = vsub.f32 %v2070_v34, %v2079_v58  ;;  %v4888_v34 = vld [vmem:[#allocation11 + $0xc] ss:$16 sps:$4 sm:$0xff]  }
 0x5fd   : > { %v2077_v13 = vpop.xlane.xlu0 %2076  ;;  %2790 = vmatprep.subr.bf16.mxu1 %v4888_v34  ;;  %v4886_v34 = vld [vmem:[#allocation11 + $0x8] ss:$16 sps:$4 sm:$0xff]  }
 0x5fe   : > { %v2080_v19 = vmul.f32 0.03125, %v2077_v13  ;;  %v2083_v10 = vmul.f32 %v2081_v2, %v2081_v2 }
 0x600   : > { %v2082_v23 = vsub.f32 %v2071_v33, %v2080_v19  ;;  %v2085_v59 = vsel %vm675_vm5, %v2083_v10, 0.0  ;;  %v5091_v19 = vld [vmem:[%s5773_s12 + $0x8] sm:$0xff]  ;;  %s6798_s12 = smov 32  }
 0x602   : > { %v2084_v16 = vmul.f32 %v2082_v23, %v2082_v23 }
 0x604   : > { %v2088_v27 = vsel %vm675_vm5, %v2084_v16, 0.0 }
 0x605   : > { %2089 = vadd.xlane.f32.xlu0 %v2088_v27 }
 0x609   : > { %2086 = vadd.xlane.f32.xlu0 %v2085_v59 }
 0x692   : > { %v2090_v26 = vpop.xlane.xlu0 %2089 }
 0x693   : > { %v2092_v20 = vmul.f32 0.03125, %v2090_v26 }
 0x695   : > { %v2094_v33 = vadd.f32 1e-05, %v2092_v20 }
 0x696   : > { %v2087_v60 = vpop.xlane.xlu0 %2086 }
 0x697   : > { %5055 = vrsqrt.f32 %v2094_v33  ;;  %v2091_v47 = vmul.f32 0.03125, %v2087_v60  ;;  %v4891_v60 = vld [vmem:[#allocation11 + $0x24] ss:$16 sps:$4 sm:$0xff]  }
 0x699   : > { %v2093_v58 = vadd.f32 1e-05, %v2091_v47  ;;  %v4894_v47 = vld [vmem:[#allocation11 + $0x2c] ss:$16 sps:$4 sm:$0xff]  }
 0x69b   : > { %5057 = vrsqrt.f32 %v2093_v58 }
 0x6a1   : > { %v5056_v51 = vpop.eup %5055 }
 0x6a2   : > { %v2098_v13 = vmul.f32 %v5056_v51, %v2082_v23  ;;  %v4883_v23 = vld [vmem:[#allocation11] ss:$16 sps:$4 sm:$0xff]  }
 0x6a4   : > { %v2100_v16 = vadd.f32 %v5091_v19, %v2098_v13 }
 0x6a5   : > { %v5058_v27 = vpop.eup %5057 }
 0x6a6   : > { %v6364_v10 = vmax.f32 %v2100_v16, 0.0  ;;  %v2097_v59 = vmul.f32 %v5058_v27, %v2081_v2 }
 0x6a8   : > { %6796 = vst [vmem:[#allocation43_spill] sm:$0xff] %v6364_v10  ;;  %v2099_v22 = vadd.f32 %v5092_v17, %v2097_v59  ;;  %v2246_v61 = vrot.slane %v6364_v10, %v5798_v7  ;;  %v2299_v39 = vcombine.high %v6364_v10, %v6364_v10 }
 0x6aa   : > { %v6371_v5 = vmax.f32 %v2099_v22, 0.0  ;;  %v2306_v4 = vrot.slane %v2299_v39, %v5798_v7  ;;  %v6374_v57 = vcombine.high %v2246_v61, %v2246_v61  ;;  %v2249_v20 = vrot.slane %v2246_v61, 7  ;;  %v4889_v22 = vld [vmem:[#allocation11 + $0x20] ss:$16 sps:$4 sm:$0xff]  }
 0x6ac   : > { %6797 = vst [vmem:[#allocation44_spill] sm:$0xff] %v6371_v5  ;;  %v2103_v26 = vpack.c.bf16 %v6364_v10, %v6371_v5  ;;  %v2239_v2 = vrot.slane %v6371_v5, %v5798_v7  ;;  %v2291_v33 = vcombine.high %v6371_v5, %v6371_v5  ;;  %v2271_v58 = vrot.slane %v6374_v57, 7 }
 0x6ad   : > { %v6383_v51 = vcombine.high %v2306_v4, %v2306_v4  ;;  %v2309_v59 = vrot.slane %v2306_v4, 7 }
 0x6ae   : > { %3912 = vmatmul.mubr.msk.bf16.vlgmr.msra.gmra.mrb[12].mxu0 %vm675_vm5, %v2103_v26  ;;  %4196 = vmatmul.mubr.msk.bf16.vlgmr.msra.gmra.mrb[20].mxu1 %vm675_vm5, %v2103_v26  ;;  %v2256_v13 = vrot.slane %v2239_v2, 1  ;;  %v2250_v19 = vsel %vm784_vm1, %v2249_v20, %v2239_v2  ;;  %v2298_v16 = vrot.slane %v2291_v33, %v5798_v7  ;;  %v2267_v27 = vcombine.high %v2239_v2, %v2239_v2  ;;  %v4892_v26 = vld [vmem:[#allocation11 + $0x28] ss:$16 sps:$4 sm:$0xff]  }
 0x6af   : > { %v6390_v17 = vrot.slane %v6383_v51, 7  ;;  %2750 = vmatpush1.bf16.msra.mxu0 %v4883_v23  ;;  %2791 = vmatpush1.bf16.msra.mxu1 %v4886_v34  ;;  %v2251_v28 = vsel %vm786_vm2, %v2249_v20, %v2250_v19  ;;  %v4900_v23 = vld [vmem:[#allocation11 + $0x4c] ss:$16 sps:$4 sm:$0xff]  }
 0x6b0   : > { %v2259_v39 = vsel %vm784_vm1, %v2246_v61, %v2256_v13  ;;  %v2316_v10 = vrot.slane %v2298_v16, 1  ;;  %v2272_v5 = vsel %vm784_vm1, %v2271_v58, %v2267_v27  ;;  %2751 = vmatprep.subr.bf16.mxu0 %v4891_v60  ;;  %2792 = vmatprep.subr.bf16.mxu1 %v4894_v47  ;;  %v2280_v33 = vrot.slane %v2267_v27, 1 }
 0x6b1   : > { %v2260_v7 = vsel %vm786_vm2, %v2246_v61, %v2259_v39  ;;  %v2273_v2 = vsel %vm786_vm2, %v2271_v58, %v2272_v5  ;;  %v2327_v52 = vcombine.high %v2298_v16, %v2298_v16  ;;  %v2310_v38 = vsel %vm784_vm1, %v2309_v59, %v2298_v16  ;;  %v4895_v5 = vld [vmem:[#allocation11 + $0x40] ss:$16 sps:$4 sm:$0xff]  }
 0x6b2   : > { %v2261_v34 = vsel %vm788_vm3, %v2246_v61, %v2260_v7  ;;  %v2319_v13 = vsel %vm784_vm1, %v2306_v4, %v2316_v10  ;;  %v2274_v60 = vsel %vm788_vm3, %v2271_v58, %v2273_v2  ;;  %v2283_v39 = vsel %vm784_vm1, %v6374_v57, %v2280_v33  ;;  %v4898_v2 = vld [vmem:[#allocation11 + $0x48] ss:$16 sps:$4 sm:$0xff]   ;;  %v4906_v33 = vld [vmem:[#allocation11 + $0x6c] ss:$16 sps:$4 sm:$0xff]  }
 0x6b3   : > { %v2262_v47 = vsel %vm790_vm4, %v2246_v61, %v2261_v34  ;;  %v2320_v19 = vsel %vm786_vm2, %v2306_v4, %v2319_v13  ;;  %2752 = vmatpush1.bf16.msra.mxu0 %v4889_v22  ;;  %v2252_v27 = vsel %vm788_vm3, %v2249_v20, %v2251_v28  ;;  %v2284_v10 = vsel %vm786_vm2, %v6374_v57, %v2283_v39  ;;  %v4903_v28 = vld [vmem:[#allocation11 + $0x64] ss:$16 sps:$4 sm:$0xff]  }
 0x6b4   : > { %2263 = vrot.lane.b32.xlu1 %v2262_v47, %s6798_s12  ;;  %v2321_v7 = vsel %vm788_vm3, %v2306_v4, %v2320_v19  ;;  %v2332_v16 = vsel %vm784_vm1, %v6390_v17, %v2327_v52  ;;  %v2340_v61 = vrot.slane %v2327_v52, 1  ;;  %2793 = vmatpush1.bf16.msra.mxu1 %v4892_v26  ;;  %v2285_v13 = vsel %vm788_vm3, %v6374_v57, %v2284_v10  ;;  %v4904_v19 = vld [vmem:[#allocation11 + $0x68] ss:$16 sps:$4 sm:$0xff]  }
 0x6b5   : > { %v2322_v34 = vsel %vm790_vm4, %v2306_v4, %v2321_v7  ;;  %v2333_v22 = vsel %vm786_vm2, %v6390_v17, %v2332_v16  ;;  %2753 = vmatprep.subr.bf16.mxu0 %v4897_v50  ;;  %2794 = vmatprep.subr.bf16.mxu1 %v4900_v23  ;;  %v2253_v52 = vsel %vm790_vm4, %v2249_v20, %v2252_v27  ;;  %v4901_v4 = vld [vmem:[#allocation11 + $0x60] ss:$16 sps:$4 sm:$0xff]   ;;  %v4910_v10 = vld [vmem:[#allocation11 + $0x88] ss:$16 sps:$4 sm:$0xff]   ;;  %v4915_v16 = vld [vmem:[#allocation11 + $0xa4] ss:$16 sps:$4 sm:$0xff]  }
 0x6b6   : > { %2323 = vrot.lane.b32.xlu0 %v2322_v34, %s6798_s12  ;;  %v2343_v47 = vsel %vm784_vm1, %v6383_v51, %v2340_v61  ;;  %v2275_v26 = vsel %vm790_vm4, %v2271_v58, %v2274_v60  ;;  %2255 = vst.msk [vmem:[#allocation2] sm:$0x3] %vm793_vm6, %v2253_v52  ;;  %v2311_v50 = vsel %vm786_vm2, %v2309_v59, %v2310_v38  ;;  %v4909_v60 = vld [vmem:[#allocation11 + $0x84] ss:$16 sps:$4 sm:$0xff]   ;;  %v4907_v7 = vld [vmem:[#allocation11 + $0x80] ss:$16 sps:$4 sm:$0xff]  }
 0x6b7   : > { %2754 = vmatpush1.bf16.msra.mxu0 %v4895_v5  ;;  %v2334_v23 = vsel %vm788_vm3, %v6390_v17, %v2333_v22  ;;  %v2312_v39 = vsel %vm788_vm3, %v2309_v59, %v2311_v50  ;;  %v2286_v20 = vsel %vm790_vm4, %v6374_v57, %v2285_v13  ;;  %v2344_v58 = vsel %vm786_vm2, %v6383_v51, %v2343_v47  ;;  %v4912_v5 = vld [vmem:[#allocation11 + $0x8c] ss:$16 sps:$4 sm:$0xff]   ;;  %v4921_v34 = vld [vmem:[#allocation11 + $0xc4] ss:$16 sps:$4 sm:$0xff]   ;;  %v4928_v52 = vld [vmem:[#allocation11 + $0xe8] ss:$16 sps:$4 sm:$0xff]  }
 0x6b8   : > { %2276 = vrot.lane.b32.xlu1 %v2275_v26, %s6799_s27  ;;  %2795 = vmatpush1.bf16.msra.mxu1 %v4898_v2  ;;  %v2313_v38 = vsel %vm790_vm4, %v2309_v59, %v2312_v39  ;;  %v2335_v27 = vsel %vm790_vm4, %v6390_v17, %v2334_v23  ;;  %v2345_v57 = vsel %vm788_vm3, %v6383_v51, %v2344_v58  ;;  %v4918_v59 = vld [vmem:[#allocation11 + $0xac] ss:$16 sps:$4 sm:$0xff]   ;;  %v4913_v2 = vld [vmem:[#allocation11 + $0xa0] ss:$16 sps:$4 sm:$0xff]   ;;  %v4916_v17 = vld [vmem:[#allocation11 + $0xa8] ss:$16 sps:$4 sm:$0xff]  }
 0x6b9   : > { %2755 = vmatprep.subr.bf16.mxu0 %v4903_v28  ;;  %2796 = vmatprep.subr.bf16.mxu1 %v4906_v33  ;;  %2315 = vst.msk [vmem:[#allocation2 + $0x2] sm:$0x3] %vm793_vm6, %v2313_v38  ;;  %v2346_v61 = vsel %vm790_vm4, %v6383_v51, %v2345_v57  ;;  %v4924_v22 = vld [vmem:[#allocation11 + $0xcc] ss:$16 sps:$4 sm:$0xff]   ;;  %v4919_v28 = vld [vmem:[#allocation11 + $0xc0] ss:$16 sps:$4 sm:$0xff]  }
 0x6ba   : > { %2287 = vrot.lane.b32.xlu0 %v2286_v20, %s6800_s14  ;;  %v4922_v33 = vld [vmem:[#allocation11 + $0xc8] ss:$16 sps:$4 sm:$0xff]   ;;  %v4927_v13 = vld [vmem:[#allocation11 + $0xe4] ss:$16 sps:$4 sm:$0xff]   ;;  %v4930_v47 = vld [vmem:[#allocation11 + $0xec] ss:$16 sps:$4 sm:$0xff]  }
 0x6bb   : > { %2756 = vmatpush1.bf16.msra.mxu0 %v4901_v4  ;;  %v4925_v51 = vld [vmem:[#allocation11 + $0xe0] ss:$16 sps:$4 sm:$0xff]   ;;  %v4933_v26 = vld [vmem:[#allocation11 + $0x104] ss:$16 sps:$4 sm:$0xff]   ;;  %v4936_v4 = vld [vmem:[#allocation11 + $0x10c] ss:$16 sps:$4 sm:$0xff]  }
 0x6bc   : > { %2336 = vrot.lane.b32.xlu1 %v2335_v27, %s6799_s27  ;;  %2797 = vmatpush1.bf16.msra.mxu1 %v4904_v19  ;;  %v4931_v50 = vld [vmem:[#allocation11 + $0x100] ss:$16 sps:$4 sm:$0xff]   ;;  %v4934_v23 = vld [vmem:[#allocation11 + $0x108] ss:$16 sps:$4 sm:$0xff]   ;;  %v4939_v19 = vld [vmem:[#allocation11 + $0x124] ss:$16 sps:$4 sm:$0xff]  }
 0x6bd   : > { %2757 = vmatprep.subr.bf16.mxu0 %v4909_v60  ;;  %2798 = vmatprep.subr.bf16.mxu1 %v4912_v5  ;;  %v4942_v39 = vld [vmem:[#allocation11 + $0x12c] ss:$16 sps:$4 sm:$0xff]   ;;  %v4937_v20 = vld [vmem:[#allocation11 + $0x120] ss:$16 sps:$4 sm:$0xff]   ;;  %v4940_v58 = vld [vmem:[#allocation11 + $0x128] ss:$16 sps:$4 sm:$0xff]  }
 0x6be   : > { %v4945_v60 = vld [vmem:[#allocation11 + $0x144] ss:$16 sps:$4 sm:$0xff]   ;;  %v4948_v5 = vld [vmem:[#allocation11 + $0x14c] ss:$16 sps:$4 sm:$0xff]   ;;  %v4943_v38 = vld [vmem:[#allocation11 + $0x140] ss:$16 sps:$4 sm:$0xff]  }
 0x6bf   : > { %2758 = vmatpush1.bf16.msra.mxu0 %v4907_v7  ;;  %v4946_v27 = vld [vmem:[#allocation11 + $0x148] ss:$16 sps:$4 sm:$0xff]   ;;  %v4951_v7 = vld [vmem:[#allocation11 + $0x164] ss:$16 sps:$4 sm:$0xff]   ;;  %v4954_v57 = vld [vmem:[#allocation11 + $0x16c] ss:$16 sps:$4 sm:$0xff]  }
 0x6c0   : > { %2347 = vrot.lane.b32.xlu1 %v2346_v61, %s6800_s14  ;;  %2799 = vmatpush1.bf16.msra.mxu1 %v4910_v10  ;;  %v4949_v10 = vld [vmem:[#allocation11 + $0x160] ss:$16 sps:$4 sm:$0xff]   ;;  %v4960_v61 = vld [vmem:[#allocation11 + $0x18c] ss:$16 sps:$4 sm:$0xff]   ;;  %s5291_s27 = scalar_lea.vmem %s6600_s15, 512  ;;  %s5424_s14 = smov [#allocation16]  }
 0x6c1   : > { %2759 = vmatprep.subr.bf16.mxu0 %v4915_v16  ;;  %2800 = vmatprep.subr.bf16.mxu1 %v4918_v59  ;;  %v4952_v16 = vld [vmem:[#allocation11 + $0x168] ss:$16 sps:$4 sm:$0xff]   ;;  %v4957_v59 = vld [vmem:[#allocation11 + $0x184] ss:$16 sps:$4 sm:$0xff]   ;;  %p5292_p9 = scmp.ne.s32.totalorder %s6600_s15, %s5291_s27  ;;  %s5295_s9 = sshll.u32 %s5424_s14, 4  ;;  %s5296_s9 = int_to_ptr.vmem [resolvable:$false] %s5295_s9 }
 0x6c2   : > { %p5298_p0 = scmp.lt.s32.totalorder %s6600_s15, %s5296_s9 }
 0x6c3   : > { %2760 = vmatpush1.bf16.msra.mxu0 %v4913_v2  ;;  %v4955_v2 = vld [vmem:[#allocation11 + $0x180] ss:$16 sps:$4 sm:$0xff]   ;;  %p5293_p1 = pnand %p5292_p9, %p6821_p12 }
 0x6c4   : > { %2801 = vmatpush1.bf16.msra.mxu1 %v4916_v17  ;;  %2761 = vmatprep.subr.bf16.mxu0 %v4921_v34  ;;  %v4958_v17 = vld [vmem:[#allocation11 + $0x188] ss:$16 sps:$4 sm:$0xff]   ;;  %v4963_v34 = vld [vmem:[#allocation11 + $0x1a4] ss:$16 sps:$4 sm:$0xff]  }
 0x6c5   : > { %2802 = vmatprep.subr.bf16.mxu1 %v4924_v22  ;;  %v4966_v22 = vld [vmem:[#allocation11 + $0x1ac] ss:$16 sps:$4 sm:$0xff]   ;;  %p5294_p13 = pneg %p5293_p1 }
 0x6c7   : > { %2762 = vmatpush1.bf16.msra.mxu0 %v4919_v28  ;;  %v4961_v28 = vld [vmem:[#allocation11 + $0x1a0] ss:$16 sps:$4 sm:$0xff]  }
 0x6c8   : > { %2803 = vmatpush1.bf16.msra.mxu1 %v4922_v33  ;;  %2763 = vmatprep.subr.bf16.mxu0 %v4927_v13  ;;  %v4964_v33 = vld [vmem:[#allocation11 + $0x1a8] ss:$16 sps:$4 sm:$0xff]   ;;  %v4969_v13 = vld [vmem:[#allocation11 + $0x1c4] ss:$16 sps:$4 sm:$0xff]  }
 0x6c9   : > { %2804 = vmatprep.subr.bf16.mxu1 %v4930_v47  ;;  %v4972_v47 = vld [vmem:[#allocation11 + $0x1cc] ss:$16 sps:$4 sm:$0xff]  }
 0x6cb   : > { %2764 = vmatpush1.bf16.msra.mxu0 %v4925_v51  ;;  %v4967_v51 = vld [vmem:[#allocation11 + $0x1c0] ss:$16 sps:$4 sm:$0xff]  }
 0x6cc   : > { %2805 = vmatpush1.bf16.msra.mxu1 %v4928_v52  ;;  %2765 = vmatprep.subr.bf16.mxu0 %v4933_v26  ;;  %v4970_v52 = vld [vmem:[#allocation11 + $0x1c8] ss:$16 sps:$4 sm:$0xff]   ;;  %v4975_v26 = vld [vmem:[#allocation11 + $0x1e4] ss:$16 sps:$4 sm:$0xff]  }
 0x6cd   : > { %2806 = vmatprep.subr.bf16.mxu1 %v4936_v4  ;;  %v4978_v4 = vld [vmem:[#allocation11 + $0x1ec] ss:$16 sps:$4 sm:$0xff]  }
 0x6cf   : > { %2766 = vmatpush1.bf16.msra.mxu0 %v4931_v50  ;;  %v4973_v50 = vld [vmem:[#allocation11 + $0x1e0] ss:$16 sps:$4 sm:$0xff]  }
 0x6d0   : > { %2807 = vmatpush1.bf16.msra.mxu1 %v4934_v23  ;;  %2767 = vmatprep.subr.bf16.mxu0 %v4939_v19  ;;  %v4976_v23 = vld [vmem:[#allocation11 + $0x1e8] ss:$16 sps:$4 sm:$0xff]   ;;  %v4981_v19 = vld [vmem:[#allocation12 + $0x4] ss:$8 sps:$4 sm:$0xff]  }
 0x6d1   : > { %2808 = vmatprep.subr.bf16.mxu1 %v4942_v39 }
 0x6d3   : > { %2768 = vmatpush1.bf16.msra.mxu0 %v4937_v20 }
 0x6d4   : > { %2809 = vmatpush1.bf16.msra.mxu1 %v4940_v58  ;;  %2769 = vmatprep.subr.bf16.mxu0 %v4945_v60 }
 0x6d5   : > { %2810 = vmatprep.subr.bf16.mxu1 %v4948_v5 }
 0x6d7   : > { %2770 = vmatpush1.bf16.msra.mxu0 %v4943_v38 }
 0x6d8   : > { %2811 = vmatpush1.bf16.msra.mxu1 %v4946_v27  ;;  %2771 = vmatprep.subr.bf16.mxu0 %v4951_v7 }
 0x6d9   : > { %2812 = vmatprep.subr.bf16.mxu1 %v4954_v57 }
 0x6db   : > { %2772 = vmatpush1.bf16.msra.mxu0 %v4949_v10  ;;  %v4979_v10 = vld [vmem:[#allocation12] ss:$8 sps:$4 sm:$0xff]  }
 0x6dc   : > { %2813 = vmatpush1.bf16.msra.mxu1 %v4952_v16  ;;  %2773 = vmatprep.subr.bf16.mxu0 %v4957_v59  ;;  %v4984_v59 = vld [vmem:[#allocation12 + $0x14] ss:$8 sps:$4 sm:$0xff]  }
 0x6dd   : > { %2814 = vmatprep.subr.bf16.mxu1 %v4960_v61  ;;  %v2832_v61 = vpack.c.bf16 %v6324_v56, %v6315_v44 }
 0x6df   : > { %2774 = vmatpush1.bf16.msra.mxu0 %v4955_v2  ;;  %v4982_v2 = vld [vmem:[#allocation12 + $0x10] ss:$8 sps:$4 sm:$0xff]  }
 0x6e0   : > { %2815 = vmatpush1.bf16.msra.mxu1 %v4958_v17  ;;  %2775 = vmatprep.subr.bf16.mxu0 %v4963_v34  ;;  %v4987_v17 = vld [vmem:[#allocation12 + $0x24] ss:$8 sps:$4 sm:$0xff]   ;;  %v4985_v34 = vld [vmem:[#allocation12 + $0x20] ss:$8 sps:$4 sm:$0xff]  }
 0x6e1   : > { %2816 = vmatprep.subr.bf16.mxu1 %v4966_v22  ;;  %v4990_v22 = vld [vmem:[#allocation12 + $0x34] ss:$8 sps:$4 sm:$0xff]  }
 0x6e3   : > { %2776 = vmatpush1.bf16.msra.mxu0 %v4961_v28  ;;  %v4988_v28 = vld [vmem:[#allocation12 + $0x30] ss:$8 sps:$4 sm:$0xff]  }
 0x6e4   : > { %2817 = vmatpush1.bf16.msra.mxu1 %v4964_v33  ;;  %2777 = vmatprep.subr.bf16.mxu0 %v4969_v13  ;;  %v4993_v33 = vld [vmem:[#allocation12 + $0x44] ss:$8 sps:$4 sm:$0xff]   ;;  %v4991_v13 = vld [vmem:[#allocation12 + $0x40] ss:$8 sps:$4 sm:$0xff]  }
 0x6e5   : > { %2818 = vmatprep.subr.bf16.mxu1 %v4972_v47  ;;  %v4996_v47 = vld [vmem:[#allocation12 + $0x54] ss:$8 sps:$4 sm:$0xff]  }
 0x6e7   : > { %2778 = vmatpush1.bf16.msra.mxu0 %v4967_v51  ;;  %v4994_v51 = vld [vmem:[#allocation12 + $0x50] ss:$8 sps:$4 sm:$0xff]  }
 0x6e8   : > { %2819 = vmatpush1.bf16.msra.mxu1 %v4970_v52  ;;  %2779 = vmatprep.subr.bf16.mxu0 %v4975_v26  ;;  %v4999_v52 = vld [vmem:[#allocation12 + $0x64] ss:$8 sps:$4 sm:$0xff]   ;;  %v4997_v26 = vld [vmem:[#allocation12 + $0x60] ss:$8 sps:$4 sm:$0xff]  }
 0x6e9   : > { %2820 = vmatprep.subr.bf16.mxu1 %v4978_v4  ;;  %v5002_v4 = vld [vmem:[#allocation12 + $0x74] ss:$8 sps:$4 sm:$0xff]  }
 0x6eb   : > { %2780 = vmatpush1.bf16.msra.mxu0 %v4973_v50  ;;  %v5000_v50 = vld [vmem:[#allocation12 + $0x70] ss:$8 sps:$4 sm:$0xff]  }
 0x6ec   : > { %2821 = vmatpush1.bf16.msra.mxu1 %v4976_v23  ;;  %3025 = vmatprep.subr.bf16.mxu0 %v4981_v19  ;;  %v5005_v23 = vld [vmem:[#allocation12 + $0x84] ss:$8 sps:$4 sm:$0xff]   ;;  %v5003_v19 = vld [vmem:[#allocation12 + $0x80] ss:$8 sps:$4 sm:$0xff]  }
 0x6ed   : > { %4392 = vmatprep.subr.bf16.mxu1 %v5996_v1 }
 0x726   : > { %v2264_v39 = vpop.permute.xlu1 %2263 }
 0x727   : > { %2266 = vst.msk [vmem:[#allocation2] sm:$0x3] %vm805_vm7, %v2264_v39  ;;  %v5008_v39 = vld [vmem:[#allocation12 + $0x94] ss:$8 sps:$4 sm:$0xff]  }
 0x728   : > { %v2324_v20 = vpop.permute.xlu0 %2323 }
 0x729   : > { %2326 = vst.msk [vmem:[#allocation2 + $0x2] sm:$0x3] %vm805_vm7, %v2324_v20  ;;  %v5006_v20 = vld [vmem:[#allocation12 + $0x90] ss:$8 sps:$4 sm:$0xff]  }
 0x72a   : > { %v2277_v58 = vpop.permute.xlu1 %2276 }
 0x72b   : > { %2279 = vst.msk [vmem:[#allocation2] sm:$0x3] %vm819_vm8, %v2277_v58  ;;  %v5011_v58 = vld [vmem:[#allocation12 + $0xa4] ss:$8 sps:$4 sm:$0xff]  }
 0x72c   : > { %v2288_v60 = vpop.permute.xlu0 %2287 }
 0x72d   : > { %2290 = vst.msk [vmem:[#allocation2] sm:$0x3] %vm831_vm9, %v2288_v60  ;;  %v6801_v60 = vld [vmem:[#allocation24_spill] sm:$0xff] }
 0x72e   : > { %v2337_v5 = vpop.permute.xlu1 %2336 }
 0x72f   : > { %2339 = vst.msk [vmem:[#allocation2 + $0x2] sm:$0x3] %vm819_vm8, %v2337_v5  ;;  %v5009_v5 = vld [vmem:[#allocation12 + $0xa0] ss:$8 sps:$4 sm:$0xff]  }
 0x732   : > { %v2348_v38 = vpop.permute.xlu1 %2347 }
 0x733   : > { %2350 = vst.msk [vmem:[#allocation2 + $0x2] sm:$0x3] %vm831_vm9, %v2348_v38  ;;  %v5014_v38 = vld [vmem:[#allocation12 + $0xb4] ss:$8 sps:$4 sm:$0xff]  }
 0x73a   : > { %v3914_v27 = vld.sshfl [vmem:[#allocation2] sm:$0x33 pattern:$0x76325410] }
 0x73b   : > { %v2360_v7 = vcombine.high %v3914_v27, %v3914_v27  ;;  %v2363_v16 = vpack.c.bf16 %v3914_v27, %v3914_v27  ;;  %v6802_v27 = vld [vmem:[#allocation25_spill] sm:$0xff] }
 0x73d   : > { %v2364_v57 = vpack.c.bf16 %v2360_v7, %v2360_v7  ;;  %v6803_v7 = vld [vmem:[#allocation26_spill] sm:$0xff] }
 0x73f   : > { %2781 = vmatprep.mubr.bf16.mxu0 %v2364_v57  ;;  %2822 = vmatprep.mubr.bf16.mxu1 %v2364_v57  ;;  %v5012_v57 = vld [vmem:[#allocation12 + $0xb0] ss:$8 sps:$4 sm:$0xff]  }
 0x740   : > { %2782 = vmatmul.mubr.bf16.vlgmr.msra.gmra.mrb[16].mxu0 %v2363_v16  ;;  %2823 = vmatmul.mubr.bf16.vlgmr.msra.gmra.mrb[24].mxu1 %v2363_v16  ;;  %v6804_v16 = vld [vmem:[#allocation27_spill] sm:$0xff] }
 0x741   : > { %3026 = vmatpush1.bf16.msra.mxu0 %v4979_v10  ;;  %3057 = vmatprep.mubr.bf16.mxu0 %v2832_v61  ;;  %v5017_v10 = vld [vmem:[#allocation12 + $0xc4] ss:$8 sps:$4 sm:$0xff]   ;;  %v5015_v61 = vld [vmem:[#allocation12 + $0xc0] ss:$8 sps:$4 sm:$0xff]  }
 0x742   : > { %3027 = vmatprep.subr.bf16.mxu0 %v4984_v59  ;;  %4394 = vmatpush1.bf16.msra.mxu1 %v5998_v8  ;;  %v6805_v59 = vld [vmem:[#allocation28_spill] sm:$0xff] }
 0x743   : > { %4396 = vmatprep.subr.bf16.mxu1 %v6004_v12 }
 0x745   : > { %3028 = vmatpush1.bf16.msra.mxu0 %v4982_v2  ;;  %v5020_v2 = vld [vmem:[#allocation12 + $0xd4] ss:$8 sps:$4 sm:$0xff]  }
 0x746   : > { %3029 = vmatprep.subr.bf16.mxu0 %v4987_v17  ;;  %4398 = vmatpush1.bf16.msra.mxu1 %v6006_v14  ;;  %v6806_v17 = vld [vmem:[#allocation29_spill] sm:$0xff] }
 0x747   : > { %4400 = vmatprep.subr.bf16.mxu1 %v6009_v18 }
 0x749   : > { %3030 = vmatpush1.bf16.msra.mxu0 %v4985_v34  ;;  %v6807_v34 = vld [vmem:[#allocation30_spill] sm:$0xff] }
 0x74a   : > { %3031 = vmatprep.subr.bf16.mxu0 %v4990_v22  ;;  %4402 = vmatpush1.bf16.msra.mxu1 %v6013_v24  ;;  %v5018_v22 = vld [vmem:[#allocation12 + $0xd0] ss:$8 sps:$4 sm:$0xff]  }
 0x74b   : > { %4404 = vmatprep.subr.bf16.mxu1 %v6017_v25 }
 0x74d   : > { %3032 = vmatpush1.bf16.msra.mxu0 %v4988_v28  ;;  %v5023_v28 = vld [vmem:[#allocation12 + $0xe4] ss:$8 sps:$4 sm:$0xff]  }
 0x74e   : > { %3033 = vmatprep.subr.bf16.mxu0 %v4993_v33  ;;  %4406 = vmatpush1.bf16.msra.mxu1 %v6021_v30  ;;  %v6808_v33 = vld [vmem:[#allocation31_spill] sm:$0xff] }
 0x74f   : > { %4408 = vmatprep.subr.bf16.mxu1 %v6025_v31 }
 0x751   : > { %3034 = vmatpush1.bf16.msra.mxu0 %v4991_v13  ;;  %v6809_v13 = vld [vmem:[#allocation32_spill] sm:$0xff] }
 0x752   : > { %3035 = vmatprep.subr.bf16.mxu0 %v4996_v47  ;;  %4410 = vmatpush1.bf16.msra.mxu1 %v6029_v36  ;;  %v5021_v47 = vld [vmem:[#allocation12 + $0xe0] ss:$8 sps:$4 sm:$0xff]  }
 0x753   : > { %4412 = vmatprep.subr.bf16.mxu1 %v6033_v37 }
 0x755   : > { %3036 = vmatpush1.bf16.msra.mxu0 %v4994_v51  ;;  %v5026_v51 = vld [vmem:[#allocation12 + $0xf4] ss:$8 sps:$4 sm:$0xff]  }
 0x756   : > { %3037 = vmatprep.subr.bf16.mxu0 %v4999_v52  ;;  %4414 = vmatpush1.bf16.msra.mxu1 %v6037_v42  ;;  %v6810_v52 = vld [vmem:[#allocation33_spill] sm:$0xff] }
 0x757   : > { %4416 = vmatprep.subr.bf16.mxu1 %v6041_v43 }
 0x759   : > { %3038 = vmatpush1.bf16.msra.mxu0 %v4997_v26  ;;  %v6811_v26 = vld [vmem:[#allocation34_spill] sm:$0xff] }
 0x75a   : > { %3039 = vmatprep.subr.bf16.mxu0 %v5002_v4  ;;  %4418 = vmatpush1.bf16.msra.mxu1 %v6045_v48  ;;  %v5024_v4 = vld [vmem:[#allocation12 + $0xf0] ss:$8 sps:$4 sm:$0xff]  }
 0x75b   : > { %4420 = vmatprep.subr.bf16.mxu1 %v6049_v49 }
 0x75d   : > { %3040 = vmatpush1.bf16.msra.mxu0 %v5000_v50  ;;  %v6812_v50 = vld [vmem:[#allocation35_spill] sm:$0xff] }
 0x75e   : > { %3041 = vmatprep.subr.bf16.mxu0 %v5005_v23  ;;  %4422 = vmatpush1.bf16.msra.mxu1 %v6053_v54  ;;  %v6813_v23 = vld [vmem:[#allocation36_spill] sm:$0xff] }
 0x75f   : > { %4424 = vmatprep.subr.bf16.mxu1 %v6057_v55 }
 0x761   : > { %3042 = vmatpush1.bf16.msra.mxu0 %v5003_v19  ;;  %v2831_v19 = vpack.c.bf16 %v6321_v15, %v6311_v41 }
 0x762   : > { %3043 = vmatprep.subr.bf16.mxu0 %v5008_v39  ;;  %4426 = vmatpush1.bf16.msra.mxu1 %v6061_v0  ;;  %v6814_v39 = vld [vmem:[#allocation37_spill] sm:$0xff] }
 0x763   : > { %4428 = vmatprep.subr.bf16.mxu1 %v6801_v60 }
 0x765   : > { %3044 = vmatpush1.bf16.msra.mxu0 %v5006_v20  ;;  %v6815_v20 = vld [vmem:[#allocation38_spill] sm:$0xff] }
 0x766   : > { %3045 = vmatprep.subr.bf16.mxu0 %v5011_v58  ;;  %4430 = vmatpush1.bf16.msra.mxu1 %v6802_v27 }
 0x767   : > { %4432 = vmatprep.subr.bf16.mxu1 %v6803_v7 }
 0x769   : > { %3046 = vmatpush1.bf16.msra.mxu0 %v5009_v5 }
 0x76a   : > { %3047 = vmatprep.subr.bf16.mxu0 %v5014_v38  ;;  %4434 = vmatpush1.bf16.msra.mxu1 %v6804_v16 }
 0x76b   : > { %4436 = vmatprep.subr.bf16.mxu1 %v6805_v59 }
 0x76d   : > { %3048 = vmatpush1.bf16.msra.mxu0 %v5012_v57 }
 0x76e   : > { %3049 = vmatprep.subr.bf16.mxu0 %v5017_v10  ;;  %4438 = vmatpush1.bf16.msra.mxu1 %v6806_v17 }
 0x76f   : > { %4440 = vmatprep.subr.bf16.mxu1 %v6807_v34 }
 0x771   : > { %3050 = vmatpush1.bf16.msra.mxu0 %v5015_v61 }
 0x772   : > { %3051 = vmatprep.subr.bf16.mxu0 %v5020_v2  ;;  %4442 = vmatpush1.bf16.msra.mxu1 %v6808_v33 }
 0x773   : > { %4444 = vmatprep.subr.bf16.mxu1 %v6809_v13 }
 0x775   : > { %3052 = vmatpush1.bf16.msra.mxu0 %v5018_v22  ;;  %v6818_v22 = vld [vmem:[#allocation41_spill] sm:$0xff] }
 0x776   : > { %3053 = vmatprep.subr.bf16.mxu0 %v5023_v28  ;;  %4446 = vmatpush1.bf16.msra.mxu1 %v6810_v52  ;;  %v6819_v28 = vld [vmem:[#allocation42_spill] sm:$0xff] }
 0x777   : > { %4448 = vmatprep.subr.bf16.mxu1 %v6811_v26 }
 0x779   : > { %3054 = vmatpush1.bf16.msra.mxu0 %v5021_v47 }
 0x77a   : > { %3055 = vmatprep.subr.bf16.mxu0 %v5026_v51  ;;  %4450 = vmatpush1.bf16.msra.mxu1 %v6812_v50 }
 0x77b   : > { %4452 = vmatprep.subr.bf16.mxu1 %v6813_v23 }
 0x77d   : > { %3056 = vmatpush1.bf16.msra.mxu0 %v5024_v4 }
 0x77e   : > { %4454 = vmatpush1.bf16.msra.mxu1 %v6814_v39  ;;  %4456 = vmatprep.subr.bf16.mxu0 %v5996_v1 }
 0x77f   : > { %4520 = vmatprep.subr.bf16.mxu1 %v6815_v20 }
 0x780   : > { %3058 = vmatmul.mubr.bf16.vlgmr.msra.gmra.mrb[12].mxu0 %v2831_v19 }
 0x781   : > { %v6487_v58 = vpop.f32.mrb[20].mxu1  ;;  %4458 = vmatpush1.bf16.msra.mxu0 %v5998_v8 }
 0x782   : > { %v4197_v5 = vpop.f32.mrb[21].mxu1  ;;  %4460 = vmatprep.subr.bf16.mxu0 %v6004_v12 }
 0x783   : > { %v6491_v38 = vpop.f32.mrb[22].mxu1 }
 0x784   : > { %v4198_v57 = vpop.f32.mrb[23].mxu1 }
 0x785   : > { %4462 = vmatpush1.bf16.msra.mxu0 %v6006_v14 }
 0x786   : > { %4464 = vmatprep.subr.bf16.mxu0 %v6009_v18 }
 0x789   : > { %4466 = vmatpush1.bf16.msra.mxu0 %v6013_v24 }
 0x78a   : > { %4468 = vmatprep.subr.bf16.mxu0 %v6017_v25 }
 0x78d   : > { %4470 = vmatpush1.bf16.msra.mxu0 %v6021_v30 }
 0x78e   : > { %4472 = vmatprep.subr.bf16.mxu0 %v6025_v31 }
 0x791   : > { %4474 = vmatpush1.bf16.msra.mxu0 %v6029_v36 }
 0x792   : > { %4476 = vmatprep.subr.bf16.mxu0 %v6033_v37 }
 0x795   : > { %4478 = vmatpush1.bf16.msra.mxu0 %v6037_v42 }
 0x796   : > { %4480 = vmatprep.subr.bf16.mxu0 %v6041_v43 }
 0x799   : > { %4482 = vmatpush1.bf16.msra.mxu0 %v6045_v48 }
 0x79a   : > { %4484 = vmatprep.subr.bf16.mxu0 %v6049_v49 }
 0x79d   : > { %4486 = vmatpush1.bf16.msra.mxu0 %v6053_v54 }
 0x79e   : > { %4488 = vmatprep.subr.bf16.mxu0 %v6057_v55 }
 0x7a1   : > { %4490 = vmatpush1.bf16.msra.mxu0 %v6061_v0 }
 0x7a2   : > { %4492 = vmatprep.subr.bf16.mxu0 %v6801_v60 }
 0x7a5   : > { %4494 = vmatpush1.bf16.msra.mxu0 %v6802_v27 }
 0x7a6   : > { %4496 = vmatprep.subr.bf16.mxu0 %v6803_v7 }
 0x7a9   : > { %4498 = vmatpush1.bf16.msra.mxu0 %v6804_v16 }
 0x7aa   : > { %4500 = vmatprep.subr.bf16.mxu0 %v6805_v59 }
 0x7ad   : > { %4502 = vmatpush1.bf16.msra.mxu0 %v6806_v17  ;;  %v6816_v17 = vld [vmem:[#allocation39_spill] sm:$0xff] }
 0x7ae   : > { %4504 = vmatprep.subr.bf16.mxu0 %v6807_v34  ;;  %v6817_v34 = vld [vmem:[#allocation40_spill] sm:$0xff] }
 0x7b1   : > { %4506 = vmatpush1.bf16.msra.mxu0 %v6808_v33 }
 0x7b2   : > { %4508 = vmatprep.subr.bf16.mxu0 %v6809_v13 }
 0x7b5   : > { %4510 = vmatpush1.bf16.msra.mxu0 %v6810_v52 }
 0x7b6   : > { %4512 = vmatprep.subr.bf16.mxu0 %v6811_v26 }
 0x7b9   : > { %4514 = vmatpush1.bf16.msra.mxu0 %v6812_v50 }
 0x7ba   : > { %4516 = vmatprep.subr.bf16.mxu0 %v6813_v23 }
 0x7bd   : > { %4518 = vmatpush1.bf16.msra.mxu0 %v6814_v39 }
 0x813   : > { %v2783_v1 = vpop.f32.mrb[16].mxu0  ;;  %v6522_v8 = vpop.f32.mrb[24].mxu1 }
 0x814   : > { %v2785_v12 = vpop.f32.mrb[17].mxu0  ;;  %v6524_v14 = vpop.f32.mrb[25].mxu1 }
 0x815   : > { %v3074_v18 = vcombine.low %v2783_v1, %v2785_v12  ;;  %v3400_v24 = vcombine.low %v6522_v8, %v6524_v14  ;;  %v2787_v25 = vpop.f32.mrb[18].mxu0  ;;  %v2828_v30 = vpop.f32.mrb[26].mxu1 }
 0x816   : > { %v2788_v31 = vpop.f32.mrb[19].mxu0  ;;  %v2829_v36 = vpop.f32.mrb[27].mxu1 }
 0x817   : > { %v3081_v37 = vrot.slane %v3074_v18, %v6131_v46 }
 0x819   : > { %v3082_v42 = vcombine.high %v3081_v37, %v3081_v37  ;;  %v3089_v43 = vrot.slane %v3081_v37, %v6131_v46 }
 0x81b   : > { %v3096_v48 = vrot.slane %v3082_v42, %v6131_v46  ;;  %v3100_v49 = vrot.slane %v3089_v43, %v6135_v53  ;;  %v3104_v55 = vrot.slane %v3089_v43, %v6139_v62 }
 0x81d   : > { %v3108_v27 = vrot.slane %v3096_v48, %v6135_v53  ;;  %v3112_v16 = vrot.slane %v3096_v48, %v6139_v62 }
 0x853   : > { %v3059_v54 = vpop.f32.mrb[12].mxu0 }
 0x854   : > { %v3117_v0 = vadd.f32 %v3100_v49, %v3059_v54  ;;  %v3061_v60 = vpop.f32.mrb[13].mxu0 }
 0x855   : > { %v3118_v7 = vadd.f32 %v3104_v55, %v3061_v60  ;;  %v3063_v10 = vpop.f32.mrb[14].mxu0 }
 0x856   : > { %v3119_v59 = vadd.f32 %v3108_v27, %v3063_v10  ;;  %v3065_v61 = vpop.f32.mrb[15].mxu0 }
 0x857   : > { %v3120_v2 = vadd.f32 %v3112_v16, %v3065_v61  ;;  %3185 = vmatprep.mubr.f32.mxu1 %v3118_v7 }
 0x858   : > { %3186 = vmatmul.mubr.f32.vlgmr.msra.gmra.mrb[28].mxu1 %v3117_v0 }
 0x859   : > { %3191 = vmatprep.mubr.f32.mxu1 %v3120_v2  ;;  %4522 = vmatpush3.bf16.msra.mxu1 %v6177_v3 }
 0x85a   : > { %4524 = vmatprep.subr.bf16.mxu1 %v6187_v9 }
 0x85c   : > { %3192 = vmatmul.mubr.f32.gmra.mrb[30].mxu1 %v3119_v59 }
 0x85d   : > { %4526 = vmatpush3.bf16.msra.mxu1 %v6195_v29 }
 0x85e   : > { %4528 = vmatprep.subr.bf16.mxu1 %v6205_v35 }
 0x861   : > { %4530 = vmatpush3.bf16.msra.mxu1 %v6213_v45 }
 0x862   : > { %4532 = vmatprep.subr.bf16.mxu1 %v6223_v11 }
 0x865   : > { %4534 = vmatpush3.bf16.msra.mxu1 %v6231_v32 }
 0x866   : > { %4536 = vmatprep.subr.bf16.mxu1 %v6241_v6 }
 0x869   : > { %4538 = vmatpush3.bf16.msra.mxu1 %v6249_v21 }
 0x86a   : > { %4540 = vmatprep.subr.bf16.mxu1 %v6259_v40 }
 0x86d   : > { %4542 = vmatpush3.bf16.msra.mxu1 %v6267_v63 }
 0x86e   : > { %4544 = vmatprep.subr.bf16.mxu1 %v6816_v17 }
 0x871   : > { %4546 = vmatpush3.bf16.msra.mxu1 %v6817_v34 }
 0x872   : > { %4548 = vmatprep.subr.bf16.mxu1 %v6818_v22 }
 0x875   : > { %4550 = vmatpush3.bf16.msra.mxu1 %v6819_v28 }
 0x876   : > { %4552 = vmatprep.subr.bf16.mxu1 %v6815_v20 }
 0x92b   : > { %v3187_v33 = vpop.f32.mrb[28].mxu1 }
 0x92c   : > { %v3198_v13 = vsub.f32 %v3117_v0, %v3187_v33  ;;  %v3189_v47 = vpop.f32.mrb[29].mxu1 }
 0x92d   : > { %v3199_v51 = vsub.f32 %v3118_v7, %v3189_v47 }
 0x92e   : > { %v3202_v4 = vmul.f32 %v3198_v13, %v3198_v13 }
 0x92f   : > { %v3203_v52 = vmul.f32 %v3199_v51, %v3199_v51  ;;  %v3193_v26 = vpop.f32.mrb[30].mxu1 }
 0x930   : > { %v3200_v50 = vsub.f32 %v3119_v59, %v3193_v26  ;;  %v3195_v23 = vpop.f32.mrb[31].mxu1 }
 0x931   : > { %v3201_v19 = vsub.f32 %v3120_v2, %v3195_v23  ;;  %3270 = vmatprep.mubr.f32.mxu0 %v3203_v52 }
 0x932   : > { %3271 = vmatmul.mubr.f32.vlgmr.msra.gmra.mrb[20].mxu0 %v3202_v4  ;;  %v3204_v5 = vmul.f32 %v3200_v50, %v3200_v50 }
 0x933   : > { %v3205_v39 = vmul.f32 %v3201_v19, %v3201_v19 }
 0x935   : > { %3276 = vmatprep.mubr.f32.mxu0 %v3205_v39 }
 0x936   : > { %3277 = vmatmul.mubr.f32.gmra.mrb[22].mxu0 %v3204_v5 }
 0xa05   : > { %v3272_v57 = vpop.f32.mrb[20].mxu0 }
 0xa06   : > { %v3273_v1 = vadd.f32 1e-05, %v3272_v57  ;;  %v3274_v20 = vpop.f32.mrb[21].mxu0  ;;  %v3407_v57 = vrot.slane %v3400_v24, %v6131_v46 }
 0xa07   : > { %v3275_v12 = vadd.f32 1e-05, %v3274_v20 }
 0xa08   : > { %5059 = vrsqrt.f32 %v3273_v1 }
 0xa09   : > { %5061 = vrsqrt.f32 %v3275_v12  ;;  %v3278_v18 = vpop.f32.mrb[22].mxu0 }
 0xa0a   : > { %v3279_v25 = vadd.f32 1e-05, %v3278_v18  ;;  %v3280_v30 = vpop.f32.mrb[23].mxu0  ;;  %v3408_v18 = vcombine.high %v3407_v57, %v3407_v57 }
 0xa0b   : > { %v3281_v31 = vadd.f32 1e-05, %v3280_v30 }
 0xa0c   : > { %5063 = vrsqrt.f32 %v3279_v25  ;;  %v3415_v25 = vrot.slane %v3407_v57, %v6131_v46  ;;  %v3422_v30 = vrot.slane %v3408_v18, %v6131_v46 }
 0xa0d   : > { %5065 = vrsqrt.f32 %v3281_v31 }
 0xa0e   : > { %v3426_v31 = vrot.slane %v3415_v25, %v6135_v53  ;;  %v3434_v14 = vrot.slane %v3422_v30, %v6135_v53 }
 0xa12   : > { %v5060_v36 = vpop.eup %5059 }
 0xa13   : > { %v5062_v37 = vpop.eup %5061  ;;  %v3287_v42 = vmul.f32 %v5060_v36, %v3198_v13 }
 0xa14   : > { %v3288_v43 = vmul.f32 %v5062_v37, %v3199_v51  ;;  %v3430_v37 = vrot.slane %v3415_v25, %v6139_v62 }
 0xa15   : > { %v3291_v48 = vmax.f32 %v3287_v42, 0.0 }
 0xa16   : > { %v5064_v49 = vpop.eup %5063  ;;  %v3292_v54 = vmax.f32 %v3288_v43, 0.0 }
 0xa17   : > { %v5066_v55 = vpop.eup %5065  ;;  %v3295_v0 = vadd.f32 %v3291_v48, %v6311_v41  ;;  %v3289_v60 = vmul.f32 %v5064_v49, %v3200_v50  ;;  %v3438_v48 = vrot.slane %v3422_v30, %v6139_v62 }
 0xa18   : > { %v3296_v27 = vadd.f32 %v3292_v54, %v6315_v44  ;;  %v3290_v7 = vmul.f32 %v5066_v55, %v3201_v19 }
 0xa19   : > { %v3299_v10 = vmul.f32 0.5, %v3295_v0  ;;  %3562 = vst [vmem:[%s6554_s13] sm:$0xff] %v3295_v0  ;;  %v3293_v16 = vmax.f32 %v3289_v60, 0.0 }
 0xa1a   : > { %v3300_v59 = vmul.f32 0.5, %v3296_v27  ;;  %3563 = vst [vmem:[%s6554_s13 + $0x8] sm:$0xff] %v3296_v27  ;;  %v3294_v61 = vmax.f32 %v3290_v7, 0.0 }
 0xa1b   : > { %5067 = vtanh.f32 %v3299_v10  ;;  %v3297_v2 = vadd.f32 %v3293_v16, %v6321_v15 }
 0xa1c   : > { %5069 = vtanh.f32 %v3300_v59  ;;  %v3298_v41 = vadd.f32 %v3294_v61, %v6324_v56 }
 0xa1d   : > { %v3301_v44 = vmul.f32 0.5, %v3297_v2  ;;  %3564 = vst [vmem:[%s6554_s13 + $0x10] sm:$0xff] %v3297_v2 }
 0xa1e   : > { %v3302_v33 = vmul.f32 0.5, %v3298_v41  ;;  %3565 = vst [vmem:[%s6554_s13 + $0x18] sm:$0xff] %v3298_v41  ;;  %s5297_s13 = scalar_lea.vmem %s5296_s9, 1024 }
 0xa1f   : > { %5071 = vtanh.f32 %v3301_v44  ;;  %p5299_p2 = scmp.lt.s32.totalorder %s5297_s13, %s5291_s27 }
 0xa20   : > { %5073 = vtanh.f32 %v3302_v33 }
 0xa21   : > { %p5300_p8 = por %p5299_p2, %p5298_p0 }
 0xa23   : > { %p5301_p4 = pnand %p5300_p8, %p5294_p13 }
 0xa25   : > { %v5068_v13 = vpop.eup %5067 }
 0xa26   : > { %v5070_v47 = vpop.eup %5069  ;;  %v3307_v51 = vmul.f32 0.5, %v5068_v13 }
 0xa27   : > { %v3308_v52 = vmul.f32 0.5, %v5070_v47 }
 0xa28   : > { %v3311_v26 = vadd.f32 0.5, %v3307_v51 }
 0xa29   : > { %v5072_v4 = vpop.eup %5071  ;;  %v3312_v50 = vadd.f32 0.5, %v3308_v52 }
 0xa2a   : > { %v5074_v23 = vpop.eup %5073  ;;  %v3315_v19 = vmul.f32 1.442695, %v3311_v26  ;;  %v3309_v39 = vmul.f32 0.5, %v5072_v4 }
 0xa2b   : > { %v3317_v15 = vmul.f32 1.442695, %v3312_v50  ;;  %v3310_v5 = vmul.f32 0.5, %v5074_v23 }
 0xa2c   : > { %5075 = vpow2.f32 %v3315_v19  ;;  %v3313_v56 = vadd.f32 0.5, %v3309_v39 }
 0xa2d   : > { %5077 = vpow2.f32 %v3317_v15  ;;  %v3314_v1 = vadd.f32 0.5, %v3310_v5 }
 0xa2e   : > { %v3319_v20 = vmul.f32 1.442695, %v3313_v56 }
 0xa2f   : > { %v3321_v12 = vmul.f32 1.442695, %v3314_v1 }
 0xa30   : > { %5079 = vpow2.f32 %v3319_v20 }
 0xa31   : > { %5081 = vpow2.f32 %v3321_v12 }
 0xa36   : > { %v5076_v36 = vpop.eup %5075 }
 0xa37   : > { %v5078_v42 = vpop.eup %5077  ;;  %v3443_v43 = vmul.f32 %v5076_v36, %v3426_v31 }
 0xa38   : > { %3387 = vmatprep.mubr.f32.mxu1 %v5078_v42  ;;  %v3444_v8 = vmul.f32 %v5078_v42, %v3430_v37 }
 0xa39   : > { %3388 = vmatmul.mubr.f32.vlgmr.msra.gmra.mrb[32].mxu1 %v5076_v36 }
 0xa3a   : > { %v5080_v24 = vpop.eup %5079  ;;  %4554 = vmatpush3.bf16.msra.mxu1 %v6177_v3 }
 0xa3b   : > { %v5082_v49 = vpop.eup %5081  ;;  %4556 = vmatprep.subr.bf16.mxu1 %v6187_v9  ;;  %v3445_v46 = vmul.f32 %v5080_v24, %v3434_v14 }
 0xa3c   : > { %3392 = vmatprep.mubr.f32.mxu1 %v5082_v49  ;;  %v3446_v54 = vmul.f32 %v5082_v49, %v3438_v48 }
 0xa3d   : > { %3393 = vmatmul.mubr.f32.gmra.mrb[34].mxu1 %v5080_v24 }
 0xa3e   : > { %4558 = vmatpush3.bf16.msra.mxu1 %v6195_v29  ;;  %3511 = vmatprep.mubr.f32.mxu1 %v3444_v8 }
 0xa3f   : > { %4560 = vmatprep.subr.bf16.mxu1 %v6205_v35 }
 0xa42   : > { %4562 = vmatpush3.bf16.msra.mxu1 %v6213_v45 }
 0xa43   : > { %4564 = vmatprep.subr.bf16.mxu1 %v6223_v11 }
 0xa46   : > { %4566 = vmatpush3.bf16.msra.mxu1 %v6231_v32 }
 0xa47   : > { %4568 = vmatprep.subr.bf16.mxu1 %v6241_v6 }
 0xa4a   : > { %4570 = vmatpush3.bf16.msra.mxu1 %v6249_v21 }
 0xa4b   : > { %4572 = vmatprep.subr.bf16.mxu1 %v6259_v40 }
 0xa4e   : > { %4574 = vmatpush3.bf16.msra.mxu1 %v6267_v63 }
 0xa4f   : > { %4576 = vmatprep.subr.bf16.mxu1 %v6816_v17 }
 0xa52   : > { %4578 = vmatpush3.bf16.msra.mxu1 %v6817_v34 }
 0xa53   : > { %4580 = vmatprep.subr.bf16.mxu1 %v6818_v22 }
 0xa56   : > { %4582 = vmatpush3.bf16.msra.mxu1 %v6819_v28 }
 0xa59   : > { %3512 = vmatmul.mubr.f32.vlgmr.msra.gmra.mrb[36].mxu1 %v3443_v43 }
 0xa5a   : > { %3516 = vmatprep.mubr.f32.mxu1 %v3446_v54 }
 0xa5d   : > { %3517 = vmatmul.mubr.f32.gmra.mrb[38].mxu1 %v3445_v46 }
 0xb0c   : > { %v4139_v53 = vpop.f32.mrb[32].mxu1 }
 0xb0d   : > { %v4140_v62 = vpop.f32.mrb[33].mxu1 }
 0xb0e   : > { %v4141_v3 = vadd.f32 %v4140_v62, %v4139_v53 }
 0xb10   : > { %v4142_v9 = vpop.f32.mrb[34].mxu1  ;;  %5083 = vrcp.f32 %v4141_v3 }
 0xb11   : > { %v4143_v29 = vpop.f32.mrb[35].mxu1 }
 0xb12   : > { %v4144_v35 = vadd.f32 %v4143_v29, %v4142_v9 }
 0xb14   : > { %5085 = vrcp.f32 %v4144_v35 }
 0xb1a   : > { %v5084_v6 = vpop.eup %5083 }
 0xb1e   : > { %v5086_v22 = vpop.eup %5085 }
 0xb2c   : > { %v4177_v45 = vpop.f32.mrb[36].mxu1 }
 0xb2d   : > { %v4178_v11 = vpop.f32.mrb[37].mxu1 }
 0xb2e   : > { %v4179_v32 = vadd.f32 %v4178_v11, %v4177_v45 }
 0xb30   : > { %v3524_v21 = vmul.f32 %v5084_v6, %v4179_v32  ;;  %v4180_v40 = vpop.f32.mrb[38].mxu1 }
 0xb31   : > { %v4181_v63 = vpop.f32.mrb[39].mxu1 }
 0xb32   : > { %v3526_v17 = vmul.f32 0.125, %v3524_v21  ;;  %v4182_v34 = vadd.f32 %v4181_v63, %v4180_v40 }
 0xb34   : > { %v3525_v28 = vmul.f32 %v5086_v22, %v4182_v34  ;;  %v3528_v55 = vadd.f32 %v3526_v17, %v6487_v58 }
 0xb36   : > { %v3527_v0 = vmul.f32 0.125, %v3525_v28  ;;  %v3530_v60 = vsel %vm675_vm5, %v3528_v55, 0.0 }
 0xb37   : > { %3531 = vadd.xlane.f32.xlu0 %v3530_v60 }
 0xb38   : > { %v3529_v27 = vadd.f32 %v3527_v0, %v6491_v38 }
 0xb3a   : > { %v3533_v7 = vsel %vm675_vm5, %v3529_v27, 0.0 }
 0xb3b   : > { %3534 = vadd.xlane.f32.xlu1 %v3533_v7 }
 0xbc4   : > { %v3532_v10 = vpop.xlane.xlu0 %3531 }
 0xbc5   : > { %v3536_v16 = vmul.f32 0.03125, %v3532_v10 }
 0xbc7   : > { %v3538_v59 = vsub.f32 %v3528_v55, %v3536_v16 }
 0xbc8   : > { %v3535_v61 = vpop.xlane.xlu1 %3534 }
 0xbc9   : > { %v3537_v2 = vmul.f32 0.03125, %v3535_v61  ;;  %v3540_v41 = vmul.f32 %v3538_v59, %v3538_v59 }
 0xbcb   : > { %v3539_v58 = vsub.f32 %v3529_v27, %v3537_v2  ;;  %v3542_v44 = vsel %vm675_vm5, %v3540_v41, 0.0 }
 0xbcc   : > { %3543 = vadd.xlane.f32.xlu0 %v3542_v44 }
 0xbcd   : > { %v3541_v33 = vmul.f32 %v3539_v58, %v3539_v58 }
 0xbcf   : > { %v3545_v13 = vsel %vm675_vm5, %v3541_v33, 0.0 }
 0xbd0   : > { %3546 = vadd.xlane.f32.xlu0 %v3545_v13 }
 0xbd1   : > { %5304 = shalt.err (!%p5301_p4)
}
 0xbd2   : > { %s5305_s10 = scalar_lea.hbm %s6598_s28, 512  ;;  %s5309_s14 = scalar_lea.hbm %s6820_s24, 1024 }
 0xbd3   : > { %p5306_p10 = scmp.ne.s32.totalorder %s6598_s28, %s5305_s10  ;;  %p5310_p5 = scmp.lt.u32.totalorder %s6598_s28, %s6820_s24 }
 0xbd4   : > { %p5311_p7 = scmp.lt.u32.totalorder %s5309_s14, %s5305_s10  ;;  %p5313_p9 = scmp.lt.u32.totalorder %s5305_s10, %s6598_s28 }
 0xbd5   : > { %p5307_p11 = pnand %p5306_p10, %p6821_p12 }
 0xbd6   : > { %p5312_p6 = por %p5311_p7, %p5310_p5 }
 0xbd7   : > { %p5308_p3 = pneg %p5307_p11 }
 0xbd8   : > { %p5314_p1 = por %p5313_p9, %p5312_p6 }
 0xbda   : > { %p5315_p13 = pnand %p5314_p1, %p5308_p3 }
 0xbdc   : > { %5318 = shalt.err (!%p5315_p13)
}
 0xbdd   : > { %s5425_s27 = smov 256   ;;  %s5426_s13 = smov 16   ;;  %v6823_v19 = vld [vmem:[#allocation44_spill] sm:$0xff]  ;;  %v6825_v57 = vld [vmem:[#allocation43_spill] sm:$0xff] }
 0xbde   : > { %s6822_s0 = scalar_lea.sflag [#allocation17], %s5767_s30  ;;  %s4022_s12 = sshll.u32 %s5511_s23, 8 }
 0xbdf   : > { %4618 = dma.vmem_to_hbm [thread:$0]  (%p6821_p12), %s6600_s15, 512, %s6598_s28, %s6822_s0, %s5425_s27, %s5425_s27, %s5426_s13  }
 0xbe0   : > { %s6824_s0 = sshll.u32 %s5767_s30, 4  ;;  %s6826_s22 = sld [smem:[#allocation47_spill]] }
 0xbe1   : > { %s513_s15 = scalar_lea.vmem [#allocation15], %s6824_s0  ;;  %s3567_s23 = scalar_lea.sflag [#allocation5], %s5767_s30 }
 0xbe2   : > { %s3585_s28 = sshll.u32 %s513_s15, 4  ;;  %s5427_s27 = smov [#allocation15]   ;;  %s6637_s28 = int_to_ptr.vmem [resolvable:$true] %s3585_s28 }
 0xbe3   : > { %s5319_s9 = scalar_lea.vmem %s6637_s28, 256  ;;  %s5323_s13 = sshll.u32 %s5427_s27, 4  ;;  %s5324_s13 = int_to_ptr.vmem [resolvable:$false] %s5323_s13 }
 0xbe4   : > { %p5320_p0 = scmp.ne.s32.totalorder %s6637_s28, %s5319_s9  ;;  %s5325_s0 = scalar_lea.vmem %s5324_s13, 512 }
 0xbe5   : > { %p5326_p4 = scmp.lt.s32.totalorder %s6637_s28, %s5324_s13  ;;  %p5327_p10 = scmp.lt.s32.totalorder %s5325_s0, %s5319_s9 }
 0xbe6   : > { %s6635_s14 = scalar_lea.hbm %s6826_s22, %s4022_s12  ;;  %p5321_p2 = pnand %p5320_p0, %p6821_p12 }
 0xbe7   : > { %p5328_p11 = por %p5327_p10, %p5326_p4 }
 0xbe8   : > { %p5322_p8 = pneg %p5321_p2 }
 0xbea   : > { %p5329_p3 = pnand %p5328_p11, %p5322_p8 }
 0xc59   : > { %v3544_v38 = vpop.xlane.xlu0 %3543 }
 0xc5a   : > { %v3548_v47 = vmul.f32 0.03125, %v3544_v38 }
 0xc5c   : > { %v3550_v51 = vadd.f32 1e-05, %v3548_v47 }
 0xc5d   : > { %v3547_v52 = vpop.xlane.xlu0 %3546 }
 0xc5e   : > { %5087 = vrsqrt.f32 %v3550_v51  ;;  %v3549_v26 = vmul.f32 0.03125, %v3547_v52 }
 0xc60   : > { %v3551_v4 = vadd.f32 1e-05, %v3549_v26 }
 0xc62   : > { %5089 = vrsqrt.f32 %v3551_v4 }
 0xc68   : > { %v5088_v50 = vpop.eup %5087 }
 0xc69   : > { %v3554_v23 = vmul.f32 %v5088_v50, %v3538_v59 }
 0xc6b   : > { %v3556_v39 = vadd.f32 %v3554_v23, %v6823_v19 }
 0xc6c   : > { %v5090_v15 = vpop.eup %5089 }
 0xc6d   : > { %v3558_v5 = vmax.f32 %v3556_v39, 0.0  ;;  %v3555_v56 = vmul.f32 %v5090_v15, %v3539_v58 }
 0xc6f   : > { %v3557_v1 = vadd.f32 %v3555_v56, %v6825_v57  ;;  %3560 = vst.msk [vmem:[%s513_s15] sm:$0xff] %vm675_vm5, %v3558_v5 }
 0xc71   : > { %v3559_v20 = vmax.f32 %v3557_v1, 0.0 }
 0xc73   : > { %3561 = vst.msk [vmem:[%s513_s15 + $0x8] sm:$0xff] %vm675_vm5, %v3559_v20 }
 0xc74   : > { %5332 = shalt.err (!%p5329_p3)
}
 0xc75   : > { %s5333_s12 = scalar_lea.hbm %s6635_s14, 256  ;;  %s5337_s29 = scalar_lea.hbm %s6826_s22, 512 }
 0xc76   : > { %p5334_p5 = scmp.ne.s32.totalorder %s6635_s14, %s5333_s12  ;;  %p5338_p9 = scmp.lt.u32.totalorder %s6635_s14, %s6826_s22 }
 0xc77   : > { %p5339_p1 = scmp.lt.u32.totalorder %s5337_s29, %s5333_s12  ;;  %p5341_p0 = scmp.lt.u32.totalorder %s5333_s12, %s6635_s14 }
 0xc78   : > { %p5335_p7 = pnand %p5334_p5, %p6821_p12 }
 0xc79   : > { %p5340_p13 = por %p5339_p1, %p5338_p9 }
 0xc7a   : > { %p5336_p6 = pneg %p5335_p7 }
 0xc7b   : > { %p5342_p2 = por %p5341_p0, %p5340_p13 }
 0xc7d   : > { %p5343_p8 = pnand %p5342_p2, %p5336_p6 }
 0xc7f   : > { %5346 = shalt.err (!%p5343_p8)
}
 0xc80   : > { %s5428_s9 = smov 128   ;;  %s5429_s0 = smov 8  }
 0xc81   : > { %4617 = dma.vmem_to_hbm [thread:$0]  (%p6821_p12), %s6637_s28, 256, %s6635_s14, %s3567_s23, %s5428_s9, %s5428_s9, %s5429_s0  }
 0xc82 PF: > { %s3617_s15 = sand.u32 1, %s5389_s17   ;;  %p6827_p4 = scmp.ne.s32.totalorder %s6762_s26, 0 }
 0xc83   : > { %p6828_p10 = scmp.ge.s32.totalorder %s5401_s20, 2  ;;  %s3618_s12 = scalar_lea.sflag [#allocation5], %s3617_s15 }
 0xc85   : > { %p4645_p11 = pnand %p6828_p10, %p6827_p4 }
 0xc87   : > { %5380 = dma.done.wait (!%p4645_p11), %s3618_s12, 256  }
 0xc88   : > { %5382 = vsyncadd (!%p4645_p11), %s3618_s12, 4294967040  ;;  %s3627_s10 = scalar_lea.sflag [#allocation17], %s3617_s15 }
 0xc89   : > { %5384 = dma.done.wait (!%p4645_p11), %s3627_s10, 512  }
 0xc8a   : > { %5386 = vsyncadd (!%p4645_p11), %s3627_s10, 4294966784  ;;  %p31_p12 = scmp.ge.s32.totalorder %s5685_s16, 4   ;;  %s6829_s17 = smov %s5393_s18 }
 0xc8b   : > { %s6830_s18 = smov %s5397_s19  ;;  %s6831_s19 = smov %s5696_s21 }
 0xc8c   : > { %s6832_s20 = smov %s5685_s16  ;;  %33 = sbr.rel (!%p31_p12) target bundleno = 15 (0xf), region = 149 }
 0xc93   :  { %3632 = vsyncpa [#allocation4], 1 }
 0xc94   :  { %3634 = vsyncpa [#allocation4 + $0x1], 1 }
 0xc95   :  { %3635 = vsyncpa [#allocation7], 1 }
 0xc96   :  { %3636 = vsyncpa [#allocation10], 1 }
 0xc97   :  { %3637 = vsyncpa [#allocation13], 1 }
 0xc98   :  { %3638 = vsyncpa [#allocation5], 1 }
 0xc99   :  { %3640 = vsyncpa [#allocation5 + $0x1], 1 }
 0xc9a   :  { %3641 = vsyncpa [#allocation17], 1 }
 0xc9b   :  { %3643 = vsyncpa [#allocation17 + $0x1], 1 }

</bundles_post_ra>
